<compile_context>
chip_gen: v7x
topology: tpu7x:2x2x1
jax: 0.10.0
libtpu: 0.0.40
codegen_flags: <defaults>
</compile_context>

<pallas_src>
import functools

import jax
import jax.numpy as jnp
from jax.experimental import pallas as pl
from jax.experimental.pallas import tpu as pltpu

LANE = 128
SUBLANE = 8
HIGHEST = jax.lax.Precision.HIGHEST


def _round_up(n, m):
    return (n + m - 1) // m * m


def _pad2(a, rows, cols):
    pr, pc = rows - a.shape[0], cols - a.shape[1]
    if pr == 0 and pc == 0:
        return a
    return jnp.pad(a, ((0, pr), (0, pc)))


def _dual_tensorcore_tiles():
    """>=2 parallel batch tiles on dual-TC chips (v7x), 1 on single-TC v5e/v6e."""
    try:
        kind = jax.devices()[0].device_kind.lower()
    except Exception:  # pragma: no cover
        return 1
    return 2 if "v7" in kind else 1


# -----------------------------------------------------------------------------
# Histogram entropy (mirrors the torch helper inside forward()), vectorized:
# one broadcast comparison against all 10 half-open bins + one reduction.
# TODO(synk): data-dependent scalar binning over a tiny weight matrix stays in
# plain JAX; it is scalar-bound and not worth a Pallas kernel.
# -----------------------------------------------------------------------------
def _entropy(w, n=10):
    v = w.reshape(-1).astype(jnp.float32)
    vmin = v.min()
    vmax = v.max()
    scale = (vmax - vmin) / n
    edges = vmin + scale * jnp.arange(n + 1, dtype=jnp.float32)          # (n+1,)
    in_bin = (v[None, :] >= edges[:-1, None]) & (v[None, :] < edges[1:, None])
    p = jnp.sum(in_bin, axis=1).astype(jnp.float32) / v.shape[0]
    return -jnp.sum(jnp.where(p > 0, p * jnp.log(jnp.where(p > 0, p, 1.0)), 0.0))


# -----------------------------------------------------------------------------
# The fused kernel: (optional per-layer graft weight merge) + whole dense stack.
# Ref order (merge=True):  x, w_global(SMEM,(L,)), [base_t, graft_t, pw, bias]*L, out
# Ref order (merge=False): x, [w_t, bias]*L, out
# All weights/biases are VMEM-resident (constant index_map); only x / out tiles
# stream over the batch grid; every intermediate lives in VMEM / vregs.
# -----------------------------------------------------------------------------
def _graft_stack_kernel(*refs, activations, merge):
    x_ref = refs[0]
    o_ref = refs[-1]
    if merge:
        wg_ref = refs[1]
        layer_refs = refs[2:-1]
        per = 4
    else:
        layer_refs = refs[1:-1]
        per = 2

    h = x_ref[...]                                            # (tile_rows, d0_pad) f32
    for i, act in enumerate(activations):
        if merge:
            base_t = layer_refs[per * i][...]                 # (din_pad, dout_pad)
            graft_t = layer_refs[per * i + 1][...]            # (din_pad, dout_pad)
            pw = layer_refs[per * i + 2][...]                 # (din_pad, din_pad)
            b = layer_refs[per * i + 3][...]                  # (1, dout_pad)
            wg = wg_ref[i]                                    # scalar from SMEM
            # torch: pd = |Wb-Wg| @ Wp.T ([out,in]@[in,in]); transposed layout:
            # pd.T = Wp @ |Wb-Wg|.T -> no in-kernel transpose needed.
            d_t = jnp.abs(base_t - graft_t)
            pd_t = jnp.dot(pw, d_t, preferred_element_type=jnp.float32,
                           precision=HIGHEST)
            w_local = jax.nn.sigmoid(pd_t)
            w_base = wg * (1.0 - jnp.exp(-wg * w_local))
            w_graft = (1.0 - wg) * (1.0 - jnp.exp(-(1.0 - wg) * (1.0 - w_local)))
            # softmax([a,b]) over 2 == (sigmoid(a-b), sigmoid(b-a)) -> single EUP op
            g = jax.nn.sigmoid(w_base - w_graft)
            w = graft_t + (base_t - graft_t) * g
        else:
            w = layer_refs[per * i][...]
            b = layer_refs[per * i + 1][...]
        h = jnp.dot(h, w, preferred_element_type=jnp.float32,
                    precision=HIGHEST) + b
        if act == "tanh":
            h = jnp.tanh(h)
        elif act == "relu":
            h = jnp.maximum(h, 0.0)
        elif act == "sigmoid":
            h = jax.nn.sigmoid(h)
        # None -> identity
    o_ref[...] = h.astype(o_ref.dtype)


def fused_graft_stack(x2_pad, ws_t, biases, activations, *,
                      graft_ts=None, param_ws=None, w_global=None, num_tiles):
    """One pallas_call for the whole (optionally grafted) dense stack."""
    batch_pad, d0_pad = x2_pad.shape
    d_out = ws_t[-1].shape[1]
    tile_rows = batch_pad // num_tiles
    merge = w_global is not None

    def resident(arr):
        r, c = arr.shape
        return pl.BlockSpec((r, c), lambda i: (0, 0))

    in_specs = [pl.BlockSpec((tile_rows, d0_pad), lambda i: (i, 0))]
    operands = [x2_pad]
    if merge:
        in_specs.append(pl.BlockSpec(memory_space=pltpu.MemorySpace.SMEM))
        operands.append(w_global)
    for li, (w, b) in enumerate(zip(ws_t, biases)):
        if merge:
            arrs = (w, graft_ts[li], param_ws[li], b)
        else:
            arrs = (w, b)
        for arr in arrs:
            in_specs.append(resident(arr))
            operands.append(arr)

    # advisory cost estimate
    mm_flops = 2 * batch_pad * sum(int(w.shape[0]) * int(w.shape[1]) for w in ws_t)
    trans = batch_pad * sum(int(w.shape[1]) for w, a in zip(ws_t, activations)
                            if a in ("tanh", "sigmoid"))
    bytes_accessed = 4 * (int(x2_pad.size)
                          + sum(int(w.size) + int(b.size) for w, b in zip(ws_t, biases))
                          + batch_pad * d_out)
    if merge:
        mm_flops += num_tiles * sum(
            2 * int(pw.shape[0]) * int(pw.shape[1]) * int(w.shape[1])
            for pw, w in zip(param_ws, ws_t))
        trans += num_tiles * sum(4 * int(w.size) for w in ws_t)   # sigmoid/exp per elem
        bytes_accessed += 4 * sum(int(g.size) + int(pw.size)
                                  for g, pw in zip(graft_ts, param_ws))

    kernel = functools.partial(_graft_stack_kernel,
                               activations=tuple(activations), merge=merge)
    return pl.pallas_call(
        kernel,
        out_shape=jax.ShapeDtypeStruct((batch_pad, d_out), jnp.float32),
        grid=(num_tiles,),
        in_specs=in_specs,
        out_specs=pl.BlockSpec((tile_rows, d_out), lambda i: (i, 0)),
        compiler_params=pltpu.CompilerParams(
            dimension_semantics=("parallel",),        # shard batch tiles on v7x's 2 TCs
            vmem_limit_bytes=32 * 1024 * 1024,        # explicit budget, safe on v5e/v6e/v7x
        ),
        cost_estimate=pl.CostEstimate(
            flops=int(mm_flops),
            transcendentals=int(trans),
            bytes_accessed=int(bytes_accessed),
        ),
    )(*operands)


# -----------------------------------------------------------------------------
# Module port
# -----------------------------------------------------------------------------
class GraftStackedDense:
    """JAX/Pallas port of recommendation.module.common.Graft_StackedDense."""

    def __init__(self, in_dimension, units, activation_fns, key,
                 model_name="graft_gru4rec"):
        assert len(units) == len(activation_fns)
        self.a = 0.4
        self.c = 500.0
        self.model_name = model_name
        if model_name == "graft_din":
            self.graft_names = ["_classifier.net.0.weight",
                                "_classifier.net.2.weight",
                                "_classifier.net.4.weight"]
        else:  # graft_gru4rec / graft_sasrec
            self.graft_names = ["_classifier.net.0.weight",
                                "_classifier.net.2.weight"]
        assert len(units) <= len(self.graft_names)

        dims = [in_dimension] + list(units)
        self.dims = dims
        self.num_layers = len(units)
        self.activations = tuple(activation_fns)

        # Padding: K of layer 0 only needs sublane (8) alignment, hidden dims are
        # lane-padded (128) so in-stack matmuls are lane-dense, and the final dim
        # keeps its real width (no wrapper-side pad/slice round trips).
        pdims = [_round_up(dims[0], SUBLANE)]
        for d in dims[1:-1]:
            pdims.append(_round_up(d, LANE))
        pdims.append(dims[-1])
        self.pdims = pdims

        self.base_weights = []   # [out, in]   torch layout (entropy/reference)
        self.base_biases = []    # [out]
        self.param_weights = []  # [in, in]    torch layout for _param_net (no bias)
        self.base_w_t_pad = []   # [in_pad, out_pad]  transposed + padded for the kernel
        self.bias_pad = []       # [1, out_pad]
        self.param_w_pad = []    # [in_pad, in_pad]
        for i in range(self.num_layers):
            fan_in, fan_out = dims[i], dims[i + 1]
            key, wk, bk, pk = jax.random.split(key, 4)
            # deterministic synthetic stand-in for initializer.default_weight_init /
            # default_bias_init (xavier-ish normal W, small-normal bias)
            std = (2.0 / (fan_in + fan_out)) ** 0.5
            w = jax.random.normal(wk, (fan_out, fan_in), jnp.float32) * std
            b = jax.random.normal(bk, (fan_out,), jnp.float32) * 0.01
            pw = jax.random.normal(pk, (fan_in, fan_in), jnp.float32) * (1.0 / fan_in) ** 0.5
            self.base_weights.append(w)
            self.base_biases.append(b)
            self.param_weights.append(pw)
            ip, op = pdims[i], pdims[i + 1]
            self.base_w_t_pad.append(_pad2(w.T, ip, op))
            self.bias_pad.append(_pad2(b.reshape(1, fan_out), 1, op))
            self.param_w_pad.append(_pad2(pw, ip, ip))

        # base-weight entropies are static -> compute once, not per forward call
        self.base_entropy = [float(_entropy(w)) for w in self.base_weights]

        self._target_tiles = _dual_tensorcore_tiles()

    # ---- graft forward (the torch module's default finetune=False path) ----
    def __call__(self, x, graft_param):
        w_globals = []
        graft_ts = []
        for i in range(self.num_layers):
            graft_w = graft_param[self.graft_names[i]].astype(jnp.float32)
            wg = (self.a / jnp.pi) * jnp.arctan(
                self.c * (self.base_entropy[i] - _entropy(graft_w))) + 0.5
            w_globals.append(wg)
            ip, op = self.pdims[i], self.pdims[i + 1]
            graft_ts.append(_pad2(graft_w.T, ip, op))
        w_global = jnp.stack(w_globals).astype(jnp.float32)          # (L,), lives in SMEM
        return self._run_stack(x, w_global=w_global, graft_ts=graft_ts)

    # ---- finetune / forward_test path (plain stacked dense, base weights) ----
    def forward_finetune(self, x):
        return self._run_stack(x)

    def _run_stack(self, x, *, w_global=None, graft_ts=None):
        orig_shape = x.shape
        d_in, d_out = self.dims[0], self.dims[-1]
        x2 = x.reshape(-1, d_in).astype(jnp.float32)
        batch = x2.shape[0]

        # Tile selection: one grid step on single-TC chips; >=2 parallel tiles on
        # dual-TC v7x; cap per-tile rows at 1024 to bound the live VMEM x tile.
        num_tiles = max(self._target_tiles, -(-batch // 1024))
        num_tiles = max(1, min(num_tiles, _round_up(batch, SUBLANE) // SUBLANE))
        tile_rows = _round_up(-(-batch // num_tiles), SUBLANE)
        batch_pad = tile_rows * num_tiles

        d0_pad = self.pdims[0]
        if batch_pad != batch or d0_pad != d_in:
            x2 = jnp.pad(x2, ((0, batch_pad - batch), (0, d0_pad - d_in)))

        out = fused_graft_stack(
            x2, self.base_w_t_pad, self.bias_pad, self.activations,
            graft_ts=graft_ts,
            param_ws=self.param_w_pad if w_global is not None else None,
            w_global=w_global, num_tiles=num_tiles)

        if batch_pad != batch:
            out = out[:batch]
        return out.reshape(orig_shape[:-1] + (d_out,))


# -----------------------------------------------------------------------------
# Pure-JAX references for correctness checking
# -----------------------------------------------------------------------------
def _apply_act(y, act):
    if act == "tanh":
        return jnp.tanh(y)
    if act == "relu":
        return jnp.maximum(y, 0.0)
    if act == "sigmoid":
        return jax.nn.sigmoid(y)
    return y


def _reference_graft(model, x, graft_param):
    y = x.reshape(-1, x.shape[-1]).astype(jnp.float32)
    for i in range(model.num_layers):
        base_w = model.base_weights[i]
        graft_w = graft_param[model.graft_names[i]]
        pw = model.param_weights[i]
        w_global = (model.a / jnp.pi) * jnp.arctan(
            model.c * (_entropy(base_w) - _entropy(graft_w))) + 0.5
        direction = jnp.abs(base_w - graft_w)
        pd = jnp.dot(direction, pw.T, precision=HIGHEST)
        w_local = jax.nn.sigmoid(pd)
        w_base = w_global * (1.0 - jnp.exp(-w_global * w_local))
        w_graft = (1.0 - w_global) * (1.0 - jnp.exp(-(1.0 - w_global) * (1.0 - w_local)))
        w = jax.nn.softmax(jnp.stack([w_base, w_graft], axis=-1), axis=-1)
        merged = base_w * w[..., 0] + graft_w * w[..., 1]
        y = jnp.dot(y, merged.T, precision=HIGHEST) + model.base_biases[i]
        y = _apply_act(y, model.activations[i])
    return y.reshape(x.shape[:-1] + (y.shape[-1],))


def _reference_finetune(model, x):
    y = x.reshape(-1, x.shape[-1]).astype(jnp.float32)
    for i in range(model.num_layers):
        y = jnp.dot(y, model.base_weights[i].T, precision=HIGHEST) + model.base_biases[i]
        y = _apply_act(y, model.activations[i])
    return y.reshape(x.shape[:-1] + (y.shape[-1],))


if __name__ == "__main__":
    key = jax.random.PRNGKey(0)
    key, xk, mk, gk = jax.random.split(key, 4)

    # small recommendation-classifier-like shapes; on v7x this gives 2 parallel
    # 128-row batch tiles, on v5e/v6e a single 256-row tile.
    batch, in_dim = 256, 32
    units = (64, 16)
    activation_fns = ("tanh", None)          # mirrors [nn.Tanh, None]

    x = jax.random.normal(xk, (batch, in_dim), jnp.float32)
    model = GraftStackedDense(in_dim, units, activation_fns, mk,
                              model_name="graft_gru4rec")

    # synthetic graft ("donor") classifier weights, same shapes as the base layers
    graft_param = {}
    dims = [in_dim] + list(units)
    for i in range(len(units)):
        gk, sub = jax.random.split(gk)
        std = (2.0 / (dims[i] + dims[i + 1])) ** 0.5
        graft_param[model.graft_names[i]] = (
            jax.random.normal(sub, (dims[i + 1], dims[i]), jnp.float32) * std)

    # graft path (finetune=False)
    out = jax.block_until_ready(model(x, graft_param))
    ref = _reference_graft(model, x, graft_param)
    assert out.shape == (batch, units[-1]), out.shape
    err = float(jnp.max(jnp.abs(out - ref)))
    assert jnp.allclose(out, ref, atol=2e-4, rtol=2e-4), (
        "graft path mismatch, max abs err = %e" % err)

    # finetune / forward_test path
    out_ft = jax.block_until_ready(model.forward_finetune(x))
    ref_ft = _reference_finetune(model, x)
    err_ft = float(jnp.max(jnp.abs(out_ft - ref_ft)))
    assert jnp.allclose(out_ft, ref_ft, atol=2e-4, rtol=2e-4), (
        "finetune path mismatch, max abs err = %e" % err_ft)

    print("KERNEL_OK")
</pallas_src>

<mosaic_0001>
module attributes {stable_mosaic.version = 11 : i64} {
  func.func @_graft_stack_kernel(%arg0: i32, %arg1: memref<256x32xf32, #tpu.memory_space<vmem>>, %arg2: memref<2xf32, #tpu.memory_space<smem>>, %arg3: memref<32x128xf32, #tpu.memory_space<vmem>>, %arg4: memref<32x128xf32, #tpu.memory_space<vmem>>, %arg5: memref<32x32xf32, #tpu.memory_space<vmem>>, %arg6: memref<1x128xf32, #tpu.memory_space<vmem>>, %arg7: memref<128x16xf32, #tpu.memory_space<vmem>>, %arg8: memref<128x16xf32, #tpu.memory_space<vmem>>, %arg9: memref<128x128xf32, #tpu.memory_space<vmem>>, %arg10: memref<1x16xf32, #tpu.memory_space<vmem>>, %arg11: memref<256x16xf32, #tpu.memory_space<vmem>>) attributes {dimension_semantics = [#tpu.dimension_semantics<parallel>], iteration_bounds = array<i64: 1>, scalar_prefetch = 0 : i64, scratch_operands = 0 : i64, tpu.core_type = #tpu.core_type<tc>, window_params = [{transform_indices = @transform_0, window_bounds = array<i64: 256, 32>}, {transform_indices = @transform_1, window_bounds = array<i64: 2>}, {pipeline_mode = #tpu.pipeline_mode<synchronous>, transform_indices = @transform_2, window_bounds = array<i64: 32, 128>}, {pipeline_mode = #tpu.pipeline_mode<synchronous>, transform_indices = @transform_3, window_bounds = array<i64: 32, 128>}, {pipeline_mode = #tpu.pipeline_mode<synchronous>, transform_indices = @transform_4, window_bounds = array<i64: 32, 32>}, {pipeline_mode = #tpu.pipeline_mode<synchronous>, transform_indices = @transform_5, window_bounds = array<i64: 1, 128>}, {pipeline_mode = #tpu.pipeline_mode<synchronous>, transform_indices = @transform_6, window_bounds = array<i64: 128, 16>}, {pipeline_mode = #tpu.pipeline_mode<synchronous>, transform_indices = @transform_7, window_bounds = array<i64: 128, 16>}, {pipeline_mode = #tpu.pipeline_mode<synchronous>, transform_indices = @transform_8, window_bounds = array<i64: 128, 128>}, {pipeline_mode = #tpu.pipeline_mode<synchronous>, transform_indices = @transform_9, window_bounds = array<i64: 1, 16>}, {transform_indices = @transform_10, window_bounds = array<i64: 256, 16>}]} {
    %c0 = arith.constant 0 : index
    %c0_0 = arith.constant 0 : index
    %0 = vector.load %arg1[%c0, %c0_0] : memref<256x32xf32, #tpu.memory_space<vmem>>, vector<256x32xf32>
    %c0_1 = arith.constant 0 : index
    %c0_2 = arith.constant 0 : index
    %1 = vector.load %arg3[%c0_1, %c0_2] : memref<32x128xf32, #tpu.memory_space<vmem>>, vector<32x128xf32>
    %c0_3 = arith.constant 0 : index
    %c0_4 = arith.constant 0 : index
    %2 = vector.load %arg4[%c0_3, %c0_4] : memref<32x128xf32, #tpu.memory_space<vmem>>, vector<32x128xf32>
    %c0_5 = arith.constant 0 : index
    %c0_6 = arith.constant 0 : index
    %3 = vector.load %arg5[%c0_5, %c0_6] : memref<32x32xf32, #tpu.memory_space<vmem>>, vector<32x32xf32>
    %c0_7 = arith.constant 0 : index
    %c0_8 = arith.constant 0 : index
    %4 = vector.load %arg6[%c0_7, %c0_8] : memref<1x128xf32, #tpu.memory_space<vmem>>, vector<1x128xf32>
    %c0_9 = arith.constant 0 : index
    %5 = memref.load %arg2[%c0_9] : memref<2xf32, #tpu.memory_space<smem>>
    %6 = arith.subf %1, %2 : vector<32x128xf32>
    %7 = math.absf %6 : vector<32x128xf32>
    %cst = arith.constant dense<0.000000e+00> : vector<32x128xf32>
    %8 = tpu.matmul %3, %7, %cst {dimension_numbers = #tpu.dot_dimension_numbers<[1], [0], [0], [1], [0, 0, 1, 1], [], []>, precision = #tpu.contract_precision<fp32>} : vector<32x32xf32>, vector<32x128xf32>, vector<32x128xf32> -> vector<32x128xf32>
    %9 = arith.negf %8 : vector<32x128xf32>
    %10 = math.exp %9 : vector<32x128xf32>
    %cst_10 = arith.constant 1.000000e+00 : f32
    %11 = vector.broadcast %cst_10 : f32 to vector<32x128xf32>
    %12 = arith.addf %11, %10 : vector<32x128xf32>
    %13 = arith.divf %11, %12 : vector<32x128xf32>
    %cst_11 = arith.constant 0.000000e+00 : f32
    %14 = arith.subf %cst_11, %5 : f32
    %15 = vector.broadcast %14 : f32 to vector<32x128xf32>
    %16 = arith.mulf %15, %13 : vector<32x128xf32>
    %17 = math.exp %16 : vector<32x128xf32>
    %cst_12 = arith.constant 1.000000e+00 : f32
    %18 = vector.broadcast %cst_12 : f32 to vector<32x128xf32>
    %19 = arith.subf %18, %17 : vector<32x128xf32>
    %20 = vector.broadcast %5 : f32 to vector<32x128xf32>
    %21 = arith.mulf %20, %19 : vector<32x128xf32>
    %cst_13 = arith.constant 1.000000e+00 : f32
    %22 = arith.subf %cst_13, %5 : f32
    %cst_14 = arith.constant 1.000000e+00 : f32
    %23 = arith.subf %cst_14, %5 : f32
    %cst_15 = arith.constant 0.000000e+00 : f32
    %24 = arith.subf %cst_15, %23 : f32
    %cst_16 = arith.constant 1.000000e+00 : f32
    %25 = vector.broadcast %cst_16 : f32 to vector<32x128xf32>
    %26 = arith.subf %25, %13 : vector<32x128xf32>
    %27 = vector.broadcast %24 : f32 to vector<32x128xf32>
    %28 = arith.mulf %27, %26 : vector<32x128xf32>
    %29 = math.exp %28 : vector<32x128xf32>
    %cst_17 = arith.constant 1.000000e+00 : f32
    %30 = vector.broadcast %cst_17 : f32 to vector<32x128xf32>
    %31 = arith.subf %30, %29 : vector<32x128xf32>
    %32 = vector.broadcast %22 : f32 to vector<32x128xf32>
    %33 = arith.mulf %32, %31 : vector<32x128xf32>
    %34 = arith.subf %21, %33 : vector<32x128xf32>
    %35 = arith.negf %34 : vector<32x128xf32>
    %36 = math.exp %35 : vector<32x128xf32>
    %cst_18 = arith.constant 1.000000e+00 : f32
    %37 = vector.broadcast %cst_18 : f32 to vector<32x128xf32>
    %38 = arith.addf %37, %36 : vector<32x128xf32>
    %39 = arith.divf %37, %38 : vector<32x128xf32>
    %40 = arith.subf %1, %2 : vector<32x128xf32>
    %41 = arith.mulf %40, %39 : vector<32x128xf32>
    %42 = arith.addf %2, %41 : vector<32x128xf32>
    %cst_19 = arith.constant dense<0.000000e+00> : vector<256x128xf32>
    %43 = tpu.matmul %0, %42, %cst_19 {dimension_numbers = #tpu.dot_dimension_numbers<[1], [0], [0], [1], [0, 0, 1, 1], [], []>, precision = #tpu.contract_precision<fp32>} : vector<256x32xf32>, vector<32x128xf32>, vector<256x128xf32> -> vector<256x128xf32>
    %44 = vector.broadcast %4 : vector<1x128xf32> to vector<256x128xf32>
    %45 = arith.addf %43, %44 : vector<256x128xf32>
    %46 = math.tanh %45 : vector<256x128xf32>
    %c0_20 = arith.constant 0 : index
    %c0_21 = arith.constant 0 : index
    %47 = vector.load %arg7[%c0_20, %c0_21] : memref<128x16xf32, #tpu.memory_space<vmem>>, vector<128x16xf32>
    %c0_22 = arith.constant 0 : index
    %c0_23 = arith.constant 0 : index
    %48 = vector.load %arg8[%c0_22, %c0_23] : memref<128x16xf32, #tpu.memory_space<vmem>>, vector<128x16xf32>
    %c0_24 = arith.constant 0 : index
    %c0_25 = arith.constant 0 : index
    %49 = vector.load %arg9[%c0_24, %c0_25] : memref<128x128xf32, #tpu.memory_space<vmem>>, vector<128x128xf32>
    %c0_26 = arith.constant 0 : index
    %c0_27 = arith.constant 0 : index
    %50 = vector.load %arg10[%c0_26, %c0_27] : memref<1x16xf32, #tpu.memory_space<vmem>>, vector<1x16xf32>
    %c1 = arith.constant 1 : index
    %51 = memref.load %arg2[%c1] : memref<2xf32, #tpu.memory_space<smem>>
    %52 = arith.subf %47, %48 : vector<128x16xf32>
    %53 = math.absf %52 : vector<128x16xf32>
    %cst_28 = arith.constant dense<0.000000e+00> : vector<128x16xf32>
    %54 = tpu.matmul %49, %53, %cst_28 {dimension_numbers = #tpu.dot_dimension_numbers<[1], [0], [0], [1], [0, 0, 1, 1], [], []>, precision = #tpu.contract_precision<fp32>} : vector<128x128xf32>, vector<128x16xf32>, vector<128x16xf32> -> vector<128x16xf32>
    %55 = arith.negf %54 : vector<128x16xf32>
    %56 = math.exp %55 : vector<128x16xf32>
    %cst_29 = arith.constant 1.000000e+00 : f32
    %57 = vector.broadcast %cst_29 : f32 to vector<128x16xf32>
    %58 = arith.addf %57, %56 : vector<128x16xf32>
    %59 = arith.divf %57, %58 : vector<128x16xf32>
    %cst_30 = arith.constant 0.000000e+00 : f32
    %60 = arith.subf %cst_30, %51 : f32
    %61 = vector.broadcast %60 : f32 to vector<128x16xf32>
    %62 = arith.mulf %61, %59 : vector<128x16xf32>
    %63 = math.exp %62 : vector<128x16xf32>
    %cst_31 = arith.constant 1.000000e+00 : f32
    %64 = vector.broadcast %cst_31 : f32 to vector<128x16xf32>
    %65 = arith.subf %64, %63 : vector<128x16xf32>
    %66 = vector.broadcast %51 : f32 to vector<128x16xf32>
    %67 = arith.mulf %66, %65 : vector<128x16xf32>
    %cst_32 = arith.constant 1.000000e+00 : f32
    %68 = arith.subf %cst_32, %51 : f32
    %cst_33 = arith.constant 1.000000e+00 : f32
    %69 = arith.subf %cst_33, %51 : f32
    %cst_34 = arith.constant 0.000000e+00 : f32
    %70 = arith.subf %cst_34, %69 : f32
    %cst_35 = arith.constant 1.000000e+00 : f32
    %71 = vector.broadcast %cst_35 : f32 to vector<128x16xf32>
    %72 = arith.subf %71, %59 : vector<128x16xf32>
    %73 = vector.broadcast %70 : f32 to vector<128x16xf32>
    %74 = arith.mulf %73, %72 : vector<128x16xf32>
    %75 = math.exp %74 : vector<128x16xf32>
    %cst_36 = arith.constant 1.000000e+00 : f32
    %76 = vector.broadcast %cst_36 : f32 to vector<128x16xf32>
    %77 = arith.subf %76, %75 : vector<128x16xf32>
    %78 = vector.broadcast %68 : f32 to vector<128x16xf32>
    %79 = arith.mulf %78, %77 : vector<128x16xf32>
    %80 = arith.subf %67, %79 : vector<128x16xf32>
    %81 = arith.negf %80 : vector<128x16xf32>
    %82 = math.exp %81 : vector<128x16xf32>
    %cst_37 = arith.constant 1.000000e+00 : f32
    %83 = vector.broadcast %cst_37 : f32 to vector<128x16xf32>
    %84 = arith.addf %83, %82 : vector<128x16xf32>
    %85 = arith.divf %83, %84 : vector<128x16xf32>
    %86 = arith.subf %47, %48 : vector<128x16xf32>
    %87 = arith.mulf %86, %85 : vector<128x16xf32>
    %88 = arith.addf %48, %87 : vector<128x16xf32>
    %cst_38 = arith.constant dense<0.000000e+00> : vector<256x16xf32>
    %89 = tpu.matmul %46, %88, %cst_38 {dimension_numbers = #tpu.dot_dimension_numbers<[1], [0], [0], [1], [0, 0, 1, 1], [], []>, precision = #tpu.contract_precision<fp32>} : vector<256x128xf32>, vector<128x16xf32>, vector<256x16xf32> -> vector<256x16xf32>
    %90 = vector.broadcast %50 : vector<1x16xf32> to vector<256x16xf32>
    %91 = arith.addf %89, %90 : vector<256x16xf32>
    %c0_39 = arith.constant 0 : index
    %c0_40 = arith.constant 0 : index
    %92 = vector.load %arg11[%c0_39, %c0_40] : memref<256x16xf32, #tpu.memory_space<vmem>>, vector<256x16xf32>
    tpu.vector_store %arg11[%c0_39, %c0_40], %91 {strides = array<i32>} : memref<256x16xf32, #tpu.memory_space<vmem>>, vector<256x16xf32>,
    return
  }
  func.func @transform_0(%arg0: i32) -> (i32, i32) {
    %c0_i32 = arith.constant 0 : i32
    %c0_i32_0 = arith.constant 0 : i32
    return %arg0, %c0_i32 : i32, i32
  }
  func.func @transform_1(%arg0: i32) -> i32 {
    %c0_i32 = arith.constant 0 : i32
    %c0_i32_0 = arith.constant 0 : i32
    return %c0_i32 : i32
  }
  func.func @transform_2(%arg0: i32) -> (i32, i32) {
    %c0_i32 = arith.constant 0 : i32
    %c0_i32_0 = arith.constant 0 : i32
    %c0_i32_1 = arith.constant 0 : i32
    return %c0_i32, %c0_i32_0 : i32, i32
  }
  func.func @transform_3(%arg0: i32) -> (i32, i32) {
    %c0_i32 = arith.constant 0 : i32
    %c0_i32_0 = arith.constant 0 : i32
    %c0_i32_1 = arith.constant 0 : i32
    return %c0_i32, %c0_i32_0 : i32, i32
  }
  func.func @transform_4(%arg0: i32) -> (i32, i32) {
    %c0_i32 = arith.constant 0 : i32
    %c0_i32_0 = arith.constant 0 : i32
    %c0_i32_1 = arith.constant 0 : i32
    return %c0_i32, %c0_i32_0 : i32, i32
  }
  func.func @transform_5(%arg0: i32) -> (i32, i32) {
    %c0_i32 = arith.constant 0 : i32
    %c0_i32_0 = arith.constant 0 : i32
    %c0_i32_1 = arith.constant 0 : i32
    return %c0_i32, %c0_i32_0 : i32, i32
  }
  func.func @transform_6(%arg0: i32) -> (i32, i32) {
    %c0_i32 = arith.constant 0 : i32
    %c0_i32_0 = arith.constant 0 : i32
    %c0_i32_1 = arith.constant 0 : i32
    return %c0_i32, %c0_i32_0 : i32, i32
  }
  func.func @transform_7(%arg0: i32) -> (i32, i32) {
    %c0_i32 = arith.constant 0 : i32
    %c0_i32_0 = arith.constant 0 : i32
    %c0_i32_1 = arith.constant 0 : i32
    return %c0_i32, %c0_i32_0 : i32, i32
  }
  func.func @transform_8(%arg0: i32) -> (i32, i32) {
    %c0_i32 = arith.constant 0 : i32
    %c0_i32_0 = arith.constant 0 : i32
    %c0_i32_1 = arith.constant 0 : i32
    return %c0_i32, %c0_i32_0 : i32, i32
  }
  func.func @transform_9(%arg0: i32) -> (i32, i32) {
    %c0_i32 = arith.constant 0 : i32
    %c0_i32_0 = arith.constant 0 : i32
    %c0_i32_1 = arith.constant 0 : i32
    return %c0_i32, %c0_i32_0 : i32, i32
  }
  func.func @transform_10(%arg0: i32) -> (i32, i32) {
    %c0_i32 = arith.constant 0 : i32
    %c0_i32_0 = arith.constant 0 : i32
    return %arg0, %c0_i32 : i32, i32
  }
}

</mosaic_0001>

<bundles_post_ra>
// kernel: tpu_custom_call.1
= control target key start
LH: loop header
LB: loop body
LE: loop exit
PB: predicated region body
PF: predicated region fallthrough
CT: control target
= control target key end

     0   :  { %15 = vsyncpa [#allocation3], 0  ;;  %s12750_s0 = inlined_call_operand.vmem [shape: f32[256,32], index: 0, kind: input, shape index: {}]   ;;  %s12751_s1 = inlined_call_operand.vmem [shape: f32[2], index: 1, kind: input, shape index: {}]   ;;  %s12752_s2 = inlined_call_operand.vmem [shape: f32[32,128], index: 2, kind: input, shape index: {}]   ;;  %s12753_s3 = inlined_call_operand.vmem [shape: f32[32,128], index: 3, kind: input, shape index: {}]   ;;  %s12754_s4 = inlined_call_operand.vmem [shape: f32[32,32], index: 4, kind: input, shape index: {}]   ;;  %s12755_s5 = inlined_call_operand.vmem [shape: f32[1,128], index: 5, kind: input, shape index: {}]   ;;  %s12756_s6 = inlined_call_operand.vmem [shape: f32[128,16], index: 6, kind: input, shape index: {}]   ;;  %s12757_s7 = inlined_call_operand.vmem [shape: f32[128,16], index: 7, kind: input, shape index: {}]   ;;  %s12758_s8 = inlined_call_operand.vmem [shape: f32[128,128], index: 8, kind: input, shape index: {}]   ;;  %s12759_s9 = inlined_call_operand.vmem [shape: f32[1,16], index: 9, kind: input, shape index: {}]   ;;  %s12760_s10 = inlined_call_operand.vmem [shape: f32[256,16], index: 10, kind: output, shape index: {}]  }
   0x1   :  { %s24_s15 = sshll.u32 %s12751_s1, 4  ;;  %s25_s15 = int_to_ptr.vmem [resolvable:$true] %s24_s15 }
   0x2   :  { %s9929_s16 = scalar_lea.vmem %s25_s15, 16  ;;  %p9934_p1 = scmp.lt.s32.totalorder %s25_s15, %s25_s15 }
   0x3   :  { %p9930_p0 = scmp.ne.s32.totalorder %s25_s15, %s9929_s16  ;;  %p9935_p2 = scmp.lt.s32.totalorder %s9929_s16, %s9929_s16 }
   0x5   :  { %p9936_p3 = por %p9935_p2, %p9934_p1 }
   0x7   :  { %p9937_p4 = pnand %p9936_p3, %p9930_p0 }
   0x9   :  { %9940 = shalt.err (!%p9937_p4)
}
   0xa   :  { %s9943_s17 = smov [#allocation2]  }
   0xb   :  { %27 = dma.vmem_to_smem %s25_s15, 16, %s9943_s17, [#allocation3]  }
   0xc   :  { %9941 = dma.done.wait [#allocation3], 16  }
   0xd   :  { %9942 = vsyncadd [#allocation3], 4294967280 }
   0xe   :  { %47 = sfence }
   0xf   :  { %v80_v0 = vld [vmem:[%s12752_s2] sm:$0xff]  ;;  %v81_v1 = vld [vmem:[%s12752_s2 + $0x8] sm:$0xff]  ;;  %vm102_vm0 = vcmask 261120   ;;  %v82_v5 = vld [vmem:[%s12752_s2 + $0x10] sm:$0xff]  ;;  %s10923_s1 = sld [smem:[#allocation2]]  ;;  %vm6563_vm1 = vcmask 130048  }
  0x10   :  { %v84_v2 = vld [vmem:[%s12753_s3] sm:$0xff]  ;;  %v85_v3 = vld [vmem:[%s12753_s3 + $0x8] sm:$0xff]  ;;  %v83_v6 = vld [vmem:[%s12752_s2 + $0x18] sm:$0xff] }
  0x11   :  { %v10014_v4 = vsub.f32 %v80_v0, %v84_v2  ;;  %v10022_v7 = vsub.f32 %v81_v1, %v85_v3  ;;  %v86_v8 = vld [vmem:[%s12753_s3 + $0x10] sm:$0xff]  ;;  %v87_v9 = vld [vmem:[%s12753_s3 + $0x18] sm:$0xff]  ;;  %v88_v10 = vld [vmem:[%s12754_s4] sm:$0xff] }
  0x12   :  { %v10034_v12 = vsub.f32 %v82_v5, %v86_v8  ;;  %v10036_v13 = vsub.f32 %v83_v6, %v87_v9  ;;  %v104_v14 = vsel %vm102_vm0, %v88_v10, 0  ;;  %v89_v15 = vld [vmem:[%s12754_s4 + $0x8] sm:$0xff]  ;;  %v90_v16 = vld [vmem:[%s12754_s4 + $0x10] sm:$0xff]  ;;  %v91_v17 = vld [vmem:[%s12754_s4 + $0x18] sm:$0xff] }
  0x13   :  { %13048 = vst [vmem:[#allocation5_spill] sm:$0xff] %v10014_v4  ;;  %13049 = vst [vmem:[#allocation6_spill] sm:$0xff] %v10022_v7  ;;  %v98_v11 = vand.u32 2147483647, %v10014_v4  ;;  %v99_v18 = vand.u32 2147483647, %v10022_v7 }
  0x14   :  { %13050 = vst [vmem:[#allocation7_spill] sm:$0xff] %v10034_v12  ;;  %13051 = vst [vmem:[#allocation8_spill] sm:$0xff] %v10036_v13  ;;  %v10049_v19 = vand.u32 4294901760, %v104_v14  ;;  %v107_v20 = vsel %vm102_vm0, %v89_v15, 0  ;;  %v110_v21 = vsel %vm102_vm0, %v90_v16, 0  ;;  %v113_v29 = vsel %vm102_vm0, %v91_v17, 0 }
  0x15   :  { %v116_v22 = vand.u32 4294901760, %v98_v11  ;;  %v100_v23 = vand.u32 2147483647, %v10034_v12  ;;  %v101_v24 = vand.u32 2147483647, %v10036_v13  ;;  %v10055_v25 = vand.u32 4294901760, %v107_v20 }
  0x16   :  { %v119_v26 = vand.u32 4294901760, %v99_v18  ;;  %v10058_v27 = vsub.f32 %v104_v14, %v10049_v19  ;;  %v10060_v28 = vand.u32 4294901760, %v110_v21  ;;  %v10078_v41 = vand.u32 4294901760, %v113_v29  ;;  %v2792_v9 = vld [vmem:[%s12756_s6] sm:$0xff]  ;;  %v2793_v10 = vld [vmem:[%s12756_s6 + $0x8] sm:$0xff]  ;;  %s776_s22 = ssub.f32 1.0, %s10923_s1 }
  0x17   :  { %v122_v30 = vand.u32 4294901760, %v100_v23  ;;  %v125_v31 = vand.u32 4294901760, %v101_v24  ;;  %v10064_v32 = vsub.f32 %v107_v20, %v10055_v25  ;;  %v10066_v33 = vsub.f32 %v98_v11, %v116_v22  ;;  %v2808_v11 = vld [vmem:[%s12757_s7] sm:$0xff]  ;;  %v2809_v14 = vld [vmem:[%s12757_s7 + $0x8] sm:$0xff]  ;;  %s753_s23 = ssub.f32 0.0, %s10923_s1 }
  0x18   :  { %v10068_v34 = vpack.c.bf16 %v119_v26, %v116_v22  ;;  %v186_v35 = vand.u32 4294901760, %v10058_v27  ;;  %v233_v36 = vsub.f32 %v99_v18, %v119_v26  ;;  %v10072_v37 = vsub.f32 %v110_v21, %v10060_v28  ;;  %v2794_v18 = vld [vmem:[%s12756_s6 + $0x10] sm:$0xff]  ;;  %v2824_v20 = vld [vmem:[%s12758_s8] sm:$0xff]  ;;  %v2795_v21 = vld [vmem:[%s12756_s6 + $0x18] sm:$0xff]  ;;  %s777_s24 = ssub.f32 0.0, %s776_s22 }
  0x19   :  { %v10074_v38 = vpack.c.bf16 %v125_v31, %v122_v30  ;;  %v196_v39 = vand.u32 4294901760, %v10064_v32  ;;  %v227_v40 = vand.u32 4294901760, %v10066_v33  ;;  %v240_v45 = vsub.f32 %v100_v23, %v122_v30  ;;  %v2810_v22 = vld [vmem:[%s12757_s7 + $0x10] sm:$0xff]  ;;  %v2811_v23 = vld [vmem:[%s12757_s7 + $0x18] sm:$0xff]  ;;  %v2797_v26 = vld [vmem:[%s12756_s6 + $0x28] sm:$0xff] }
  0x1a   :  { %8625 = vmatprep.subr.bf16.mxu0 %v10068_v34  ;;  %v187_v42 = vsub.f32 %v10058_v27, %v186_v35  ;;  %v234_v43 = vand.u32 4294901760, %v233_v36  ;;  %v206_v44 = vand.u32 4294901760, %v10072_v37  ;;  %v10091_v48 = vsub.f32 %v113_v29, %v10078_v41 }
  0x1b   :  { %8627 = vmatpush3.bf16.msra.mxu0 %v10068_v34  ;;  %v197_v46 = vsub.f32 %v10064_v32, %v196_v39  ;;  %v228_v47 = vsub.f32 %v10066_v33, %v227_v40  ;;  %v247_v49 = vsub.f32 %v101_v24, %v125_v31  ;;  %v241_v53 = vand.u32 4294901760, %v240_v45  ;;  %v2796_v24 = vld [vmem:[%s12756_s6 + $0x20] sm:$0xff] }
  0x1c   :  { %8629 = vmatprep.subr.bf16.mxu0 %v10074_v38  ;;  %v188_v50 = vand.u32 4294901760, %v187_v42  ;;  %v235_v51 = vsub.f32 %v233_v36, %v234_v43  ;;  %v207_v52 = vsub.f32 %v10072_v37, %v206_v44  ;;  %v216_v55 = vand.u32 4294901760, %v10091_v48  ;;  %v2814_v42 = vld [vmem:[%s12757_s7 + $0x30] sm:$0xff] }
  0x1d   :  { %v229_v54 = vand.u32 4294901760, %v228_v47  ;;  %v248_v56 = vand.u32 4294901760, %v247_v49  ;;  %v198_v57 = vand.u32 4294901760, %v197_v46  ;;  %v242_v59 = vsub.f32 %v240_v45, %v241_v53 }
  0x1e   :  { %7396 = vmatprep.mubr.f32.mxu0 %v188_v50  ;;  %v236_v58 = vand.u32 4294901760, %v235_v51  ;;  %v208_v60 = vand.u32 4294901760, %v207_v52  ;;  %v217_v61 = vsub.f32 %v10091_v48, %v216_v55  ;;  %v8640_v5 = vpack.c.bf16 %v233_v36, %v10066_v33  ;;  %v2812_v33 = vld [vmem:[%s12757_s7 + $0x20] sm:$0xff]  ;;  %v2798_v36 = vld [vmem:[%s12756_s6 + $0x30] sm:$0xff] }
  0x1f   :  { %8631 = vmatpush3.bf16.msra.mxu0 %v10074_v38  ;;  %v249_v62 = vsub.f32 %v247_v49, %v248_v56  ;;  %v243_v0 = vand.u32 4294901760, %v242_v59  ;;  %v8644_v6 = vpack.c.bf16 %v247_v49, %v240_v45  ;;  %v8656_v8 = vpack.c.bf16 %v234_v43, %v227_v40  ;;  %v2799_v40 = vld [vmem:[%s12756_s6 + $0x38] sm:$0xff]  ;;  %v2817_v59 = vld [vmem:[%s12757_s7 + $0x48] sm:$0xff] }
  0x20   :  { %v8632_v63 = vpack.c.bf16 %v236_v58, %v229_v54  ;;  %v218_v2 = vand.u32 4294901760, %v217_v61  ;;  %v8660_v15 = vpack.c.bf16 %v248_v56, %v241_v53  ;;  %v10129_v16 = vsub.f32 %v2792_v9, %v2808_v11  ;;  %v2815_v43 = vld [vmem:[%s12757_s7 + $0x38] sm:$0xff]  ;;  %v2800_v56 = vld [vmem:[%s12756_s6 + $0x40] sm:$0xff]  ;;  %v2801_v58 = vld [vmem:[%s12756_s6 + $0x48] sm:$0xff] }
  0x21   :  { %v250_v1 = vand.u32 4294901760, %v249_v62  ;;  %v10131_v17 = vsub.f32 %v2793_v10, %v2809_v14  ;;  %v10162_v31 = vsub.f32 %v2794_v18, %v2810_v22  ;;  %v10209_v50 = vsub.f32 %v2798_v36, %v2814_v42  ;;  %v2825_v14 = vld [vmem:[%s12758_s8 + $0x8] sm:$0xff]  ;;  %v2823_v42 = vld [vmem:[%s12757_s7 + $0x78] sm:$0xff] }
  0x22   :  { %7397 = vmatmul.mubr.f32.vlgmr.msra.gmra.mrb[0].mxu0 %v198_v57  ;;  %8633 = vmatprep.subr.bf16.mxu0 %v8632_v63  ;;  %13052 = vst [vmem:[#allocation9_spill] sm:$0xff] %v10129_v16  ;;  %v2858_v29 = vand.u32 2147483647, %v10129_v16  ;;  %v10211_v51 = vsub.f32 %v2799_v40, %v2815_v43  ;;  %v2816_v57 = vld [vmem:[%s12757_s7 + $0x40] sm:$0xff]  ;;  %v2805_v22 = vld [vmem:[%s12756_s6 + $0x68] sm:$0xff]  ;;  %v2807_v40 = vld [vmem:[%s12756_s6 + $0x78] sm:$0xff] }
  0x23   :  { %8635 = vmatpush3.bf16.msra.mxu0 %v8632_v63  ;;  %7399 = vmatprep.mubr.f32.mxu0 %v208_v60  ;;  %v8636_v3 = vpack.c.bf16 %v250_v1, %v243_v0  ;;  %13053 = vst [vmem:[#allocation10_spill] sm:$0xff] %v10131_v17  ;;  %v2859_v30 = vand.u32 2147483647, %v10131_v17  ;;  %13054 = vst [vmem:[#allocation11_spill] sm:$0xff] %v10162_v31  ;;  %v2860_v47 = vand.u32 2147483647, %v10162_v31 }
  0x24   :  { %v10197_v45 = vand.u32 4294901760, %v2858_v29  ;;  %13058 = vst [vmem:[#allocation15_spill] sm:$0xff] %v10209_v50  ;;  %13059 = vst [vmem:[#allocation16_spill] sm:$0xff] %v10211_v51  ;;  %v12767_v60 = vand.u32 2147483647, %v10209_v50  ;;  %v10245_v62 = vsub.f32 %v2800_v56, %v2816_v57  ;;  %v10263_v1 = vsub.f32 %v2801_v58, %v2817_v59  ;;  %v2826_v43 = vld [vmem:[%s12758_s8 + $0x10] sm:$0xff] }
  0x25   :  { %8637 = vmatprep.subr.bf16.mxu0 %v8636_v3  ;;  %v10201_v46 = vand.u32 4294901760, %v2859_v30  ;;  %v10221_v54 = vand.u32 4294901760, %v2860_v47  ;;  %v12766_v61 = vand.u32 2147483647, %v10211_v51 }
  0x26   :  { %7400 = vmatmul.mubr.f32.gmra.mrb[2].mxu0 %v218_v2  ;;  %13060 = vst [vmem:[#allocation17_spill] sm:$0xff] %v10245_v62  ;;  %13062 = vst [vmem:[#allocation19_spill] sm:$0xff] %v10263_v1  ;;  %v2802_v2 = vld [vmem:[%s12756_s6 + $0x50] sm:$0xff]  ;;  %v12765_v10 = vand.u32 2147483647, %v10245_v62 }
  0x27   :  { %8639 = vmatpush3.bf16.msra.mxu0 %v8636_v3  ;;  %7410 = vmatprep.mubr.f32.mxu0 %v10049_v19  ;;  %v10217_v53 = vpack.c.bf16 %v10201_v46, %v10197_v45  ;;  %v2803_v3 = vld [vmem:[%s12756_s6 + $0x58] sm:$0xff]  ;;  %v10286_v9 = vand.u32 4294901760, %v12766_v61 }
  0x28   :  { %8641 = vmatprep.subr.bf16.mxu0 %v8640_v5  ;;  %v10330_v36 = vand.u32 4294901760, %v12765_v10  ;;  %v2829_v10 = vld [vmem:[%s12758_s8 + $0x28] sm:$0xff] }
  0x2a   :  { %7411 = vmatmul.mubr.f32.vlgmr.msra.gmra.mrb[0].mxu0 %v10055_v25 }
  0x2b   :  { %8643 = vmatpush3.bf16.msra.mxu0 %v8640_v5  ;;  %7413 = vmatprep.mubr.f32.mxu0 %v10060_v28  ;;  %v2818_v5 = vld [vmem:[%s12757_s7 + $0x50] sm:$0xff] }
  0x2c   :  { %8645 = vmatprep.subr.bf16.mxu0 %v8644_v6 }
  0x2e   :  { %7414 = vmatmul.mubr.f32.gmra.mrb[2].mxu0 %v10078_v41 }
  0x2f   :  { %8647 = vmatpush3.bf16.msra.mxu0 %v8644_v6  ;;  %7424 = vmatprep.mubr.f32.mxu0 %v10058_v27  ;;  %v10158_v27 = vand.u32 4294901760, %v2824_v20  ;;  %v2819_v6 = vld [vmem:[%s12757_s7 + $0x58] sm:$0xff] }
  0x30   :  { %8649 = vmatprep.subr.bf16.mxu0 %v10068_v34  ;;  %v10300_v18 = vsub.f32 %v2803_v3, %v2819_v6  ;;  %v10360_v3 = vsub.f32 %v2858_v29, %v10197_v45  ;;  %v10367_v6 = vsub.f32 %v2807_v40, %v2823_v42  ;;  %v10377_v29 = vand.u32 4294901760, %v2826_v43 }
  0x32   :  { %7425 = vmatmul.mubr.f32.vlgmr.msra.gmra.mrb[0].mxu0 %v10064_v32  ;;  %v10164_v32 = vsub.f32 %v2795_v21, %v2811_v23  ;;  %13065 = vst [vmem:[#allocation22_spill] sm:$0xff] %v10300_v18  ;;  %v2820_v21 = vld [vmem:[%s12757_s7 + $0x60] sm:$0xff]  ;;  %v2821_v23 = vld [vmem:[%s12757_s7 + $0x68] sm:$0xff]  ;;  %v12763_v58 = vand.u32 2147483647, %v10300_v18  ;;  %13070 = vst [vmem:[#allocation27_spill] sm:$0xff] %v10367_v6 }
  0x33   :  { %8651 = vmatpush3.bf16.msra.mxu0 %v10068_v34  ;;  %7427 = vmatprep.mubr.f32.mxu0 %v10072_v37  ;;  %v10178_v37 = vsub.f32 %v2796_v24, %v2812_v33  ;;  %v2806_v24 = vld [vmem:[%s12756_s6 + $0x70] sm:$0xff]  ;;  %v10321_v33 = vand.u32 4294901760, %v2825_v14  ;;  %v10350_v59 = vsub.f32 %v2805_v22, %v2821_v23  ;;  %v12774_v42 = vand.u32 2147483647, %v10367_v6 }
  0x34   :  { %8653 = vmatprep.subr.bf16.mxu0 %v10074_v38  ;;  %13055 = vst [vmem:[#allocation12_spill] sm:$0xff] %v10164_v32 }
  0x35   :  { %13056 = vst [vmem:[#allocation13_spill] sm:$0xff] %v10178_v37  ;;  %v2862_v49 = vand.u32 2147483647, %v10178_v37  ;;  %13068 = vst [vmem:[#allocation25_spill] sm:$0xff] %v10350_v59  ;;  %v12769_v22 = vand.u32 2147483647, %v10350_v59 }
  0x36   :  { %7428 = vmatmul.mubr.f32.gmra.mrb[2].mxu0 %v10091_v48  ;;  %v2861_v48 = vand.u32 2147483647, %v10164_v32 }
  0x37   :  { %8655 = vmatpush3.bf16.msra.mxu0 %v10074_v38  ;;  %7438 = vmatprep.mubr.f32.mxu0 %v186_v35  ;;  %v2813_v35 = vld [vmem:[%s12757_s7 + $0x28] sm:$0xff] }
  0x38   :  { %8657 = vmatprep.subr.bf16.mxu0 %v8656_v8 }
  0x3a   :  { %7439 = vmatmul.mubr.f32.vlgmr.msra.gmra.mrb[0].mxu0 %v196_v39  ;;  %v10180_v39 = vsub.f32 %v2797_v26, %v2813_v35  ;;  %v2822_v26 = vld [vmem:[%s12757_s7 + $0x70] sm:$0xff] }
  0x3b   :  { %8659 = vmatpush3.bf16.msra.mxu0 %v8656_v8  ;;  %7441 = vmatprep.mubr.f32.mxu0 %v206_v44  ;;  %v10192_v44 = vsub.f32 %v2824_v20, %v10158_v27  ;;  %v10282_v8 = vand.u32 4294901760, %v12767_v60  ;;  %v2804_v20 = vld [vmem:[%s12756_s6 + $0x60] sm:$0xff] }
  0x3c   :  { %8661 = vmatprep.subr.bf16.mxu0 %v8660_v15  ;;  %13057 = vst [vmem:[#allocation14_spill] sm:$0xff] %v10180_v39  ;;  %v13076_v32 = vand.u32 2147483647, %v10180_v39 }
  0x3d   :  { %v12761_v52 = vand.u32 4294901760, %v10192_v44  ;;  %v10326_v35 = vpack.c.bf16 %v10286_v9, %v10282_v8 }
  0x3e   :  { %7442 = vmatmul.mubr.f32.gmra.mrb[2].mxu0 %v216_v55  ;;  %v12772_v55 = vand.u32 2147483647, %v10180_v39  ;;  %v13079_v39 = vand.u32 2147483647, %v10211_v51 }
  0x3f   :  { %8663 = vmatpush3.bf16.msra.mxu0 %v8660_v15  ;;  %7452 = vmatprep.mubr.f32.mxu0 %v10049_v19  ;;  %v2958_v63 = vsub.f32 %v10192_v44, %v12761_v52  ;;  %v10298_v15 = vsub.f32 %v2802_v2, %v2818_v5  ;;  %13066 = vst [vmem:[#allocation23_spill] sm:$0xff] %v10326_v35 }
  0x40   :  { %8665 = vmatprep.subr.bf16.mxu0 %v10068_v34  ;;  %v10355_v2 = vsub.f32 %v2806_v24, %v2822_v26  ;;  %v10365_v5 = vsub.f32 %v2859_v30, %v10201_v46  ;;  %v12771_v24 = vand.u32 4294901760, %v10360_v3  ;;  %v10496_v17 = vsub.f32 %v13079_v39, %v10286_v9 }
  0x41   :  { %v2959_v11 = vand.u32 4294901760, %v2958_v63  ;;  %13064 = vst [vmem:[#allocation21_spill] sm:$0xff] %v10298_v15  ;;  %v12762_v57 = vand.u32 2147483647, %v10298_v15  ;;  %v2827_v63 = vld [vmem:[%s12758_s8 + $0x18] sm:$0xff] }
  0x42   :  { %7453 = vmatmul.mubr.f32.vlgmr.msra.gmra.mrb[0].mxu0 %v10055_v25  ;;  %13069 = vst [vmem:[#allocation26_spill] sm:$0xff] %v10355_v2  ;;  %v10379_v45 = vand.u32 4294901760, %v2827_v63  ;;  %v12770_v23 = vand.u32 2147483647, %v10355_v2  ;;  %v12773_v26 = vand.u32 4294901760, %v10365_v5  ;;  %v3119_v60 = vsub.f32 %v10360_v3, %v12771_v24 }
  0x43   :  { %8667 = vmatpush3.bf16.msra.mxu0 %v10068_v34  ;;  %7455 = vmatprep.mubr.f32.mxu0 %v10060_v28  ;;  %v10225_v34 = vand.u32 4294901760, %v2861_v48  ;;  %v10388_v46 = vand.u32 4294901760, %v12762_v57  ;;  %v10405_v57 = vsub.f32 %v2860_v47, %v10221_v54 }
  0x44   :  { %8669 = vmatprep.subr.bf16.mxu0 %v10074_v38 }
  0x45   :  { %v10253_v0 = vpack.c.bf16 %v10225_v34, %v10221_v54  ;;  %v10428_v54 = vand.u32 4294901760, %v12769_v22 }
  0x46   :  { %7456 = vmatmul.mubr.f32.gmra.mrb[2].mxu0 %v10078_v41 }
  0x47   :  { %8671 = vmatpush3.bf16.msra.mxu0 %v10074_v38  ;;  %7466 = vmatprep.mubr.f32.mxu0 %v10049_v19  ;;  %13061 = vst [vmem:[#allocation18_spill] sm:$0xff] %v10253_v0  ;;  %v10257_v38 = vand.u32 4294901760, %v2862_v49  ;;  %v10261_v19 = vand.u32 4294901760, %v12772_v55  ;;  %v10461_v55 = vand.u32 4294901760, %v2829_v10 }
  0x48   :  { %8721 = vmatprep.subr.bf16.mxu0 %v10217_v53 }
  0x4a   :  { %7467 = vmatmul.mubr.f32.vlgmr.msra.gmra.mrb[0].mxu0 %v10055_v25  ;;  %v10295_v25 = vpack.c.bf16 %v10261_v19, %v10257_v38 }
  0x4b   :  { %7469 = vmatprep.mubr.f32.mxu0 %v10060_v28  ;;  %8723 = vmatpush3.bf16.msra.mxu0 %v10217_v53  ;;  %v12764_v28 = vand.u32 2147483647, %v10263_v1 }
  0x4c   :  { %8725 = vmatprep.subr.bf16.mxu0 %v10253_v0  ;;  %13063 = vst [vmem:[#allocation20_spill] sm:$0xff] %v10295_v25 }
  0x4d   :  { %v10346_v56 = vand.u32 4294901760, %v12764_v28  ;;  %v10412_v28 = vsub.f32 %v2827_v63, %v10379_v45  ;;  %v10437_v63 = vand.u32 4294901760, %v12770_v23 }
  0x4e   :  { %7470 = vmatmul.mubr.f32.gmra.mrb[2].mxu0 %v10078_v41  ;;  %v10332_v41 = vsub.f32 %v2804_v20, %v2820_v21  ;;  %v2828_v20 = vld [vmem:[%s12758_s8 + $0x20] sm:$0xff] }
  0x4f   :  { %8727 = vmatpush3.bf16.msra.mxu0 %v10253_v0  ;;  %7840 = vmatprep.mubr.f32.mxu0 %v2959_v11  ;;  %v10370_v11 = vsub.f32 %v2825_v14, %v10321_v33  ;;  %v10384_v30 = vpack.c.bf16 %v10346_v56, %v10330_v36  ;;  %v10392_v14 = vand.u32 4294901760, %v12763_v58  ;;  %v10398_v40 = vand.u32 4294901760, %v2828_v20  ;;  %13073 = vst [vmem:[#allocation30_spill] sm:$0xff] %v10412_v28 }
  0x50   :  { %13067 = vst [vmem:[#allocation24_spill] sm:$0xff] %v10332_v41  ;;  %8729 = vmatprep.subr.bf16.mxu0 %v10295_v25  ;;  %v12768_v21 = vand.u32 2147483647, %v10332_v41  ;;  %v10409_v58 = vsub.f32 %v2826_v43, %v10377_v29  ;;  %v10433_v43 = vsub.f32 %v2861_v48, %v10225_v34  ;;  %v2830_v48 = vld [vmem:[%s12758_s8 + $0x30] sm:$0xff]  ;;  %v10453_v34 = vand.u32 4294901760, %v12774_v42 }
  0x51   :  { %13071 = vst [vmem:[#allocation28_spill] sm:$0xff] %v10384_v30  ;;  %v12776_v52 = vand.u32 4294901760, %v10370_v11  ;;  %v10420_v61 = vpack.c.bf16 %v10392_v14, %v10388_v46  ;;  %v10446_v22 = vsub.f32 %v2828_v20, %v10398_v40  ;;  %v10469_v42 = vsub.f32 %v2862_v49, %v10257_v38 }
  0x52   :  { %13072 = vst [vmem:[#allocation29_spill] sm:$0xff] %v10409_v58  ;;  %v10424_v47 = vand.u32 4294901760, %v12768_v21  ;;  %v3126_v21 = vsub.f32 %v10365_v5, %v12773_v26  ;;  %v10482_v31 = vand.u32 4294901760, %v2830_v48  ;;  %v13078_v26 = vand.u32 2147483647, %v10209_v50 }
  0x53   :  { %8731 = vmatpush3.bf16.msra.mxu0 %v10295_v25  ;;  %13074 = vst [vmem:[#allocation31_spill] sm:$0xff] %v10420_v61  ;;  %13075 = vst [vmem:[#allocation32_spill] sm:$0xff] %v10446_v22  ;;  %v10458_v23 = vsub.f32 %v10370_v11, %v12776_v52  ;;  %v10474_v52 = vsub.f32 %v13076_v32, %v10261_v19  ;;  %v3120_v38 = vand.u32 4294901760, %v3119_v60  ;;  %v2831_v19 = vld [vmem:[%s12758_s8 + $0x38] sm:$0xff]  ;;  %v13081_v60 = vand.u32 4294901760, %v10405_v57  ;;  %v2832_v32 = vld [vmem:[%s12758_s8 + $0x40] sm:$0xff] }
  0x54   :  { %8733 = vmatprep.subr.bf16.mxu0 %v10326_v35  ;;  %v10479_v24 = vpack.c.bf16 %v10428_v54, %v10424_v47  ;;  %v10487_v49 = vsub.f32 %v13078_v26, %v10282_v8  ;;  %v3127_v37 = vand.u32 4294901760, %v3126_v21  ;;  %v10500_v20 = vpack.c.bf16 %v10453_v34, %v10437_v63 }
  0x55   :  { %v2969_v8 = vand.u32 4294901760, %v10458_v23  ;;  %v3133_v21 = vsub.f32 %v10405_v57, %v13081_v60  ;;  %v10507_v26 = vsub.f32 %v2829_v10, %v10461_v55  ;;  %v13083_v39 = vand.u32 4294901760, %v10409_v58 }
  0x56   :  { %13077 = vst [vmem:[#allocation33_spill] sm:$0xff] %v10479_v24  ;;  %13080 = vst [vmem:[#allocation34_spill] sm:$0xff] %v10500_v20  ;;  %v13084_v51 = vand.u32 4294901760, %v10412_v28  ;;  %v13085_v50 = vand.u32 4294901760, %v10433_v43  ;;  %v10528_v12 = vsub.f32 %v2830_v48, %v10482_v31  ;;  %v10530_v13 = vand.u32 4294901760, %v2831_v19  ;;  %v2833_v48 = vld [vmem:[%s12758_s8 + $0x48] sm:$0xff] }
  0x57   :  { %8735 = vmatpush3.bf16.msra.mxu0 %v10326_v35  ;;  %13082 = vst [vmem:[#allocation35_spill] sm:$0xff] %v10507_v26  ;;  %v2978_v9 = vsub.f32 %v10409_v58, %v13083_v39  ;;  %v8752_v4 = vpack.c.bf16 %v3127_v37, %v3120_v38  ;;  %v10539_v7 = vand.u32 4294901760, %v2832_v32  ;;  %v13088_v39 = vand.u32 2147483647, %v10245_v62 }
  0x58   :  { %8737 = vmatprep.subr.bf16.mxu0 %v10384_v30  ;;  %v10519_v23 = vsub.f32 %v10412_v28, %v13084_v51  ;;  %v3140_v16 = vsub.f32 %v10433_v43, %v13085_v50  ;;  %13086 = vst [vmem:[#allocation36_spill] sm:$0xff] %v10528_v12  ;;  %v13087_v51 = vand.u32 4294901760, %v10446_v22  ;;  %v13089_v38 = vand.u32 2147483647, %v10263_v1 }
  0x59   :  { %v10548_v37 = vsub.f32 %v13088_v39, %v10330_v36  ;;  %v2979_v10 = vand.u32 4294901760, %v2978_v9  ;;  %v13090_v50 = vand.u32 4294901760, %v10469_v42  ;;  %v13091_v35 = vand.u32 4294901760, %v10474_v52  ;;  %v2834_v36 = vld [vmem:[%s12758_s8 + $0x50] sm:$0xff] }
  0x5a   :  { %v10536_v60 = vsub.f32 %v10446_v22, %v13087_v51  ;;  %v10553_v51 = vsub.f32 %v13089_v38, %v10346_v56  ;;  %v3141_v56 = vand.u32 4294901760, %v3140_v16  ;;  %v10569_v9 = vsub.f32 %v2831_v19, %v10530_v13 }
  0x5b   :  { %8739 = vmatpush3.bf16.msra.mxu0 %v10384_v30  ;;  %v3147_v30 = vsub.f32 %v10469_v42, %v13090_v50  ;;  %v3154_v62 = vsub.f32 %v10474_v52, %v13091_v35  ;;  %v13094_v35 = vand.u32 4294901760, %v10496_v17  ;;  %v10581_v25 = vand.u32 4294901760, %v2833_v48 }
  0x5c   :  { %8741 = vmatprep.subr.bf16.mxu0 %v10420_v61  ;;  %13092 = vst [vmem:[#allocation37_spill] sm:$0xff] %v10569_v9  ;;  %v2999_v38 = vand.u32 4294901760, %v10536_v60  ;;  %v13096_v16 = vand.u32 4294901760, %v10507_v26  ;;  %v10590_v22 = vand.u32 4294901760, %v2834_v36  ;;  %v2835_v60 = vld [vmem:[%s12758_s8 + $0x58] sm:$0xff] }
  0x5d   :  { %v3168_v1 = vsub.f32 %v10496_v17, %v13094_v35  ;;  %v3155_v35 = vand.u32 4294901760, %v3154_v62  ;;  %v13097_v28 = vand.u32 2147483647, %v10298_v15  ;;  %v2836_v62 = vld [vmem:[%s12758_s8 + $0x60] sm:$0xff]  ;;  %v10615_v15 = vsub.f32 %v2833_v48, %v10581_v25 }
  0x5e   :  { %v10586_v19 = vsub.f32 %v10507_v26, %v13096_v16  ;;  %v13098_v16 = vand.u32 2147483647, %v10300_v18  ;;  %v13099_v26 = vand.u32 4294901760, %v10528_v12 }
  0x5f   :  { %8743 = vmatpush3.bf16.msra.mxu0 %v10420_v61  ;;  %v3134_v61 = vand.u32 4294901760, %v3133_v21  ;;  %v2989_v21 = vand.u32 4294901760, %v10519_v23  ;;  %v13093_v23 = vand.u32 4294901760, %v10487_v49  ;;  %v10599_v0 = vsub.f32 %v13097_v28, %v10388_v46 }
  0x60   :  { %8745 = vmatprep.subr.bf16.mxu0 %v10479_v24  ;;  %v10604_v39 = vsub.f32 %v13098_v16, %v10392_v14  ;;  %v3018_v58 = vsub.f32 %v10528_v12, %v13099_v26  ;;  %v3169_v28 = vand.u32 4294901760, %v3168_v1  ;;  %v10617_v14 = vand.u32 4294901760, %v2835_v60 }
  0x61   :  { %v3161_v50 = vsub.f32 %v10487_v49, %v13093_v23  ;;  %v8756_v23 = vpack.c.bf16 %v3141_v56, %v3134_v61  ;;  %v3009_v61 = vand.u32 4294901760, %v10586_v19  ;;  %v13100_v26 = vand.u32 4294901760, %v10548_v37  ;;  %v2837_v19 = vld [vmem:[%s12758_s8 + $0x68] sm:$0xff] }
  0x62   :  { %v10627_v1 = vsub.f32 %v2834_v36, %v10590_v22 }
  0x63   :  { %8747 = vmatpush3.bf16.msra.mxu0 %v10479_v24  ;;  %v10579_v24 = vsub.f32 %v2832_v32, %v10539_v7  ;;  %v3148_v32 = vand.u32 4294901760, %v3147_v30  ;;  %v3162_v30 = vand.u32 4294901760, %v3161_v50  ;;  %v3175_v56 = vsub.f32 %v10548_v37, %v13100_v26 }
  0x64   :  { %8749 = vmatprep.subr.bf16.mxu0 %v10500_v20  ;;  %v13101_v50 = vand.u32 4294901760, %v10553_v51  ;;  %v3019_v26 = vand.u32 4294901760, %v3018_v58  ;;  %v13111_v12 = vand.u32 4294901760, %v10627_v1 }
  0x65   :  { %13095 = vst [vmem:[#allocation38_spill] sm:$0xff] %v10579_v24  ;;  %v8760_v48 = vpack.c.bf16 %v3155_v35, %v3148_v32  ;;  %v13104_v32 = vand.u32 2147483647, %v10350_v59  ;;  %v8764_v46 = vpack.c.bf16 %v3169_v28, %v3162_v30  ;;  %v13105_v58 = vand.u32 4294901760, %v10579_v24 }
  0x66   :  { %v3182_v16 = vsub.f32 %v10553_v51, %v13101_v50  ;;  %v13102_v50 = vand.u32 4294901760, %v10569_v9  ;;  %v13106_v30 = vand.u32 4294901760, %v10599_v0 }
  0x67   :  { %8751 = vmatpush3.bf16.msra.mxu0 %v10500_v20  ;;  %v10631_v20 = vand.u32 4294901760, %v2836_v62  ;;  %v10647_v35 = vsub.f32 %v13104_v32, %v10428_v54  ;;  %v3038_v18 = vsub.f32 %v10579_v24, %v13105_v58  ;;  %v10660_v32 = vand.u32 4294901760, %v2837_v19 }
  0x68   :  { %8753 = vmatprep.subr.bf16.mxu0 %v8752_v4  ;;  %v3028_v36 = vsub.f32 %v10569_v9, %v13102_v50  ;;  %v3189_v28 = vsub.f32 %v10599_v0, %v13106_v30  ;;  %v13107_v58 = vand.u32 4294901760, %v10604_v39  ;;  %v13110_v24 = vand.u32 4294901760, %v10615_v15 }
  0x69   :  { %v3039_v59 = vand.u32 4294901760, %v3038_v18 }
  0x6a   :  { %7841 = vmatmul.mubr.f32.vlgmr.msra.gmra.mrb[4].mxu0 %v2969_v8  ;;  %v2838_v8 = vld [vmem:[%s12758_s8 + $0x70] sm:$0xff]  ;;  %v3196_v50 = vsub.f32 %v10604_v39, %v13107_v58  ;;  %v3029_v54 = vand.u32 4294901760, %v3028_v36  ;;  %v3048_v9 = vsub.f32 %v10615_v15, %v13110_v24  ;;  %v3190_v18 = vand.u32 4294901760, %v3189_v28 }
  0x6b   :  { %8755 = vmatpush3.bf16.msra.mxu0 %v8752_v4  ;;  %7843 = vmatprep.mubr.f32.mxu0 %v2979_v10  ;;  %v13103_v4 = vand.u32 2147483647, %v10332_v41  ;;  %v10657_v41 = vsub.f32 %v2835_v60, %v10617_v14  ;;  %v10669_v60 = vsub.f32 %v2836_v62, %v10631_v20  ;;  %v13109_v62 = vand.u32 2147483647, %v10367_v6 }
  0x6c   :  { %8757 = vmatprep.subr.bf16.mxu0 %v8756_v23  ;;  %v13136_v6 = vand.u32 4294901760, %v10433_v43 }
  0x6d   :  { %v10642_v10 = vsub.f32 %v13103_v4, %v10424_v47  ;;  %v3176_v47 = vand.u32 4294901760, %v3175_v56  ;;  %v3183_v4 = vand.u32 4294901760, %v3182_v16  ;;  %v2839_v56 = vld [vmem:[%s12758_s8 + $0x78] sm:$0xff]  ;;  %v13108_v16 = vand.u32 2147483647, %v10355_v2 }
  0x6e   :  { %7844 = vmatmul.mubr.f32.gmra.mrb[6].mxu0 %v2989_v21  ;;  %v10671_v21 = vand.u32 4294901760, %v2838_v8  ;;  %v10686_v58 = vsub.f32 %v13109_v62, %v10453_v34  ;;  %v10698_v2 = vand.u32 4294901760, %v2839_v56  ;;  %v3197_v34 = vand.u32 4294901760, %v3196_v50 }
  0x6f   :  { %8759 = vmatpush3.bf16.msra.mxu0 %v8756_v23  ;;  %7846 = vmatprep.mubr.f32.mxu0 %v2999_v38  ;;  %v10681_v30 = vsub.f32 %v13108_v16, %v10437_v63  ;;  %v12823_v38 = vand.u32 4294901760, %v10657_v41  ;;  %v8768_v23 = vpack.c.bf16 %v3183_v4, %v3176_v47  ;;  %v3058_v63 = vsub.f32 %v10627_v1, %v13111_v12 }
  0x70   :  { %8761 = vmatprep.subr.bf16.mxu0 %v8760_v48  ;;  %v10696_v16 = vsub.f32 %v2837_v19, %v10660_v32  ;;  %13112 = vst [vmem:[#allocation39_spill] sm:$0xff] %v10698_v2  ;;  %v12825_v36 = vand.u32 4294901760, %v10669_v60  ;;  %v10702_v24 = vsub.f32 %v2838_v8, %v10671_v21  ;;  %v13114_v12 = vand.u32 4294901760, %v10647_v35 }
  0x71   :  { %v12824_v4 = vand.u32 4294901760, %v10681_v30  ;;  %v3068_v8 = vsub.f32 %v10657_v41, %v12823_v38  ;;  %v10717_v28 = vsub.f32 %v2839_v56, %v10698_v2  ;;  %v3059_v62 = vand.u32 4294901760, %v3058_v63 }
  0x72   :  { %7847 = vmatmul.mubr.f32.gmra.mrb[8].mxu0 %v3009_v61  ;;  %v13113_v61 = vand.u32 4294901760, %v10642_v10  ;;  %v3210_v19 = vsub.f32 %v10647_v35, %v13114_v12  ;;  %v12828_v50 = vand.u32 4294901760, %v10696_v16  ;;  %v3078_v12 = vsub.f32 %v10669_v60, %v12825_v36 }
  0x73   :  { %8763 = vmatpush3.bf16.msra.mxu0 %v8760_v48  ;;  %7849 = vmatprep.mubr.f32.mxu0 %v3019_v26  ;;  %v3049_v26 = vand.u32 4294901760, %v3048_v9  ;;  %v3217_v38 = vsub.f32 %v10681_v30, %v12824_v4  ;;  %v13115_v56 = vand.u32 4294901760, %v10686_v58 }
  0x74   :  { %8765 = vmatprep.subr.bf16.mxu0 %v8764_v46  ;;  %v3203_v47 = vsub.f32 %v10642_v10, %v13113_v61  ;;  %v8772_v61 = vpack.c.bf16 %v3197_v34, %v3190_v18  ;;  %v3211_v48 = vand.u32 4294901760, %v3210_v19  ;;  %v3088_v63 = vsub.f32 %v10696_v16, %v12828_v50 }
  0x75   :  { %v12826_v18 = vand.u32 4294901760, %v10717_v28  ;;  %v3079_v34 = vand.u32 4294901760, %v3078_v12  ;;  %v3218_v4 = vand.u32 4294901760, %v3217_v38  ;;  %v8784_v38 = vpack.c.bf16 %v10365_v5, %v10360_v3 }
  0x76   :  { %7850 = vmatmul.mubr.f32.gmra.mrb[10].mxu0 %v3029_v54  ;;  %v12827_v54 = vand.u32 4294901760, %v10702_v24  ;;  %v3204_v9 = vand.u32 4294901760, %v3203_v47  ;;  %v8804_v12 = vpack.c.bf16 %v10604_v39, %v10599_v0  ;;  %v13135_v50 = vand.u32 4294901760, %v10405_v57 }
  0x77   :  { %8767 = vmatpush3.bf16.msra.mxu0 %v8764_v46  ;;  %7852 = vmatprep.mubr.f32.mxu0 %v3039_v59  ;;  %v3224_v46 = vsub.f32 %v10686_v58, %v13115_v56  ;;  %v3069_v59 = vand.u32 4294901760, %v3068_v8  ;;  %v3108_v8 = vsub.f32 %v10717_v28, %v12826_v18  ;;  %v13133_v18 = vand.u32 4294901760, %v10370_v11 }
  0x78   :  { %8769 = vmatprep.subr.bf16.mxu0 %v8768_v23  ;;  %v3098_v47 = vsub.f32 %v10702_v24, %v12827_v54  ;;  %v8776_v19 = vpack.c.bf16 %v3211_v48, %v3204_v9  ;;  %v8788_v48 = vpack.c.bf16 %v10433_v43, %v10405_v57  ;;  %v8808_v9 = vpack.c.bf16 %v10647_v35, %v10642_v10 }
  0x79   :  { %v3225_v36 = vand.u32 4294901760, %v3224_v46  ;;  %v8812_v46 = vpack.c.bf16 %v10686_v58, %v10681_v30 }
  0x7a   :  { %7853 = vmatmul.mubr.f32.gmra.mrb[12].mxu0 %v3049_v26  ;;  %v3089_v26 = vand.u32 4294901760, %v3088_v63  ;;  %v3099_v56 = vand.u32 4294901760, %v3098_v47  ;;  %v13117_v63 = vld [vmem:[#allocation18_spill] sm:$0xff]  ;;  %v13119_v47 = vld [vmem:[#allocation32_spill] sm:$0xff] }
  0x7b   :  { %8771 = vmatpush3.bf16.msra.mxu0 %v8768_v23  ;;  %7855 = vmatprep.mubr.f32.mxu0 %v3059_v62  ;;  %v8780_v23 = vpack.c.bf16 %v3225_v36, %v3218_v4  ;;  %v3109_v62 = vand.u32 4294901760, %v3108_v8  ;;  %v8792_v36 = vpack.c.bf16 %v10474_v52, %v10469_v42  ;;  %v8796_v4 = vpack.c.bf16 %v10496_v17, %v10487_v49  ;;  %v13122_v8 = vld [vmem:[#allocation36_spill] sm:$0xff] }
  0x7c   :  { %8773 = vmatprep.subr.bf16.mxu0 %v8772_v61  ;;  %v13142_v57 = vand.u32 4294901760, %v13122_v8 }
  0x7e   :  { %7856 = vmatmul.mubr.f32.gmra.mrb[14].mxu0 %v3069_v59  ;;  %v13116_v59 = vld [vmem:[#allocation29_spill] sm:$0xff] }
  0x7f   :  { %8775 = vmatpush3.bf16.msra.mxu0 %v8772_v61  ;;  %7858 = vmatprep.mubr.f32.mxu0 %v3079_v34  ;;  %v8800_v61 = vpack.c.bf16 %v10553_v51, %v10548_v37  ;;  %v13118_v34 = vld [vmem:[#allocation30_spill] sm:$0xff]  ;;  %v13134_v54 = vand.u32 4294901760, %v13116_v59 }
  0x80   :  { %8777 = vmatprep.subr.bf16.mxu0 %v8776_v19 }
  0x82   :  { %7859 = vmatmul.mubr.f32.gmra.mrb[16].mxu0 %v3089_v26  ;;  %v13121_v26 = vld [vmem:[#allocation35_spill] sm:$0xff] }
  0x83   :  { %8779 = vmatpush3.bf16.msra.mxu0 %v8776_v19  ;;  %7861 = vmatprep.mubr.f32.mxu0 %v3099_v56  ;;  %v13120_v19 = vld [vmem:[#allocation20_spill] sm:$0xff]  ;;  %v13123_v56 = vld [vmem:[#allocation23_spill] sm:$0xff] }
  0x84   :  { %8781 = vmatprep.subr.bf16.mxu0 %v8780_v23 }
  0x86   :  { %7862 = vmatmul.mubr.f32.gmra.mrb[18].mxu0 %v3109_v62  ;;  %v13125_v62 = vld [vmem:[#allocation38_spill] sm:$0xff] }
  0x87   :  { %8783 = vmatpush3.bf16.msra.mxu0 %v8780_v23  ;;  %7896 = vmatprep.mubr.f32.mxu0 %v10158_v27  ;;  %v13124_v23 = vld [vmem:[#allocation37_spill] sm:$0xff] }
  0x88   :  { %8785 = vmatprep.subr.bf16.mxu0 %v8784_v38 }
  0x8a   :  { %7897 = vmatmul.mubr.f32.vlgmr.msra.gmra.mrb[4].mxu0 %v10321_v33 }
  0x8b   :  { %8787 = vmatpush3.bf16.msra.mxu0 %v8784_v38  ;;  %7899 = vmatprep.mubr.f32.mxu0 %v10377_v29  ;;  %v13126_v38 = vld [vmem:[#allocation28_spill] sm:$0xff] }
  0x8c   :  { %8789 = vmatprep.subr.bf16.mxu0 %v8788_v48 }
  0x8e   :  { %7900 = vmatmul.mubr.f32.gmra.mrb[6].mxu0 %v10379_v45 }
  0x8f   :  { %8791 = vmatpush3.bf16.msra.mxu0 %v8788_v48  ;;  %7902 = vmatprep.mubr.f32.mxu0 %v10398_v40  ;;  %v13127_v48 = vld [vmem:[#allocation31_spill] sm:$0xff] }
  0x90   :  { %8793 = vmatprep.subr.bf16.mxu0 %v8792_v36 }
  0x92   :  { %7903 = vmatmul.mubr.f32.gmra.mrb[8].mxu0 %v10461_v55 }
  0x93   :  { %8795 = vmatpush3.bf16.msra.mxu0 %v8792_v36  ;;  %7905 = vmatprep.mubr.f32.mxu0 %v10482_v31  ;;  %v13128_v36 = vld [vmem:[#allocation33_spill] sm:$0xff] }
  0x94   :  { %8797 = vmatprep.subr.bf16.mxu0 %v8796_v4 }
  0x96   :  { %7906 = vmatmul.mubr.f32.gmra.mrb[10].mxu0 %v10530_v13 }
  0x97   :  { %7908 = vmatprep.mubr.f32.mxu0 %v10539_v7  ;;  %8799 = vmatpush3.bf16.msra.mxu0 %v8796_v4  ;;  %v13129_v4 = vld [vmem:[#allocation34_spill] sm:$0xff] }
  0x98   :  { %8801 = vmatprep.subr.bf16.mxu0 %v8800_v61 }
  0x9a   :  { %7909 = vmatmul.mubr.f32.gmra.mrb[12].mxu0 %v10581_v25 }
  0x9b   :  { %7911 = vmatprep.mubr.f32.mxu0 %v10590_v22  ;;  %8803 = vmatpush3.bf16.msra.mxu0 %v8800_v61  ;;  %v13130_v61 = vand.u32 4294901760, %v10192_v44 }
  0x9c   :  { %8805 = vmatprep.subr.bf16.mxu0 %v8804_v12 }
  0x9e   :  { %7912 = vmatmul.mubr.f32.gmra.mrb[14].mxu0 %v10617_v14 }
  0x9f   :  { %7914 = vmatprep.mubr.f32.mxu0 %v10631_v20  ;;  %8807 = vmatpush3.bf16.msra.mxu0 %v8804_v12  ;;  %v13131_v12 = vand.u32 4294901760, %v10360_v3  ;;  %v13138_v3 = vand.u32 4294901760, %v13119_v47 }
  0xa0   :  { %8809 = vmatprep.subr.bf16.mxu0 %v8808_v9 }
  0xa2   :  { %7915 = vmatmul.mubr.f32.gmra.mrb[16].mxu0 %v10660_v32 }
  0xa3   :  { %7917 = vmatprep.mubr.f32.mxu0 %v10671_v21  ;;  %8811 = vmatpush3.bf16.msra.mxu0 %v8808_v9  ;;  %v13132_v9 = vand.u32 4294901760, %v10365_v5  ;;  %v13139_v5 = vand.u32 4294901760, %v10469_v42  ;;  %v13147_v42 = vand.u32 4294901760, %v10548_v37  ;;  %v13154_v37 = vand.u32 4294901760, %v10647_v35 }
  0xa4   :  { %8813 = vmatprep.subr.bf16.mxu0 %v8812_v46 }
  0xa6   :  { %7918 = vmatmul.mubr.f32.gmra.mrb[18].mxu0 %v10698_v2  ;;  %v8852_v2 = vpack.c.bf16 %v13136_v6, %v13135_v50  ;;  %v13143_v6 = vand.u32 4294901760, %v10487_v49  ;;  %v13145_v50 = vand.u32 4294901760, %v13124_v23  ;;  %v13150_v49 = vand.u32 4294901760, %v10604_v39 }
  0xa7   :  { %7952 = vmatprep.mubr.f32.mxu0 %v10192_v44  ;;  %8815 = vmatpush3.bf16.msra.mxu0 %v8812_v46  ;;  %v8848_v46 = vpack.c.bf16 %v13132_v9, %v13131_v12  ;;  %v13137_v44 = vand.u32 4294901760, %v13118_v34  ;;  %v13158_v39 = vand.u32 4294901760, %v10686_v58 }
  0xa8   :  { %8817 = vmatprep.subr.bf16.mxu0 %v10217_v53 }
  0xaa   :  { %7953 = vmatmul.mubr.f32.vlgmr.msra.gmra.mrb[4].mxu0 %v10370_v11  ;;  %v13140_v11 = vand.u32 4294901760, %v10474_v52  ;;  %v13146_v52 = vand.u32 4294901760, %v13125_v62 }
  0xab   :  { %8819 = vmatpush3.bf16.msra.mxu0 %v10217_v53  ;;  %7955 = vmatprep.mubr.f32.mxu0 %v13116_v59  ;;  %v13148_v59 = vand.u32 4294901760, %v10553_v51 }
  0xac   :  { %8821 = vmatprep.subr.bf16.mxu0 %v13117_v63 }
  0xae   :  { %7956 = vmatmul.mubr.f32.gmra.mrb[6].mxu0 %v13118_v34  ;;  %v8864_v34 = vpack.c.bf16 %v13148_v59, %v13147_v42 }
  0xaf   :  { %8823 = vmatpush3.bf16.msra.mxu0 %v13117_v63  ;;  %7958 = vmatprep.mubr.f32.mxu0 %v13119_v47  ;;  %v13149_v47 = vand.u32 4294901760, %v10599_v0  ;;  %v13156_v0 = vand.u32 4294901760, %v10669_v60 }
  0xb0   :  { %8825 = vmatprep.subr.bf16.mxu0 %v13120_v19 }
  0xb2   :  { %7959 = vmatmul.mubr.f32.gmra.mrb[8].mxu0 %v13121_v26 }
  0xb3   :  { %8827 = vmatpush3.bf16.msra.mxu0 %v13120_v19  ;;  %7961 = vmatprep.mubr.f32.mxu0 %v13122_v8  ;;  %v13152_v8 = vand.u32 4294901760, %v10627_v1 }
  0xb4   :  { %8829 = vmatprep.subr.bf16.mxu0 %v13123_v56 }
  0xb6   :  { %7962 = vmatmul.mubr.f32.gmra.mrb[10].mxu0 %v13124_v23  ;;  %v13153_v23 = vand.u32 4294901760, %v10642_v10  ;;  %v13160_v10 = vand.u32 4294901760, %v10702_v24 }
  0xb7   :  { %8831 = vmatpush3.bf16.msra.mxu0 %v13123_v56  ;;  %7964 = vmatprep.mubr.f32.mxu0 %v13125_v62  ;;  %v13155_v62 = vand.u32 4294901760, %v10657_v41 }
  0xb8   :  { %8833 = vmatprep.subr.bf16.mxu0 %v13126_v38  ;;  %v8872_v51 = vpack.c.bf16 %v13154_v37, %v13153_v23  ;;  %v771_v37 = vstv %s10923_s1 }
  0xba   :  { %7965 = vmatmul.mubr.f32.gmra.mrb[12].mxu0 %v10615_v15 }
  0xbb   :  { %8835 = vmatpush3.bf16.msra.mxu0 %v13126_v38  ;;  %7967 = vmatprep.mubr.f32.mxu0 %v10627_v1 }
  0xbc   :  { %8837 = vmatprep.subr.bf16.mxu0 %v13127_v48 }
  0xbe   :  { %7968 = vmatmul.mubr.f32.gmra.mrb[14].mxu0 %v10657_v41  ;;  %v48_v41 = vld [vmem:[%s12750_s0] sm:$0xff] }
  0xbf   :  { %8839 = vmatpush3.bf16.msra.mxu0 %v13127_v48  ;;  %7970 = vmatprep.mubr.f32.mxu0 %v10669_v60  ;;  %v847_v35 = vsel %vm102_vm0, %v48_v41, 0 }
  0xc0   :  { %8841 = vmatprep.subr.bf16.mxu0 %v13128_v36  ;;  %v10869_v60 = vand.u32 4294901760, %v847_v35 }
  0xc2   :  { %7971 = vmatmul.mubr.f32.gmra.mrb[16].mxu0 %v10696_v16  ;;  %13161 = vst [vmem:[#allocation29_spill] sm:$0xff] %v10869_v60  ;;  %v10875_v58 = vsub.f32 %v847_v35, %v10869_v60 }
  0xc3   :  { %8843 = vmatpush3.bf16.msra.mxu0 %v13128_v36  ;;  %7973 = vmatprep.mubr.f32.mxu0 %v10702_v24 }
  0xc4   :  { %8845 = vmatprep.subr.bf16.mxu0 %v13129_v4 }
  0xc6   :  { %7974 = vmatmul.mubr.f32.gmra.mrb[18].mxu0 %v10717_v28 }
  0xc7   :  { %8847 = vmatpush3.bf16.msra.mxu0 %v13129_v4  ;;  %8008 = vmatprep.mubr.f32.mxu0 %v13130_v61  ;;  %v13159_v61 = vand.u32 4294901760, %v10696_v16  ;;  %v12846_v16 = vand.u32 4294901760, %v10875_v58 }
  0xc8   :  { %8849 = vmatprep.subr.bf16.mxu0 %v8848_v46 }
  0xc9   :  { %v1014_v24 = vsub.f32 %v10875_v58, %v12846_v16 }
  0xca   :  { %8009 = vmatmul.mubr.f32.vlgmr.msra.gmra.mrb[4].mxu0 %v13133_v18  ;;  %v8856_v18 = vpack.c.bf16 %v13140_v11, %v13139_v5 }
  0xcb   :  { %8851 = vmatpush3.bf16.msra.mxu0 %v8848_v46  ;;  %8011 = vmatprep.mubr.f32.mxu0 %v13134_v54  ;;  %v13141_v54 = vand.u32 4294901760, %v13121_v26  ;;  %v8868_v26 = vpack.c.bf16 %v13150_v49, %v13149_v47 }
  0xcc   :  { %8853 = vmatprep.subr.bf16.mxu0 %v8852_v2 }
  0xce   :  { %8012 = vmatmul.mubr.f32.gmra.mrb[6].mxu0 %v13137_v44 }
  0xcf   :  { %8855 = vmatpush3.bf16.msra.mxu0 %v8852_v2  ;;  %8014 = vmatprep.mubr.f32.mxu0 %v13138_v3  ;;  %v13144_v2 = vand.u32 4294901760, %v10496_v17  ;;  %v13151_v17 = vand.u32 4294901760, %v10615_v15  ;;  %v13157_v15 = vand.u32 4294901760, %v10681_v30  ;;  %v13162_v30 = vand.u32 4294901760, %v10717_v28 }
  0xd0   :  { %8857 = vmatprep.subr.bf16.mxu0 %v8856_v18  ;;  %v1015_v28 = vand.u32 4294901760, %v1014_v24 }
  0xd1   :  { %v8860_v43 = vpack.c.bf16 %v13144_v2, %v13143_v6  ;;  %v8876_v1 = vpack.c.bf16 %v13158_v39, %v13157_v15 }
  0xd2   :  { %8015 = vmatmul.mubr.f32.gmra.mrb[8].mxu0 %v13141_v54  ;;  %7480 = vmatprep.mubr.f32.mxu1 %v1015_v28 }
  0xd3   :  { %8859 = vmatpush3.bf16.msra.mxu0 %v8856_v18  ;;  %8017 = vmatprep.mubr.f32.mxu0 %v13142_v57 }
  0xd4   :  { %8861 = vmatprep.subr.bf16.mxu0 %v8860_v43 }
  0xd6   :  { %8018 = vmatmul.mubr.f32.gmra.mrb[10].mxu0 %v13145_v50 }
  0xd7   :  { %8863 = vmatpush3.bf16.msra.mxu0 %v8860_v43  ;;  %8020 = vmatprep.mubr.f32.mxu0 %v13146_v52 }
  0xd8   :  { %8865 = vmatprep.subr.bf16.mxu0 %v8864_v34 }
  0xda   :  { %8021 = vmatmul.mubr.f32.gmra.mrb[12].mxu0 %v13151_v17 }
  0xdb   :  { %8867 = vmatpush3.bf16.msra.mxu0 %v8864_v34  ;;  %8023 = vmatprep.mubr.f32.mxu0 %v13152_v8 }
  0xdc   :  { %8869 = vmatprep.subr.bf16.mxu0 %v8868_v26 }
  0xde   :  { %8024 = vmatmul.mubr.f32.gmra.mrb[14].mxu0 %v13155_v62 }
  0xdf   :  { %8871 = vmatpush3.bf16.msra.mxu0 %v8868_v26  ;;  %8026 = vmatprep.mubr.f32.mxu0 %v13156_v0 }
  0xe0   :  { %8873 = vmatprep.subr.bf16.mxu0 %v8872_v51 }
  0xe2   :  { %8027 = vmatmul.mubr.f32.gmra.mrb[16].mxu0 %v13159_v61 }
  0xe3   :  { %8875 = vmatpush3.bf16.msra.mxu0 %v8872_v51  ;;  %8029 = vmatprep.mubr.f32.mxu0 %v13160_v10  ;;  %v799_v51 = vstv %s776_s22 }
  0xe4   :  { %8877 = vmatprep.subr.bf16.mxu0 %v8876_v1 }
  0xe6   :  { %8030 = vmatmul.mubr.f32.gmra.mrb[18].mxu0 %v13162_v30 }
  0xe7   :  { %8879 = vmatpush3.bf16.msra.mxu0 %v8876_v1  ;;  %8064 = vmatprep.mubr.f32.mxu0 %v10158_v27 }
  0xe8   :  { %8881 = vmatprep.subr.bf16.mxu0 %v10217_v53 }
  0xea   :  { %8065 = vmatmul.mubr.f32.vlgmr.msra.gmra.mrb[4].mxu0 %v10321_v33 }
  0xeb   :  { %8883 = vmatpush3.bf16.msra.mxu0 %v10217_v53  ;;  %8067 = vmatprep.mubr.f32.mxu0 %v10377_v29  ;;  %v13163_v53 = vld [vmem:[#allocation39_spill] sm:$0xff] }
  0xec   :  { %8885 = vmatprep.subr.bf16.mxu0 %v13117_v63 }
  0xee   :  { %8068 = vmatmul.mubr.f32.gmra.mrb[6].mxu0 %v10379_v45 }
  0xef   :  { %8887 = vmatpush3.bf16.msra.mxu0 %v13117_v63  ;;  %8070 = vmatprep.mubr.f32.mxu0 %v10398_v40 }
  0xf0   :  { %8889 = vmatprep.subr.bf16.mxu0 %v13120_v19 }
  0xf2   :  { %8071 = vmatmul.mubr.f32.gmra.mrb[8].mxu0 %v10461_v55 }
  0xf3   :  { %8891 = vmatpush3.bf16.msra.mxu0 %v13120_v19  ;;  %8073 = vmatprep.mubr.f32.mxu0 %v10482_v31 }
  0xf4   :  { %8893 = vmatprep.subr.bf16.mxu0 %v13123_v56 }
  0xf6   :  { %8074 = vmatmul.mubr.f32.gmra.mrb[10].mxu0 %v10530_v13 }
  0xf7   :  { %8895 = vmatpush3.bf16.msra.mxu0 %v13123_v56  ;;  %8076 = vmatprep.mubr.f32.mxu0 %v10539_v7 }
  0xf8   :  { %8897 = vmatprep.subr.bf16.mxu0 %v13126_v38 }
  0xfa   :  { %8077 = vmatmul.mubr.f32.gmra.mrb[12].mxu0 %v10581_v25 }
  0xfb   :  { %8899 = vmatpush3.bf16.msra.mxu0 %v13126_v38  ;;  %8079 = vmatprep.mubr.f32.mxu0 %v10590_v22 }
  0xfc   :  { %8901 = vmatprep.subr.bf16.mxu0 %v13127_v48 }
  0xfe   :  { %8080 = vmatmul.mubr.f32.gmra.mrb[14].mxu0 %v10617_v14 }
  0xff   :  { %8903 = vmatpush3.bf16.msra.mxu0 %v13127_v48  ;;  %8082 = vmatprep.mubr.f32.mxu0 %v10631_v20 }
 0x100   :  { %8905 = vmatprep.subr.bf16.mxu0 %v13128_v36 }
 0x102   :  { %8083 = vmatmul.mubr.f32.gmra.mrb[16].mxu0 %v10660_v32 }
 0x103   :  { %8907 = vmatpush3.bf16.msra.mxu0 %v13128_v36  ;;  %8085 = vmatprep.mubr.f32.mxu0 %v10671_v21  ;;  %v782_v36 = vstv %s777_s24 }
 0x104   :  { %8909 = vmatprep.subr.bf16.mxu0 %v13129_v4 }
 0x106   :  { %8086 = vmatmul.mubr.f32.gmra.mrb[18].mxu0 %v13163_v53 }
 0x107   :  { %8911 = vmatpush3.bf16.msra.mxu0 %v13129_v4  ;;  %8120 = vmatprep.mubr.f32.mxu0 %v10158_v27 }
 0x10a   :  { %8121 = vmatmul.mubr.f32.vlgmr.msra.gmra.mrb[4].mxu0 %v10321_v33 }
 0x10b   :  { %8123 = vmatprep.mubr.f32.mxu0 %v10377_v29 }
 0x10e   :  { %8124 = vmatmul.mubr.f32.gmra.mrb[6].mxu0 %v10379_v45 }
 0x10f   :  { %8126 = vmatprep.mubr.f32.mxu0 %v10398_v40 }
 0x112   :  { %8127 = vmatmul.mubr.f32.gmra.mrb[8].mxu0 %v10461_v55 }
 0x113   :  { %8129 = vmatprep.mubr.f32.mxu0 %v10482_v31 }
 0x116   :  { %8130 = vmatmul.mubr.f32.gmra.mrb[10].mxu0 %v10530_v13 }
 0x117   :  { %8132 = vmatprep.mubr.f32.mxu0 %v10539_v7 }
 0x11a   :  { %8133 = vmatmul.mubr.f32.gmra.mrb[12].mxu0 %v10581_v25 }
 0x11b   :  { %8135 = vmatprep.mubr.f32.mxu0 %v10590_v22 }
 0x11d   :  { %v7468_v63 = vpop.f32.mrb[0].mxu0 }
 0x11e   :  { %v6602_v19 = vmul.f32 -1.442695, %v7468_v63  ;;  %v707_v56 = vpop.f32.mrb[1].mxu0  ;;  %8136 = vmatmul.mubr.f32.gmra.mrb[14].mxu0 %v10617_v14 }
 0x11f   :  { %v6601_v38 = vmul.f32 -1.442695, %v707_v56  ;;  %8138 = vmatprep.mubr.f32.mxu0 %v10631_v20  ;;  %v754_v20 = vstv %s753_s23 }
 0x120   :  { %9605 = vpow2.f32 %v6602_v19 }
 0x121   :  { %9607 = vpow2.f32 %v6601_v38  ;;  %v7471_v27 = vpop.f32.mrb[2].mxu0 }
 0x122   :  { %v6604_v33 = vmul.f32 -1.442695, %v7471_v27  ;;  %v719_v29 = vpop.f32.mrb[3].mxu0  ;;  %8139 = vmatmul.mubr.f32.gmra.mrb[16].mxu0 %v10660_v32 }
 0x123   :  { %v6603_v45 = vmul.f32 -1.442695, %v719_v29  ;;  %8141 = vmatprep.mubr.f32.mxu0 %v10671_v21 }
 0x124   :  { %9609 = vpow2.f32 %v6604_v33 }
 0x125   :  { %9611 = vpow2.f32 %v6603_v45 }
 0x126   :  { %8142 = vmatmul.mubr.f32.gmra.mrb[18].mxu0 %v13163_v53 }
 0x12a   :  { %v9606_v13 = vpop.eup %9605 }
 0x12b   :  { %v9608_v31 = vpop.eup %9607  ;;  %v742_v7 = vadd.f32 1.0, %v9606_v13 }
 0x12c   :  { %v741_v55 = vadd.f32 1.0, %v9608_v31 }
 0x12d   :  { %9613 = vrcp.f32 %v742_v7 }
 0x12e   :  { %v9610_v25 = vpop.eup %9609  ;;  %9615 = vrcp.f32 %v741_v55 }
 0x12f   :  { %v9612_v22 = vpop.eup %9611  ;;  %v744_v40 = vadd.f32 1.0, %v9610_v25 }
 0x130   :  { %v743_v48 = vadd.f32 1.0, %v9612_v22 }
 0x131   :  { %9617 = vrcp.f32 %v744_v40 }
 0x132   :  { %9619 = vrcp.f32 %v743_v48  ;;  %v49_v48 = vld [vmem:[%s12750_s0 + $0x8] sm:$0xff] }
 0x137   :  { %v9614_v14 = vpop.eup %9613 }
 0x138   :  { %v9616_v32 = vpop.eup %9615  ;;  %v756_v4 = vmul.f32 %v9614_v14, %v754_v20  ;;  %v779_v12 = vsub.f32 1.0, %v9614_v14  ;;  %v51_v14 = vld [vmem:[%s12750_s0 + $0x18] sm:$0xff] }
 0x139   :  { %v755_v21 = vmul.f32 %v9616_v32, %v754_v20  ;;  %v778_v9 = vsub.f32 1.0, %v9616_v32 }
 0x13a   :  { %v761_v46 = vmul.f32 1.442695, %v756_v4  ;;  %v784_v44 = vmul.f32 %v782_v36, %v779_v12  ;;  %v856_v12 = vsel %vm102_vm0, %v51_v14, 0  ;;  %v57_v14 = vld [vmem:[%s12750_s0 + $0x48] sm:$0xff] }
 0x13b   :  { %v9618_v3 = vpop.eup %9617  ;;  %v759_v5 = vmul.f32 1.442695, %v755_v21  ;;  %v783_v11 = vmul.f32 %v782_v36, %v778_v9 }
 0x13c   :  { %v9620_v18 = vpop.eup %9619  ;;  %9621 = vpow2.f32 %v761_v46  ;;  %v789_v54 = vmul.f32 1.442695, %v784_v44  ;;  %v758_v57 = vmul.f32 %v9618_v3, %v754_v20  ;;  %v781_v6 = vsub.f32 1.0, %v9618_v3 }
 0x13d   :  { %9623 = vpow2.f32 %v759_v5  ;;  %v787_v2 = vmul.f32 1.442695, %v783_v11  ;;  %v757_v43 = vmul.f32 %v9620_v18, %v754_v20  ;;  %v780_v50 = vsub.f32 1.0, %v9620_v18  ;;  %v50_v20 = vld [vmem:[%s12750_s0 + $0x10] sm:$0xff]  ;;  %v52_v5 = vld [vmem:[%s12750_s0 + $0x20] sm:$0xff] }
 0x13e   :  { %9625 = vpow2.f32 %v789_v54  ;;  %v765_v52 = vmul.f32 1.442695, %v758_v57  ;;  %v786_v42 = vmul.f32 %v782_v36, %v781_v6  ;;  %v853_v32 = vsel %vm102_vm0, %v50_v20, 0 }
 0x13f   :  { %9627 = vpow2.f32 %v787_v2  ;;  %v763_v59 = vmul.f32 1.442695, %v757_v43  ;;  %v785_v34 = vmul.f32 %v782_v36, %v780_v50  ;;  %v850_v36 = vsel %vm102_vm0, %v49_v48, 0  ;;  %v53_v43 = vld [vmem:[%s12750_s0 + $0x28] sm:$0xff] }
 0x140   :  { %9629 = vpow2.f32 %v765_v52  ;;  %v793_v47 = vmul.f32 1.442695, %v786_v42  ;;  %v10949_v46 = vand.u32 4294901760, %v850_v36  ;;  %v10951_v3 = vand.u32 4294901760, %v853_v32 }
 0x141   :  { %9631 = vpow2.f32 %v763_v59  ;;  %v791_v49 = vmul.f32 1.442695, %v785_v34  ;;  %v10956_v11 = vand.u32 4294901760, %v856_v12  ;;  %v859_v2 = vsel %vm102_vm0, %v52_v5, 0  ;;  %v9912_v5 = vld [vmem:[%s12753_s3 + $0x10] sm:$0xff] }
 0x142   :  { %9633 = vpow2.f32 %v793_v47  ;;  %13164 = vst [vmem:[#allocation18_spill] sm:$0xff] %v10949_v46  ;;  %13165 = vst [vmem:[#allocation30_spill] sm:$0xff] %v10951_v3  ;;  %v10959_v6 = vsub.f32 %v850_v36, %v10949_v46  ;;  %v10966_v52 = vsub.f32 %v853_v32, %v10951_v3  ;;  %v10971_v59 = vand.u32 4294901760, %v859_v2  ;;  %v9911_v36 = vld [vmem:[%s12753_s3 + $0x18] sm:$0xff] }
 0x143   :  { %9635 = vpow2.f32 %v791_v49  ;;  %13166 = vst [vmem:[#allocation32_spill] sm:$0xff] %v10956_v11  ;;  %v10969_v42 = vsub.f32 %v856_v12, %v10956_v11  ;;  %v862_v34 = vsel %vm102_vm0, %v53_v43, 0 }
 0x144   :  { %13167 = vst [vmem:[#allocation20_spill] sm:$0xff] %v10971_v59  ;;  %v12844_v47 = vand.u32 4294901760, %v10959_v6  ;;  %v12842_v49 = vand.u32 4294901760, %v10966_v52 }
 0x146   :  { %v9622_v26 = vpop.eup %9621 }
 0x147   :  { %v9624_v17 = vpop.eup %9623  ;;  %v768_v8 = vsub.f32 1.0, %v9622_v26  ;;  %v12841_v26 = vand.u32 4294901760, %v10969_v42 }
 0x148   :  { %v9626_v23 = vpop.eup %9625  ;;  %v767_v62 = vsub.f32 1.0, %v9624_v17  ;;  %v10977_v17 = vand.u32 4294901760, %v862_v34 }
 0x149   :  { %v9628_v0 = vpop.eup %9627  ;;  %v796_v15 = vsub.f32 1.0, %v9626_v23  ;;  %v773_v10 = vmul.f32 %v771_v37, %v768_v8  ;;  %v10980_v8 = vsub.f32 %v859_v2, %v10971_v59  ;;  %v54_v23 = vld [vmem:[%s12750_s0 + $0x30] sm:$0xff] }
 0x14a   :  { %v9630_v39 = vpop.eup %9629  ;;  %v795_v1 = vsub.f32 1.0, %v9628_v0  ;;  %v772_v24 = vmul.f32 %v771_v37, %v767_v62  ;;  %13168 = vst [vmem:[#allocation35_spill] sm:$0xff] %v10977_v17  ;;  %v13169_v0 = vld [vmem:[#allocation6_spill] sm:$0xff] }
 0x14b   :  { %v9632_v61 = vpop.eup %9631  ;;  %v801_v41 = vmul.f32 %v799_v51, %v796_v15  ;;  %v770_v35 = vsub.f32 1.0, %v9630_v39  ;;  %v10994_v39 = vsub.f32 %v10966_v52, %v12842_v49 }
 0x14c   :  { %v9634_v30 = vpop.eup %9633  ;;  %v800_v28 = vmul.f32 %v799_v51, %v795_v1  ;;  %v769_v53 = vsub.f32 1.0, %v9632_v61  ;;  %v55_v1 = vld [vmem:[%s12750_s0 + $0x38] sm:$0xff]  ;;  %v13170_v61 = vld [vmem:[#allocation5_spill] sm:$0xff] }
 0x14d   :  { %v9636_v63 = vpop.eup %9635  ;;  %v805_v19 = vsub.f32 %v773_v10, %v801_v41  ;;  %v798_v56 = vsub.f32 1.0, %v9634_v30  ;;  %v775_v29 = vmul.f32 %v771_v37, %v770_v35  ;;  %v11003_v41 = vsub.f32 %v10969_v42, %v12841_v26 }
 0x14e   :  { %v804_v38 = vsub.f32 %v772_v24, %v800_v28  ;;  %v797_v27 = vsub.f32 1.0, %v9636_v63  ;;  %v774_v31 = vmul.f32 %v771_v37, %v769_v53  ;;  %v11006_v35 = vsub.f32 %v862_v34, %v10977_v17  ;;  %v9909_v24 = vld [vmem:[%s12753_s3 + $0x8] sm:$0xff] }
 0x14f   :  { %v6606_v33 = vmul.f32 -1.442695, %v805_v19  ;;  %v803_v45 = vmul.f32 %v799_v51, %v798_v56  ;;  %v865_v30 = vsel %vm102_vm0, %v54_v23, 0  ;;  %v12840_v53 = vand.u32 4294901760, %v10980_v8  ;;  %v9910_v19 = vld [vmem:[%s12753_s3] sm:$0xff] }
 0x150   :  { %v6605_v13 = vmul.f32 -1.442695, %v804_v38  ;;  %v802_v7 = vmul.f32 %v799_v51, %v797_v27  ;;  %v10988_v51 = vsub.f32 %v10959_v6, %v12844_v47  ;;  %v868_v27 = vsel %vm102_vm0, %v55_v1, 0 }
 0x151   :  { %9637 = vpow2.f32 %v6606_v33  ;;  %v807_v55 = vsub.f32 %v775_v29, %v803_v45  ;;  %v13171_v45 = vld [vmem:[#allocation8_spill] sm:$0xff]  ;;  %v1045_v48 = vand.u32 4294901760, %v11003_v41  ;;  %v12838_v20 = vand.u32 4294901760, %v11006_v35 }
 0x152   :  { %9639 = vpow2.f32 %v6605_v13  ;;  %v806_v25 = vsub.f32 %v774_v31, %v802_v7  ;;  %v1025_v38 = vand.u32 4294901760, %v10988_v51  ;;  %v1035_v31 = vand.u32 4294901760, %v10994_v39 }
 0x153   :  { %v6608_v22 = vmul.f32 -1.442695, %v807_v55  ;;  %v11020_v7 = vand.u32 4294901760, %v865_v30  ;;  %v56_v55 = vld [vmem:[%s12750_s0 + $0x40] sm:$0xff]  ;;  %v11037_v12 = vsub.f32 %v10980_v8, %v12840_v53  ;;  %v874_v34 = vsel %vm102_vm0, %v57_v14, 0 }
 0x154   :  { %v6607_v40 = vmul.f32 -1.442695, %v806_v25  ;;  %v1064_v14 = vsub.f32 %v11006_v35, %v12838_v20 }
 0x155   :  { %9641 = vpow2.f32 %v6608_v22  ;;  %13172 = vst [vmem:[#allocation36_spill] sm:$0xff] %v11020_v7  ;;  %v13173_v22 = vld [vmem:[#allocation7_spill] sm:$0xff] }
 0x156   :  { %9643 = vpow2.f32 %v6607_v40 }
 0x15b   :  { %v9638_v4 = vpop.eup %9637 }
 0x15c   :  { %v9640_v21 = vpop.eup %9639  ;;  %v821_v9 = vadd.f32 1.0, %v9638_v4 }
 0x15d   :  { %v820_v44 = vadd.f32 1.0, %v9640_v21  ;;  %v11039_v21 = vand.u32 4294901760, %v868_v27 }
 0x15e   :  { %9645 = vrcp.f32 %v821_v9  ;;  %v58_v9 = vld [vmem:[%s12750_s0 + $0x50] sm:$0xff] }
 0x15f   :  { %v9642_v18 = vpop.eup %9641  ;;  %9647 = vrcp.f32 %v820_v44  ;;  %13174 = vst [vmem:[#allocation23_spill] sm:$0xff] %v11039_v21 }
 0x160   :  { %v9644_v54 = vpop.eup %9643  ;;  %v823_v57 = vadd.f32 1.0, %v9642_v18 }
 0x161   :  { %v822_v50 = vadd.f32 1.0, %v9644_v54 }
 0x162   :  { %9649 = vrcp.f32 %v823_v57  ;;  %v871_v57 = vsel %vm102_vm0, %v56_v55, 0 }
 0x163   :  { %9651 = vrcp.f32 %v822_v50  ;;  %v11051_v50 = vsub.f32 %v865_v30, %v11020_v7  ;;  %v59_v30 = vld [vmem:[%s12750_s0 + $0x58] sm:$0xff] }
 0x168   :  { %v9646_v37 = vpop.eup %9645 }
 0x169   :  { %v9648_v62 = vpop.eup %9647  ;;  %v833_v15 = vmul.f32 %v9646_v37, %v13169_v0  ;;  %v877_v0 = vsel %vm102_vm0, %v58_v9, 0  ;;  %v62_v9 = vld [vmem:[%s12750_s0 + $0x70] sm:$0xff] }
 0x16a   :  { %v832_v10 = vmul.f32 %v9648_v62, %v13170_v61  ;;  %v11060_v61 = vsub.f32 %v868_v27, %v11039_v21  ;;  %v60_v27 = vld [vmem:[%s12750_s0 + $0x60] sm:$0xff] }
 0x16b   :  { %v837_v28 = vadd.f32 %v9909_v24, %v833_v15 }
 0x16c   :  { %v9650_v63 = vpop.eup %9649  ;;  %v836_v56 = vadd.f32 %v9910_v19, %v832_v10  ;;  %13175 = vst [vmem:[#allocation37_spill] sm:$0xff] %v11060_v61  ;;  %v11062_v10 = vand.u32 4294901760, %v871_v57 }
 0x16d   :  { %v9652_v33 = vpop.eup %9651  ;;  %v946_v29 = vand.u32 4294901760, %v837_v28  ;;  %v835_v13 = vmul.f32 %v9650_v63, %v13171_v45  ;;  %v11073_v45 = vand.u32 4294901760, %v877_v0 }
 0x16e   :  { %v943_v25 = vand.u32 4294901760, %v836_v56  ;;  %v834_v40 = vmul.f32 %v9652_v33, %v13173_v22  ;;  %13176 = vst [vmem:[#allocation38_spill] sm:$0xff] %v11062_v10 }
 0x16f   :  { %v839_v32 = vadd.f32 %v9911_v36, %v835_v13  ;;  %v1340_v4 = vsub.f32 %v837_v28, %v946_v29  ;;  %13179 = vst [vmem:[#allocation33_spill] sm:$0xff] %v11073_v45  ;;  %v12837_v36 = vand.u32 4294901760, %v11051_v50 }
 0x170   :  { %v11044_v44 = vpack.c.bf16 %v946_v29, %v943_v25  ;;  %v838_v18 = vadd.f32 %v9912_v5, %v834_v40  ;;  %v1333_v54 = vsub.f32 %v836_v56, %v943_v25  ;;  %v11071_v29 = vand.u32 4294901760, %v874_v34 }
 0x171   :  { %v952_v2 = vand.u32 4294901760, %v839_v32  ;;  %v1341_v43 = vand.u32 4294901760, %v1340_v4  ;;  %v880_v25 = vsel %vm102_vm0, %v59_v30, 0  ;;  %v1074_v51 = vsub.f32 %v11051_v50, %v12837_v36 }
 0x172   :  { %8673 = vmatprep.subr.bf16.mxu1 %v11044_v44  ;;  %v949_v23 = vand.u32 4294901760, %v838_v18  ;;  %v1334_v37 = vand.u32 4294901760, %v1333_v54  ;;  %v11055_v62 = vpack.c.bf16 %v1340_v4, %v1333_v54  ;;  %13178 = vst [vmem:[#allocation31_spill] sm:$0xff] %v11071_v29 }
 0x173   :  { %8675 = vmatpush3.bf16.msra.mxu1 %v11044_v44  ;;  %v1342_v15 = vsub.f32 %v1340_v4, %v1341_v43  ;;  %v1354_v1 = vsub.f32 %v839_v32, %v952_v2  ;;  %v11088_v32 = vsub.f32 %v871_v57, %v11062_v10  ;;  %v61_v4 = vld [vmem:[%s12750_s0 + $0x68] sm:$0xff]  ;;  %v11101_v57 = vsub.f32 %v874_v34, %v11071_v29 }
 0x174   :  { %v11067_v24 = vpack.c.bf16 %v952_v2, %v949_v23  ;;  %v1335_v28 = vsub.f32 %v1333_v54, %v1334_v37  ;;  %v1347_v63 = vsub.f32 %v838_v18, %v949_v23  ;;  %v11069_v19 = vpack.c.bf16 %v1341_v43, %v1334_v37 }
 0x175   :  { %v1343_v56 = vand.u32 4294901760, %v1342_v15  ;;  %v1355_v33 = vand.u32 4294901760, %v1354_v1  ;;  %13180 = vst [vmem:[#allocation34_spill] sm:$0xff] %v11088_v32  ;;  %v883_v54 = vsel %vm102_vm0, %v60_v27, 0  ;;  %v12835_v23 = vand.u32 4294901760, %v11060_v61  ;;  %13182 = vst [vmem:[#allocation6_spill] sm:$0xff] %v11101_v57 }
 0x176   :  { %13177 = vst [vmem:[#allocation28_spill] sm:$0xff] %v11067_v24  ;;  %8677 = vmatprep.subr.bf16.mxu1 %v11067_v24  ;;  %v1336_v13 = vand.u32 4294901760, %v1335_v28  ;;  %v1348_v55 = vand.u32 4294901760, %v1347_v63  ;;  %v11080_v22 = vpack.c.bf16 %v1354_v1, %v1347_v63  ;;  %v11103_v37 = vand.u32 4294901760, %v880_v25 }
 0x177   :  { %8679 = vmatpush3.bf16.msra.mxu1 %v11067_v24  ;;  %v1356_v40 = vsub.f32 %v1354_v1, %v1355_v33  ;;  %v11108_v1 = vsub.f32 %v877_v0, %v11073_v45  ;;  %v886_v30 = vsel %vm102_vm0, %v61_v4, 0  ;;  %v889_v28 = vsel %vm102_vm0, %v62_v9, 0  ;;  %v63_v0 = vld [vmem:[%s12750_s0 + $0x78] sm:$0xff]  ;;  %v65_v9 = vld [vmem:[%s12750_s0 + $0x88] sm:$0xff] }
 0x178   :  { %v8680_v5 = vpack.c.bf16 %v1343_v56, %v1336_v13  ;;  %v1349_v18 = vsub.f32 %v1347_v63, %v1348_v55  ;;  %v11097_v2 = vpack.c.bf16 %v1355_v33, %v1348_v55  ;;  %13183 = vst [vmem:[#allocation5_spill] sm:$0xff] %v11103_v37  ;;  %v1055_v34 = vand.u32 4294901760, %v11037_v12  ;;  %v64_v12 = vld [vmem:[%s12750_s0 + $0x80] sm:$0xff] }
 0x179   :  { %v1357_v43 = vand.u32 4294901760, %v1356_v40  ;;  %13184 = vst [vmem:[#allocation8_spill] sm:$0xff] %v11108_v1  ;;  %v11119_v63 = vand.u32 4294901760, %v883_v54  ;;  %v1065_v33 = vand.u32 4294901760, %v1064_v14  ;;  %v11125_v27 = vsub.f32 %v880_v25, %v11103_v37 }
 0x17a   :  { %13181 = vst [vmem:[#allocation39_spill] sm:$0xff] %v11097_v2  ;;  %7481 = vmatmul.mubr.f32.vlgmr.msra.gmra.mrb[0].mxu1 %v1025_v38  ;;  %8681 = vmatprep.subr.bf16.mxu1 %v8680_v5  ;;  %v1350_v15 = vand.u32 4294901760, %v1349_v18  ;;  %v12832_v38 = vand.u32 4294901760, %v11088_v32  ;;  %v11127_v39 = vand.u32 4294901760, %v886_v30  ;;  %v1084_v13 = vsub.f32 %v11060_v61, %v12835_v23 }
 0x17b   :  { %8683 = vmatpush3.bf16.msra.mxu1 %v8680_v5  ;;  %7483 = vmatprep.mubr.f32.mxu1 %v1035_v31  ;;  %13185 = vst [vmem:[#allocation7_spill] sm:$0xff] %v11119_v63  ;;  %13186 = vst [vmem:[#allocation40_spill] sm:$0xff] %v11125_v27  ;;  %v11129_v31 = vand.u32 4294901760, %v889_v28  ;;  %v12834_v55 = vand.u32 4294901760, %v11101_v57  ;;  %v12833_v25 = vand.u32 4294901760, %v11108_v1  ;;  %v892_v40 = vsel %vm102_vm0, %v63_v0, 0 }
 0x17c   :  { %v8684_v56 = vpack.c.bf16 %v1357_v43, %v1350_v15  ;;  %13187 = vst [vmem:[#allocation41_spill] sm:$0xff] %v11127_v39  ;;  %v1075_v14 = vand.u32 4294901760, %v1074_v51  ;;  %v1094_v4 = vsub.f32 %v11088_v32, %v12832_v38  ;;  %v11146_v41 = vsub.f32 %v883_v54, %v11119_v63  ;;  %v66_v54 = vld [vmem:[%s12750_s0 + $0x90] sm:$0xff] }
 0x17d   :  { %13188 = vst [vmem:[#allocation42_spill] sm:$0xff] %v11129_v31  ;;  %v12836_v5 = vand.u32 4294901760, %v11125_v27  ;;  %v11155_v18 = vsub.f32 %v886_v30, %v11127_v39  ;;  %v11158_v43 = vsub.f32 %v889_v28, %v11129_v31  ;;  %v11160_v15 = vand.u32 4294901760, %v892_v40 }
 0x17e   :  { %7484 = vmatmul.mubr.f32.gmra.mrb[2].mxu1 %v1045_v48  ;;  %8685 = vmatprep.subr.bf16.mxu1 %v8684_v56  ;;  %13189 = vst [vmem:[#allocation43_spill] sm:$0xff] %v11146_v41  ;;  %v895_v48 = vsel %vm102_vm0, %v64_v12, 0  ;;  %v1104_v51 = vsub.f32 %v11101_v57, %v12834_v55  ;;  %v1114_v30 = vsub.f32 %v11108_v1, %v12833_v25  ;;  %v1095_v0 = vand.u32 4294901760, %v1094_v4 }
 0x17f   :  { %8687 = vmatpush3.bf16.msra.mxu1 %v8684_v56  ;;  %7486 = vmatprep.mubr.f32.mxu1 %v1055_v34  ;;  %13190 = vst [vmem:[#allocation44_spill] sm:$0xff] %v11155_v18  ;;  %13191 = vst [vmem:[#allocation45_spill] sm:$0xff] %v11158_v43  ;;  %v1085_v34 = vand.u32 4294901760, %v1084_v13  ;;  %v12839_v28 = vand.u32 4294901760, %v11146_v41  ;;  %v11172_v56 = vand.u32 4294901760, %v895_v48  ;;  %v898_v12 = vsel %vm102_vm0, %v65_v9, 0 }
 0x180   :  { %8689 = vmatprep.subr.bf16.mxu1 %v11055_v62  ;;  %13192 = vst [vmem:[#allocation46_spill] sm:$0xff] %v11160_v15  ;;  %v901_v38 = vsel %vm102_vm0, %v66_v54, 0  ;;  %v1124_v13 = vsub.f32 %v11125_v27, %v12836_v5  ;;  %v12843_v25 = vand.u32 4294901760, %v11155_v18  ;;  %v11185_v4 = vsub.f32 %v892_v40, %v11160_v15  ;;  %v68_v9 = vld [vmem:[%s12750_s0 + $0xa0] sm:$0xff] }
 0x181   :  { %13193 = vst [vmem:[#allocation47_spill] sm:$0xff] %v11172_v56  ;;  %v1105_v54 = vand.u32 4294901760, %v1104_v51  ;;  %v1115_v55 = vand.u32 4294901760, %v1114_v30  ;;  %v11190_v23 = vand.u32 4294901760, %v898_v12  ;;  %v1134_v5 = vsub.f32 %v11146_v41, %v12839_v28  ;;  %v70_v51 = vld [vmem:[%s12750_s0 + $0xb0] sm:$0xff] }
 0x182   :  { %7487 = vmatmul.mubr.f32.gmra.mrb[4].mxu1 %v1065_v33  ;;  %v67_v33 = vld [vmem:[%s12750_s0 + $0x98] sm:$0xff]  ;;  %13194 = vst [vmem:[#allocation48_spill] sm:$0xff] %v11185_v4  ;;  %v11196_v36 = vsub.f32 %v895_v48, %v11172_v56  ;;  %v11198_v20 = vand.u32 4294901760, %v901_v38  ;;  %v907_v30 = vsel %vm102_vm0, %v68_v9, 0  ;;  %v1144_v48 = vsub.f32 %v11155_v18, %v12843_v25 }
 0x183   :  { %7489 = vmatprep.mubr.f32.mxu1 %v1075_v14  ;;  %v12845_v14 = vand.u32 4294901760, %v11158_v43  ;;  %13195 = vst [vmem:[#allocation49_spill] sm:$0xff] %v11190_v23  ;;  %v904_v40 = vsel %vm102_vm0, %v67_v33, 0  ;;  %v12850_v33 = vand.u32 4294901760, %v11185_v4  ;;  %v11216_v53 = vsub.f32 %v898_v12, %v11190_v23  ;;  %v71_v12 = vld [vmem:[%s12750_s0 + $0xb8] sm:$0xff] }
 0x184   :  { %13196 = vst [vmem:[#allocation50_spill] sm:$0xff] %v11196_v36  ;;  %13197 = vst [vmem:[#allocation51_spill] sm:$0xff] %v11198_v20  ;;  %v11218_v26 = vand.u32 4294901760, %v904_v40  ;;  %v1135_v9 = vand.u32 4294901760, %v1134_v5  ;;  %v11224_v47 = vsub.f32 %v901_v38, %v11198_v20  ;;  %v916_v2 = vsel %vm102_vm0, %v71_v12, 0 }
 0x185   :  { %v1154_v28 = vsub.f32 %v11158_v43, %v12845_v14  ;;  %13198 = vst [vmem:[#allocation52_spill] sm:$0xff] %v11216_v53  ;;  %v11226_v14 = vand.u32 4294901760, %v907_v30  ;;  %v12861_v16 = vand.u32 4294901760, %v11216_v53  ;;  %v11263_v12 = vand.u32 4294901760, %v916_v2 }
 0x186   :  { %7490 = vmatmul.mubr.f32.gmra.mrb[6].mxu1 %v1085_v34  ;;  %v69_v34 = vld [vmem:[%s12750_s0 + $0xa8] sm:$0xff]  ;;  %13199 = vst [vmem:[#allocation53_spill] sm:$0xff] %v11218_v26  ;;  %13200 = vst [vmem:[#allocation54_spill] sm:$0xff] %v11224_v47  ;;  %v11243_v25 = vsub.f32 %v904_v40, %v11218_v26 }
 0x187   :  { %7492 = vmatprep.mubr.f32.mxu1 %v1095_v0  ;;  %v1125_v0 = vand.u32 4294901760, %v1124_v13  ;;  %v910_v49 = vsel %vm102_vm0, %v69_v34, 0  ;;  %v913_v13 = vsel %vm102_vm0, %v70_v51, 0  ;;  %13201 = vst [vmem:[#allocation55_spill] sm:$0xff] %v11226_v14  ;;  %v1145_v34 = vand.u32 4294901760, %v1144_v48  ;;  %13209 = vst [vmem:[#allocation62_spill] sm:$0xff] %v11263_v12 }
 0x188   :  { %v11237_v5 = vand.u32 4294901760, %v910_v49  ;;  %v11239_v51 = vand.u32 4294901760, %v913_v13  ;;  %v1155_v38 = vand.u32 4294901760, %v1154_v28  ;;  %13204 = vst [vmem:[#allocation58_spill] sm:$0xff] %v11243_v25  ;;  %v13205_v48 = vand.u32 4294901760, %v11196_v36  ;;  %v73_v28 = vld [vmem:[%s12750_s0 + $0xc8] sm:$0xff] }
 0x189   :  { %v922_v27 = vsel %vm102_vm0, %v73_v28, 0  ;;  %v13213_v28 = vand.u32 4294901760, %v11243_v25 }
 0x18a   :  { %7493 = vmatmul.mubr.f32.gmra.mrb[8].mxu1 %v1105_v54  ;;  %v72_v54 = vld [vmem:[%s12750_s0 + $0xc0] sm:$0xff]  ;;  %13202 = vst [vmem:[#allocation56_spill] sm:$0xff] %v11237_v5  ;;  %13203 = vst [vmem:[#allocation57_spill] sm:$0xff] %v11239_v51  ;;  %v1174_v43 = vsub.f32 %v11196_v36, %v13205_v48  ;;  %v11258_v40 = vsub.f32 %v910_v49, %v11237_v5  ;;  %v74_v48 = vld [vmem:[%s12750_s0 + $0xd0] sm:$0xff] }
 0x18b   :  { %7495 = vmatprep.mubr.f32.mxu1 %v1115_v55  ;;  %v1164_v55 = vsub.f32 %v11185_v4, %v12850_v33  ;;  %v11251_v4 = vsub.f32 %v907_v30, %v11226_v14 }
 0x18c   :  { %13207 = vst [vmem:[#allocation60_spill] sm:$0xff] %v11258_v40  ;;  %v1175_v49 = vand.u32 4294901760, %v1174_v43  ;;  %v11286_v43 = vsub.f32 %v916_v2, %v11263_v12 }
 0x18d   :  { %13206 = vst [vmem:[#allocation59_spill] sm:$0xff] %v11251_v4  ;;  %v1165_v30 = vand.u32 4294901760, %v1164_v55  ;;  %v75_v55 = vld [vmem:[%s12750_s0 + $0xd8] sm:$0xff]  ;;  %v13216_v2 = vand.u32 4294901760, %v11251_v4 }
 0x18e   :  { %7496 = vmatmul.mubr.f32.gmra.mrb[10].mxu1 %v1125_v0  ;;  %v919_v0 = vsel %vm102_vm0, %v72_v54, 0  ;;  %v1184_v54 = vsub.f32 %v11216_v53, %v12861_v16  ;;  %13212 = vst [vmem:[#allocation64_spill] sm:$0xff] %v11286_v43 }
 0x18f   :  { %7498 = vmatprep.mubr.f32.mxu1 %v1135_v9  ;;  %v11261_v9 = vsub.f32 %v913_v13, %v11239_v51  ;;  %v11272_v36 = vand.u32 4294901760, %v919_v0  ;;  %v13211_v13 = vand.u32 4294901760, %v11224_v47  ;;  %v1214_v16 = vsub.f32 %v11251_v4, %v13216_v2 }
 0x190   :  { %v13222_v4 = vand.u32 4294901760, %v11286_v43 }
 0x191   :  { %13208 = vst [vmem:[#allocation61_spill] sm:$0xff] %v11261_v9  ;;  %13210 = vst [vmem:[#allocation63_spill] sm:$0xff] %v11272_v36  ;;  %v1194_v18 = vsub.f32 %v11224_v47, %v13211_v13  ;;  %v1185_v13 = vand.u32 4294901760, %v1184_v54  ;;  %v11295_v41 = vsub.f32 %v919_v0, %v11272_v36  ;;  %v11297_v47 = vand.u32 4294901760, %v922_v27 }
 0x192   :  { %7499 = vmatmul.mubr.f32.gmra.mrb[12].mxu1 %v1145_v34  ;;  %v925_v34 = vsel %vm102_vm0, %v74_v48, 0  ;;  %v1204_v48 = vsub.f32 %v11243_v25, %v13213_v28  ;;  %v77_v28 = vld [vmem:[%s12750_s0 + $0xe8] sm:$0xff]  ;;  %v13218_v0 = vand.u32 4294901760, %v11258_v40 }
 0x193   :  { %7501 = vmatprep.mubr.f32.mxu1 %v1155_v38  ;;  %v76_v38 = vld [vmem:[%s12750_s0 + $0xe0] sm:$0xff]  ;;  %13214 = vst [vmem:[#allocation65_spill] sm:$0xff] %v11295_v41  ;;  %13215 = vst [vmem:[#allocation66_spill] sm:$0xff] %v11297_v47  ;;  %v1195_v33 = vand.u32 4294901760, %v1194_v18  ;;  %v11302_v53 = vand.u32 4294901760, %v925_v34  ;;  %v13219_v18 = vand.u32 4294901760, %v11261_v9  ;;  %v11321_v1 = vsub.f32 %v922_v27, %v11297_v47 }
 0x194   :  { %v931_v54 = vsel %vm102_vm0, %v76_v38, 0  ;;  %v1224_v25 = vsub.f32 %v11258_v40, %v13218_v0  ;;  %v1205_v38 = vand.u32 4294901760, %v1204_v48  ;;  %v1215_v0 = vand.u32 4294901760, %v1214_v16 }
 0x195   :  { %13217 = vst [vmem:[#allocation67_spill] sm:$0xff] %v11302_v53  ;;  %v11326_v40 = vsub.f32 %v925_v34, %v11302_v53  ;;  %v934_v2 = vsel %vm102_vm0, %v77_v28, 0  ;;  %v13223_v16 = vand.u32 4294901760, %v11295_v41  ;;  %v12886_v32 = vand.u32 4294901760, %v11321_v1 }
 0x196   :  { %7502 = vmatmul.mubr.f32.gmra.mrb[14].mxu1 %v1165_v30  ;;  %v928_v30 = vsel %vm102_vm0, %v75_v55, 0  ;;  %v78_v55 = vld [vmem:[%s12750_s0 + $0xf0] sm:$0xff]  ;;  %v1225_v48 = vand.u32 4294901760, %v1224_v25 }
 0x197   :  { %7504 = vmatprep.mubr.f32.mxu1 %v1175_v49  ;;  %v1234_v49 = vsub.f32 %v11261_v9, %v13219_v18  ;;  %v11323_v57 = vand.u32 4294901760, %v928_v30  ;;  %v11328_v18 = vand.u32 4294901760, %v931_v54  ;;  %v937_v9 = vsel %vm102_vm0, %v78_v55, 0 }
 0x198   :  { %v1254_v34 = vsub.f32 %v11295_v41, %v13223_v16  ;;  %v11345_v55 = vand.u32 4294901760, %v934_v2  ;;  %v12887_v25 = vand.u32 4294901760, %v11326_v40  ;;  %v11351_v61 = vand.u32 4294901760, %v937_v9 }
 0x199   :  { %13220 = vst [vmem:[#allocation68_spill] sm:$0xff] %v11323_v57  ;;  %13221 = vst [vmem:[#allocation69_spill] sm:$0xff] %v11328_v18  ;;  %v1235_v27 = vand.u32 4294901760, %v1234_v49  ;;  %v11343_v28 = vsub.f32 %v928_v30, %v11323_v57  ;;  %v11349_v49 = vsub.f32 %v931_v54, %v11328_v18  ;;  %v1264_v16 = vsub.f32 %v11321_v1, %v12886_v32 }
 0x19a   :  { %7505 = vmatmul.mubr.f32.gmra.mrb[16].mxu1 %v1185_v13  ;;  %v79_v13 = vld [vmem:[%s12750_s0 + $0xf8] sm:$0xff]  ;;  %13225 = vst [vmem:[#allocation71_spill] sm:$0xff] %v11345_v55  ;;  %13226 = vst [vmem:[#allocation72_spill] sm:$0xff] %v11351_v61  ;;  %v11359_v41 = vsub.f32 %v934_v2, %v11345_v55  ;;  %v1255_v54 = vand.u32 4294901760, %v1254_v34  ;;  %s11424_s0 = sld [smem:[#allocation2 + $0x1]] }
 0x19b   :  { %7507 = vmatprep.mubr.f32.mxu1 %v1195_v33  ;;  %v1244_v33 = vsub.f32 %v11286_v43, %v13222_v4  ;;  %13224 = vst [vmem:[#allocation70_spill] sm:$0xff] %v11343_v28  ;;  %v940_v4 = vsel %vm102_vm0, %v79_v13, 0  ;;  %v12888_v30 = vand.u32 4294901760, %v11343_v28  ;;  %v1274_v43 = vsub.f32 %v11326_v40, %v12887_v25 }
 0x19c   :  { %v12894_v13 = vand.u32 4294901760, %v11349_v49  ;;  %v12893_v32 = vand.u32 4294901760, %v11359_v41 }
 0x19d   :  { %v1284_v2 = vsub.f32 %v11343_v28, %v12888_v30  ;;  %v1275_v34 = vand.u32 4294901760, %v1274_v43 }
 0x19e   :  { %7508 = vmatmul.mubr.f32.gmra.mrb[18].mxu1 %v1205_v38  ;;  %v1245_v38 = vand.u32 4294901760, %v1244_v33  ;;  %v1265_v33 = vand.u32 4294901760, %v1264_v16  ;;  %v1294_v25 = vsub.f32 %v11349_v49, %v12894_v13  ;;  %v1304_v16 = vsub.f32 %v11359_v41, %v12893_v32 }
 0x19f   :  { %7510 = vmatprep.mubr.f32.mxu1 %v1215_v0  ;;  %v11361_v0 = vand.u32 4294901760, %v940_v4 }
 0x1a0   :  { %v1295_v28 = vand.u32 4294901760, %v1294_v25  ;;  %s4339_s20 = ssub.f32 1.0, %s11424_s0 }
 0x1a1   :  { %13227 = vst [vmem:[#allocation73_spill] sm:$0xff] %v11361_v0  ;;  %s4256_s8 = ssub.f32 0.0, %s11424_s0 }
 0x1a2   :  { %7511 = vmatmul.mubr.f32.gmra.mrb[20].mxu1 %v1225_v48  ;;  %v11368_v48 = vsub.f32 %v937_v9, %v11351_v61  ;;  %s4340_s21 = ssub.f32 0.0, %s4339_s20 }
 0x1a3   :  { %7513 = vmatprep.mubr.f32.mxu1 %v1235_v27  ;;  %v11375_v27 = vsub.f32 %v940_v4, %v11361_v0  ;;  %v1305_v4 = vand.u32 4294901760, %v1304_v16 }
 0x1a4   :  { %13228 = vst [vmem:[#allocation74_spill] sm:$0xff] %v11368_v48  ;;  %v12892_v9 = vand.u32 4294901760, %v11368_v48 }
 0x1a5   :  { %v12891_v30 = vand.u32 4294901760, %v11375_v27 }
 0x1a6   :  { %7514 = vmatmul.mubr.f32.gmra.mrb[22].mxu1 %v1245_v38  ;;  %v1285_v38 = vand.u32 4294901760, %v1284_v2  ;;  %v1314_v43 = vsub.f32 %v11368_v48, %v12892_v9  ;;  %v11444_v9 = vstv %s4340_s21 }
 0x1a7   :  { %7516 = vmatprep.mubr.f32.mxu1 %v1255_v54  ;;  %v1324_v54 = vsub.f32 %v11375_v27, %v12891_v30 }
 0x1a9   :  { %v1325_v2 = vand.u32 4294901760, %v1324_v54 }
 0x1aa   :  { %7517 = vmatmul.mubr.f32.gmra.mrb[24].mxu1 %v1265_v33  ;;  %v1315_v33 = vand.u32 4294901760, %v1314_v43 }
 0x1ab   :  { %7519 = vmatprep.mubr.f32.mxu1 %v1275_v34 }
 0x1ae   :  { %7520 = vmatmul.mubr.f32.gmra.mrb[26].mxu1 %v1285_v38 }
 0x1af   :  { %7522 = vmatprep.mubr.f32.mxu1 %v1295_v28 }
 0x1b2   :  { %7523 = vmatmul.mubr.f32.gmra.mrb[28].mxu1 %v1305_v4 }
 0x1b3   :  { %7525 = vmatprep.mubr.f32.mxu1 %v1315_v33 }
 0x1b6   :  { %7526 = vmatmul.mubr.f32.gmra.mrb[30].mxu1 %v1325_v2 }
 0x1b7   :  { %7536 = vmatprep.mubr.f32.mxu1 %v10869_v60 }
 0x1ba   :  { %7537 = vmatmul.mubr.f32.vlgmr.msra.gmra.mrb[0].mxu1 %v10949_v46 }
 0x1bb   :  { %8691 = vmatpush3.bf16.msra.mxu1 %v11055_v62  ;;  %7539 = vmatprep.mubr.f32.mxu1 %v10951_v3 }
 0x1bc   :  { %8693 = vmatprep.subr.bf16.mxu1 %v11080_v22 }
 0x1be   :  { %7540 = vmatmul.mubr.f32.gmra.mrb[2].mxu1 %v10956_v11 }
 0x1bf   :  { %8695 = vmatpush3.bf16.msra.mxu1 %v11080_v22  ;;  %7542 = vmatprep.mubr.f32.mxu1 %v10971_v59  ;;  %v13243_v59 = vld [vmem:[#allocation60_spill] sm:$0xff] }
 0x1c0   :  { %8697 = vmatprep.subr.bf16.mxu1 %v11044_v44 }
 0x1c2   :  { %7543 = vmatmul.mubr.f32.gmra.mrb[4].mxu1 %v10977_v17 }
 0x1c3   :  { %7545 = vmatprep.mubr.f32.mxu1 %v11020_v7 }
 0x1c6   :  { %7546 = vmatmul.mubr.f32.gmra.mrb[6].mxu1 %v11039_v21 }
 0x1c7   :  { %7548 = vmatprep.mubr.f32.mxu1 %v11062_v10  ;;  %v13238_v10 = vld [vmem:[#allocation50_spill] sm:$0xff] }
 0x1ca   :  { %7549 = vmatmul.mubr.f32.gmra.mrb[8].mxu1 %v11071_v29  ;;  %v13237_v29 = vld [vmem:[#allocation48_spill] sm:$0xff] }
 0x1cb   :  { %7551 = vmatprep.mubr.f32.mxu1 %v11073_v45 }
 0x1ce   :  { %7552 = vmatmul.mubr.f32.gmra.mrb[10].mxu1 %v11103_v37  ;;  %v13236_v37 = vld [vmem:[#allocation45_spill] sm:$0xff] }
 0x1cf   :  { %7554 = vmatprep.mubr.f32.mxu1 %v11119_v63 }
 0x1d2   :  { %7555 = vmatmul.mubr.f32.gmra.mrb[12].mxu1 %v11127_v39  ;;  %v13235_v39 = vld [vmem:[#allocation44_spill] sm:$0xff] }
 0x1d3   :  { %7557 = vmatprep.mubr.f32.mxu1 %v11129_v31 }
 0x1d6   :  { %7558 = vmatmul.mubr.f32.gmra.mrb[14].mxu1 %v11160_v15 }
 0x1d7   :  { %7560 = vmatprep.mubr.f32.mxu1 %v11172_v56 }
 0x1da   :  { %7561 = vmatmul.mubr.f32.gmra.mrb[16].mxu1 %v11190_v23  ;;  %v13234_v23 = vld [vmem:[#allocation43_spill] sm:$0xff] }
 0x1db   :  { %7563 = vmatprep.mubr.f32.mxu1 %v11198_v20 }
 0x1dd   :  { %v8122_v62 = vpop.f32.mrb[4].mxu0 }
 0x1de   :  { %7564 = vmatmul.mubr.f32.gmra.mrb[18].mxu1 %v11218_v26  ;;  %v6612_v22 = vmul.f32 -1.442695, %v8122_v62  ;;  %v4066_v28 = vpop.f32.mrb[5].mxu0  ;;  %v13233_v26 = vld [vmem:[#allocation40_spill] sm:$0xff] }
 0x1df   :  { %7566 = vmatprep.mubr.f32.mxu1 %v11226_v14  ;;  %v6611_v25 = vmul.f32 -1.442695, %v4066_v28 }
 0x1e0   :  { %9653 = vpow2.f32 %v6612_v22 }
 0x1e1   :  { %9655 = vpow2.f32 %v6611_v25  ;;  %v8125_v34 = vpop.f32.mrb[6].mxu0 }
 0x1e2   :  { %7567 = vmatmul.mubr.f32.gmra.mrb[20].mxu1 %v11237_v5  ;;  %v6614_v38 = vmul.f32 -1.442695, %v8125_v34  ;;  %v4078_v16 = vpop.f32.mrb[7].mxu0 }
 0x1e3   :  { %7569 = vmatprep.mubr.f32.mxu1 %v11239_v51  ;;  %v6613_v43 = vmul.f32 -1.442695, %v4078_v16 }
 0x1e4   :  { %9657 = vpow2.f32 %v6614_v38 }
 0x1e5   :  { %9659 = vpow2.f32 %v6613_v43  ;;  %v8128_v4 = vpop.f32.mrb[8].mxu0 }
 0x1e6   :  { %7570 = vmatmul.mubr.f32.gmra.mrb[22].mxu1 %v11263_v12  ;;  %v6616_v54 = vmul.f32 -1.442695, %v8128_v4  ;;  %v4090_v33 = vpop.f32.mrb[9].mxu0 }
 0x1e7   :  { %7572 = vmatprep.mubr.f32.mxu1 %v11272_v36  ;;  %v6615_v2 = vmul.f32 -1.442695, %v4090_v33 }
 0x1e8   :  { %9661 = vpow2.f32 %v6616_v54 }
 0x1e9   :  { %9663 = vpow2.f32 %v6615_v2  ;;  %v8131_v62 = vpop.f32.mrb[10].mxu0 }
 0x1ea   :  { %7573 = vmatmul.mubr.f32.gmra.mrb[24].mxu1 %v11297_v47  ;;  %v9654_v22 = vpop.eup %9653  ;;  %v6618_v28 = vmul.f32 -1.442695, %v8131_v62  ;;  %v4102_v25 = vpop.f32.mrb[11].mxu0 }
 0x1eb   :  { %7575 = vmatprep.mubr.f32.mxu1 %v11302_v53  ;;  %v9656_v34 = vpop.eup %9655  ;;  %v4209_v38 = vadd.f32 1.0, %v9654_v22  ;;  %v6617_v43 = vmul.f32 -1.442695, %v4102_v25 }
 0x1ec   :  { %v4208_v16 = vadd.f32 1.0, %v9656_v34  ;;  %9665 = vpow2.f32 %v6618_v28 }
 0x1ed   :  { %9667 = vrcp.f32 %v4209_v38  ;;  %v8134_v4 = vpop.f32.mrb[12].mxu0 }
 0x1ee   :  { %7576 = vmatmul.mubr.f32.gmra.mrb[26].mxu1 %v11323_v57  ;;  %v9658_v54 = vpop.eup %9657  ;;  %9669 = vrcp.f32 %v4208_v16  ;;  %v4114_v33 = vpop.f32.mrb[13].mxu0  ;;  %v6620_v30 = vmul.f32 -1.442695, %v8134_v4 }
 0x1ef   :  { %7578 = vmatprep.mubr.f32.mxu1 %v11328_v18  ;;  %v9660_v2 = vpop.eup %9659  ;;  %v4211_v62 = vadd.f32 1.0, %v9658_v54  ;;  %9671 = vpow2.f32 %v6617_v43  ;;  %v6619_v34 = vmul.f32 -1.442695, %v4114_v33  ;;  %v13229_v18 = vld [vmem:[#allocation37_spill] sm:$0xff] }
 0x1f0   :  { %v4210_v22 = vadd.f32 1.0, %v9660_v2  ;;  %v11441_v2 = vstv %s4256_s8 }
 0x1f1   :  { %9673 = vrcp.f32 %v4211_v62  ;;  %v8137_v25 = vpop.f32.mrb[14].mxu0 }
 0x1f2   :  { %7579 = vmatmul.mubr.f32.gmra.mrb[28].mxu1 %v11345_v55  ;;  %v9662_v28 = vpop.eup %9661  ;;  %9675 = vrcp.f32 %v4210_v22  ;;  %v6622_v4 = vmul.f32 -1.442695, %v8137_v25  ;;  %v4126_v54 = vpop.f32.mrb[15].mxu0 }
 0x1f3   :  { %7581 = vmatprep.mubr.f32.mxu1 %v11351_v61  ;;  %v9664_v38 = vpop.eup %9663  ;;  %v4213_v16 = vadd.f32 1.0, %v9662_v28  ;;  %9677 = vpow2.f32 %v6620_v30  ;;  %v6621_v33 = vmul.f32 -1.442695, %v4126_v54 }
 0x1f4   :  { %v4212_v43 = vadd.f32 1.0, %v9664_v38  ;;  %9679 = vpow2.f32 %v6619_v34 }
 0x1f5   :  { %9681 = vrcp.f32 %v4213_v16  ;;  %v8140_v62 = vpop.f32.mrb[16].mxu0 }
 0x1f6   :  { %7582 = vmatmul.mubr.f32.gmra.mrb[30].mxu1 %v11361_v0  ;;  %v9666_v22 = vpop.eup %9665  ;;  %9683 = vrcp.f32 %v4212_v43  ;;  %v6624_v30 = vmul.f32 -1.442695, %v8140_v62  ;;  %v4138_v28 = vpop.f32.mrb[17].mxu0 }
 0x1f7   :  { %7592 = vmatprep.mubr.f32.mxu1 %v10875_v58  ;;  %v9668_v25 = vpop.eup %9667  ;;  %v4215_v38 = vadd.f32 1.0, %v9666_v22  ;;  %9685 = vpow2.f32 %v6622_v4  ;;  %v6623_v34 = vmul.f32 -1.442695, %v4138_v28 }
 0x1f8   :  { %v9670_v54 = vpop.eup %9669  ;;  %v4259_v32 = vmul.f32 %v9668_v25, %v11441_v2  ;;  %v4342_v13 = vsub.f32 1.0, %v9668_v25  ;;  %9687 = vpow2.f32 %v6621_v33 }
 0x1f9   :  { %v4258_v16 = vmul.f32 %v9670_v54, %v11441_v2  ;;  %v4341_v43 = vsub.f32 1.0, %v9670_v54  ;;  %9689 = vrcp.f32 %v4215_v38  ;;  %v11450_v62 = vpop.f32.mrb[18].mxu0  ;;  %v9672_v0 = vpop.eup %9671 }
 0x1fa   :  { %7593 = vmatmul.mubr.f32.vlgmr.msra.gmra.mrb[0].mxu1 %v10959_v6  ;;  %v4276_v61 = vmul.f32 1.442695, %v4259_v32  ;;  %v4359_v4 = vmul.f32 %v11444_v9, %v4342_v13  ;;  %9691 = vpow2.f32 %v6624_v30  ;;  %v11453_v22 = vpop.f32.mrb[19].mxu0  ;;  %v13230_v32 = vld [vmem:[#allocation34_spill] sm:$0xff] }
 0x1fb   :  { %8699 = vmatpush3.bf16.msra.mxu1 %v11044_v44  ;;  %7595 = vmatprep.mubr.f32.mxu1 %v10966_v52  ;;  %v9674_v28 = vpop.eup %9673  ;;  %v4274_v55 = vmul.f32 1.442695, %v4258_v16  ;;  %v4358_v25 = vmul.f32 %v11444_v9, %v4341_v43  ;;  %9693 = vpow2.f32 %v6623_v34 }
 0x1fc   :  { %8701 = vmatprep.subr.bf16.mxu1 %v11067_v24  ;;  %v9676_v33 = vpop.eup %9675  ;;  %9695 = vpow2.f32 %v4276_v61  ;;  %v4376_v54 = vmul.f32 1.442695, %v4359_v4  ;;  %v4261_v38 = vmul.f32 %v9674_v28, %v11441_v2  ;;  %v4344_v57 = vsub.f32 1.0, %v9674_v28  ;;  %v13231_v28 = vld [vmem:[#allocation6_spill] sm:$0xff] }
 0x1fd   :  { %v9678_v53 = vpop.eup %9677  ;;  %9697 = vpow2.f32 %v4274_v55  ;;  %v4374_v13 = vmul.f32 1.442695, %v4358_v25  ;;  %v4260_v30 = vmul.f32 %v9676_v33, %v11441_v2  ;;  %v4343_v47 = vsub.f32 1.0, %v9676_v33  ;;  %v13232_v33 = vld [vmem:[#allocation8_spill] sm:$0xff] }
 0x1fe   :  { %7596 = vmatmul.mubr.f32.gmra.mrb[2].mxu1 %v10969_v42  ;;  %v9680_v16 = vpop.eup %9679  ;;  %9699 = vpow2.f32 %v4376_v54  ;;  %v4280_v43 = vmul.f32 1.442695, %v4261_v38  ;;  %v4361_v34 = vmul.f32 %v11444_v9, %v4344_v57 }
 0x1ff   :  { %8703 = vmatpush3.bf16.msra.mxu1 %v11067_v24  ;;  %7598 = vmatprep.mubr.f32.mxu1 %v10980_v8  ;;  %v9682_v36 = vpop.eup %9681  ;;  %9701 = vpow2.f32 %v4374_v13  ;;  %v4278_v61 = vmul.f32 1.442695, %v4260_v30  ;;  %v4360_v4 = vmul.f32 %v11444_v9, %v4343_v47  ;;  %v4216_v15 = vadd.f32 1.0, %v9680_v16  ;;  %v13245_v24 = vld [vmem:[#allocation64_spill] sm:$0xff] }
 0x200   :  { %8705 = vmatprep.subr.bf16.mxu1 %v11069_v19  ;;  %v9684_v12 = vpop.eup %9683  ;;  %9703 = vpow2.f32 %v4280_v43  ;;  %v4380_v51 = vmul.f32 1.442695, %v4361_v34  ;;  %v4263_v55 = vmul.f32 %v9682_v36, %v11441_v2  ;;  %v4346_v25 = vsub.f32 1.0, %v9682_v36 }
 0x201   :  { %v9686_v5 = vpop.eup %9685  ;;  %9705 = vpow2.f32 %v4278_v61  ;;  %v4378_v54 = vmul.f32 1.442695, %v4360_v4  ;;  %v4262_v57 = vmul.f32 %v9684_v12, %v11441_v2  ;;  %v4345_v38 = vsub.f32 1.0, %v9684_v12 }
 0x202   :  { %7599 = vmatmul.mubr.f32.gmra.mrb[4].mxu1 %v11006_v35  ;;  %v9688_v13 = vpop.eup %9687  ;;  %9707 = vpow2.f32 %v4380_v51  ;;  %v4284_v47 = vmul.f32 1.442695, %v4263_v55  ;;  %v4363_v30 = vmul.f32 %v11444_v9, %v4346_v25  ;;  %v11472_v51 = vstv %s11424_s0 }
 0x203   :  { %7601 = vmatprep.mubr.f32.mxu1 %v11051_v50  ;;  %v9690_v14 = vpop.eup %9689  ;;  %9709 = vpow2.f32 %v4378_v54  ;;  %v4282_v43 = vmul.f32 1.442695, %v4262_v57  ;;  %v4362_v36 = vmul.f32 %v11444_v9, %v4345_v38  ;;  %v4214_v25 = vadd.f32 1.0, %v9672_v0 }
 0x204   :  { %v9692_v34 = vpop.eup %9691  ;;  %9711 = vpow2.f32 %v4284_v47  ;;  %v4384_v61 = vmul.f32 1.442695, %v4363_v30  ;;  %v4265_v4 = vmul.f32 %v9690_v14, %v11441_v2  ;;  %v4348_v12 = vsub.f32 1.0, %v9690_v14 }
 0x205   :  { %v9694_v20 = vpop.eup %9693  ;;  %9713 = vpow2.f32 %v4282_v43  ;;  %v4382_v55 = vmul.f32 1.442695, %v4362_v36  ;;  %v11476_v57 = vstv %s4339_s20  ;;  %v4217_v14 = vadd.f32 1.0, %v9678_v53 }
 0x206   :  { %7602 = vmatmul.mubr.f32.gmra.mrb[6].mxu1 %v13229_v18  ;;  %v9696_v54 = vpop.eup %9695  ;;  %9715 = vpow2.f32 %v4384_v61  ;;  %v4288_v38 = vmul.f32 1.442695, %v4265_v4  ;;  %v4365_v47 = vmul.f32 %v11444_v9, %v4348_v12  ;;  %v6626_v0 = vmul.f32 -1.442695, %v11450_v62 }
 0x207   :  { %7604 = vmatprep.mubr.f32.mxu1 %v13230_v32  ;;  %v9698_v30 = vpop.eup %9697  ;;  %v4307_v56 = vsub.f32 1.0, %v9696_v54  ;;  %9717 = vpow2.f32 %v4382_v55  ;;  %v4219_v12 = vadd.f32 1.0, %v9686_v5  ;;  %v4218_v55 = vadd.f32 1.0, %v9688_v13 }
 0x208   :  { %v9700_v31 = vpop.eup %9699  ;;  %v4306_v63 = vsub.f32 1.0, %v9698_v30  ;;  %9719 = vpow2.f32 %v4288_v38  ;;  %v4388_v43 = vmul.f32 1.442695, %v4365_v47  ;;  %v4221_v62 = vadd.f32 1.0, %v9692_v34 }
 0x209   :  { %v9702_v36 = vpop.eup %9701  ;;  %v4324_v61 = vmul.f32 %v11472_v51, %v4307_v56  ;;  %v4407_v4 = vsub.f32 1.0, %v9700_v31  ;;  %9721 = vrcp.f32 %v4214_v25  ;;  %v4220_v5 = vadd.f32 1.0, %v9694_v20 }
 0x20a   :  { %7605 = vmatmul.mubr.f32.gmra.mrb[8].mxu1 %v13231_v28  ;;  %v9704_v54 = vpop.eup %9703  ;;  %v4323_v53 = vmul.f32 %v11472_v51, %v4306_v63  ;;  %v4406_v16 = vsub.f32 1.0, %v9702_v36  ;;  %9723 = vpow2.f32 %v4388_v43 }
 0x20b   :  { %7607 = vmatprep.mubr.f32.mxu1 %v13232_v33  ;;  %v9706_v45 = vpop.eup %9705  ;;  %v4424_v38 = vmul.f32 %v11476_v57, %v4407_v4  ;;  %v4309_v47 = vsub.f32 1.0, %v9704_v54  ;;  %9725 = vrcp.f32 %v4217_v14 }
 0x20c   :  { %v9708_v30 = vpop.eup %9707  ;;  %v4423_v56 = vmul.f32 %v11476_v57, %v4406_v16  ;;  %v4308_v31 = vsub.f32 1.0, %v9706_v45  ;;  %9727 = vrcp.f32 %v4216_v15  ;;  %v13239_v16 = vld [vmem:[#allocation52_spill] sm:$0xff] }
 0x20d   :  { %v9710_v25 = vpop.eup %9709  ;;  %v4440_v63 = vsub.f32 %v4324_v61, %v4424_v38  ;;  %v4326_v13 = vmul.f32 %v11472_v51, %v4309_v47  ;;  %v4409_v43 = vsub.f32 1.0, %v9708_v30  ;;  %9729 = vrcp.f32 %v4219_v12 }
 0x20e   :  { %7608 = vmatmul.mubr.f32.gmra.mrb[10].mxu1 %v13233_v26  ;;  %v9712_v36 = vpop.eup %9711  ;;  %v4439_v4 = vsub.f32 %v4323_v53, %v4423_v56  ;;  %v4325_v34 = vmul.f32 %v11472_v51, %v4308_v31  ;;  %v4408_v14 = vsub.f32 1.0, %v9710_v25  ;;  %9731 = vrcp.f32 %v4218_v55  ;;  %v13240_v53 = vld [vmem:[#allocation54_spill] sm:$0xff] }
 0x20f   :  { %7610 = vmatprep.mubr.f32.mxu1 %v13234_v23  ;;  %v9714_v54 = vpop.eup %9713  ;;  %v6628_v21 = vmul.f32 -1.442695, %v4440_v63  ;;  %v4426_v45 = vmul.f32 %v11476_v57, %v4409_v43  ;;  %v4311_v15 = vsub.f32 1.0, %v9712_v36  ;;  %9733 = vrcp.f32 %v4221_v62 }
 0x210   :  { %v9716_v20 = vpop.eup %9715  ;;  %v6627_v61 = vmul.f32 -1.442695, %v4439_v4  ;;  %v4425_v38 = vmul.f32 %v11476_v57, %v4408_v14  ;;  %v4310_v47 = vsub.f32 1.0, %v9714_v54  ;;  %9735 = vrcp.f32 %v4220_v5  ;;  %v13241_v54 = vld [vmem:[#allocation58_spill] sm:$0xff] }
 0x211   :  { %v9718_v12 = vpop.eup %9717  ;;  %9737 = vpow2.f32 %v6628_v21  ;;  %v4442_v30 = vsub.f32 %v4326_v13, %v4426_v45  ;;  %v4328_v55 = vmul.f32 %v11472_v51, %v4311_v15  ;;  %v4411_v56 = vsub.f32 1.0, %v9716_v20 }
 0x212   :  { %7611 = vmatmul.mubr.f32.gmra.mrb[12].mxu1 %v13235_v39  ;;  %v9720_v31 = vpop.eup %9719  ;;  %9739 = vpow2.f32 %v6627_v61  ;;  %v4441_v25 = vsub.f32 %v4325_v34, %v4425_v38  ;;  %v4327_v62 = vmul.f32 %v11472_v51, %v4310_v47  ;;  %v4410_v63 = vsub.f32 1.0, %v9718_v12  ;;  %v13242_v34 = vld [vmem:[#allocation59_spill] sm:$0xff] }
 0x213   :  { %7613 = vmatprep.mubr.f32.mxu1 %v13236_v37  ;;  %v9722_v43 = vpop.eup %9721  ;;  %v6630_v36 = vmul.f32 -1.442695, %v4442_v30  ;;  %v4428_v4 = vmul.f32 %v11476_v57, %v4411_v56  ;;  %v4313_v14 = vsub.f32 1.0, %v9720_v31  ;;  %9741 = vpow2.f32 %v6626_v0 }
 0x214   :  { %v9724_v5 = vpop.eup %9723  ;;  %v6629_v21 = vmul.f32 -1.442695, %v4441_v25  ;;  %v4427_v13 = vmul.f32 %v11476_v57, %v4410_v63  ;;  %v4264_v45 = vmul.f32 %v9722_v43, %v11441_v2  ;;  %v4347_v15 = vsub.f32 1.0, %v9722_v43 }
 0x215   :  { %v9726_v20 = vpop.eup %9725  ;;  %9743 = vpow2.f32 %v6630_v36  ;;  %v4444_v61 = vsub.f32 %v4328_v55, %v4428_v4  ;;  %v4330_v38 = vmul.f32 %v11472_v51, %v4313_v14  ;;  %v4413_v47 = vsub.f32 1.0, %v9724_v5 }
 0x216   :  { %7614 = vmatmul.mubr.f32.gmra.mrb[14].mxu1 %v13237_v29  ;;  %v9728_v12 = vpop.eup %9727  ;;  %9745 = vpow2.f32 %v6629_v21  ;;  %v4443_v0 = vsub.f32 %v4327_v62, %v4427_v13  ;;  %v4286_v30 = vmul.f32 1.442695, %v4264_v45  ;;  %v4364_v56 = vmul.f32 %v11444_v9, %v4347_v15  ;;  %v13244_v62 = vld [vmem:[#allocation61_spill] sm:$0xff] }
 0x217   :  { %7616 = vmatprep.mubr.f32.mxu1 %v13238_v10  ;;  %v9730_v31 = vpop.eup %9729  ;;  %v6632_v25 = vmul.f32 -1.442695, %v4444_v61  ;;  %v4430_v63 = vmul.f32 %v11476_v57, %v4413_v47  ;;  %v4267_v43 = vmul.f32 %v9726_v20, %v11441_v2  ;;  %v4350_v7 = vsub.f32 1.0, %v9726_v20 }
 0x218   :  { %v9732_v17 = vpop.eup %9731  ;;  %v6631_v55 = vmul.f32 -1.442695, %v4443_v0  ;;  %9747 = vpow2.f32 %v4286_v30  ;;  %v4386_v36 = vmul.f32 1.442695, %v4364_v56  ;;  %v4266_v4 = vmul.f32 %v9728_v12, %v11441_v2 }
 0x219   :  { %v9734_v14 = vpop.eup %9733  ;;  %9749 = vpow2.f32 %v6632_v25  ;;  %v4446_v5 = vsub.f32 %v4330_v38, %v4430_v63  ;;  %v4292_v21 = vmul.f32 1.442695, %v4267_v43  ;;  %v4367_v13 = vmul.f32 %v11444_v9, %v4350_v7  ;;  %v13246_v63 = vld [vmem:[#allocation65_spill] sm:$0xff] }
 0x21a   :  { %7617 = vmatmul.mubr.f32.gmra.mrb[16].mxu1 %v13239_v16  ;;  %v9736_v45 = vpop.eup %9735  ;;  %9751 = vpow2.f32 %v6631_v55  ;;  %v4290_v15 = vmul.f32 1.442695, %v4266_v4  ;;  %v4349_v20 = vsub.f32 1.0, %v9728_v12  ;;  %v4269_v61 = vmul.f32 %v9730_v31, %v11441_v2 }
 0x21b   :  { %7619 = vmatprep.mubr.f32.mxu1 %v13240_v53  ;;  %v9738_v47 = vpop.eup %9737  ;;  %v6634_v0 = vmul.f32 -1.442695, %v4446_v5  ;;  %9753 = vpow2.f32 %v4386_v36  ;;  %v4392_v30 = vmul.f32 1.442695, %v4367_v13  ;;  %v4352_v56 = vsub.f32 1.0, %v9730_v31 }
 0x21c   :  { %v9740_v11 = vpop.eup %9739  ;;  %9755 = vpow2.f32 %v4292_v21  ;;  %v4366_v38 = vmul.f32 %v11444_v9, %v4349_v20  ;;  %v4296_v7 = vmul.f32 1.442695, %v4269_v61  ;;  %v4268_v43 = vmul.f32 %v9732_v17, %v11441_v2 }
 0x21d   :  { %v9742_v25 = vpop.eup %9741  ;;  %9757 = vpow2.f32 %v6634_v0  ;;  %v4369_v12 = vmul.f32 %v11444_v9, %v4352_v56  ;;  %v4351_v36 = vsub.f32 1.0, %v9732_v17  ;;  %v4271_v31 = vmul.f32 %v9734_v14, %v11441_v2 }
 0x21e   :  { %7620 = vmatmul.mubr.f32.gmra.mrb[18].mxu1 %v13241_v54  ;;  %9759 = vpow2.f32 %v4392_v30  ;;  %v4390_v55 = vmul.f32 1.442695, %v4366_v38  ;;  %v4294_v21 = vmul.f32 1.442695, %v4268_v43  ;;  %v4354_v13 = vsub.f32 1.0, %v9734_v14 }
 0x21f   :  { %7622 = vmatprep.mubr.f32.mxu1 %v13242_v34  ;;  %v9744_v4 = vpop.eup %9743  ;;  %9761 = vpow2.f32 %v4290_v15  ;;  %v4396_v5 = vmul.f32 1.442695, %v4369_v12  ;;  %v4368_v61 = vmul.f32 %v11444_v9, %v4351_v36  ;;  %v4300_v0 = vmul.f32 1.442695, %v4271_v31  ;;  %v13247_v36 = vld [vmem:[#allocation70_spill] sm:$0xff] }
 0x220   :  { %v9746_v20 = vpop.eup %9745  ;;  %9763 = vpow2.f32 %v4390_v55  ;;  %v4371_v30 = vmul.f32 %v11444_v9, %v4354_v13  ;;  %v4270_v17 = vmul.f32 %v9736_v45, %v11441_v2  ;;  %v4353_v38 = vsub.f32 1.0, %v9736_v45 }
 0x221   :  { %9765 = vpow2.f32 %v4296_v7  ;;  %v4394_v15 = vmul.f32 1.442695, %v4368_v61  ;;  %v4223_v13 = vadd.f32 1.0, %v9742_v25 }
 0x222   :  { %7623 = vmatmul.mubr.f32.gmra.mrb[20].mxu1 %v13243_v59  ;;  %v9748_v56 = vpop.eup %9747  ;;  %9767 = vpow2.f32 %v4396_v5  ;;  %v4400_v43 = vmul.f32 1.442695, %v4371_v30  ;;  %v4298_v55 = vmul.f32 1.442695, %v4270_v17  ;;  %v4370_v7 = vmul.f32 %v11444_v9, %v4353_v38 }
 0x223   :  { %7625 = vmatprep.mubr.f32.mxu1 %v13244_v62  ;;  %v11521_v12 = vpop.eup %9749  ;;  %v4312_v14 = vsub.f32 1.0, %v9748_v56  ;;  %9769 = vpow2.f32 %v4294_v21  ;;  %v6625_v5 = vmul.f32 -1.442695, %v11453_v22  ;;  %v4503_v17 = vadd.f32 1.0, %v9740_v11 }
 0x224   :  { %v9752_v3 = vpop.eup %9751  ;;  %9771 = vpow2.f32 %v4394_v15  ;;  %v4398_v21 = vmul.f32 1.442695, %v4370_v7  ;;  %v4504_v38 = vadd.f32 1.0, %v9738_v47  ;;  %v4505_v22 = vadd.f32 1.0, %v9746_v20 }
 0x225   :  { %v9754_v31 = vpop.eup %9753  ;;  %9773 = vpow2.f32 %v4300_v0  ;;  %v4329_v61 = vmul.f32 %v11472_v51, %v4312_v14 }
 0x226   :  { %7626 = vmatmul.mubr.f32.gmra.mrb[22].mxu1 %v13245_v24  ;;  %v9756_v45 = vpop.eup %9755  ;;  %v4412_v56 = vsub.f32 1.0, %v9754_v31  ;;  %9775 = vpow2.f32 %v4400_v43 }
 0x227   :  { %7628 = vmatprep.mubr.f32.mxu1 %v13246_v63  ;;  %v11528_v30 = vpop.eup %9757  ;;  %v4315_v46 = vsub.f32 1.0, %v9756_v45  ;;  %9777 = vpow2.f32 %v4298_v55  ;;  %v4506_v45 = vadd.f32 1.0, %v9744_v4 }
 0x228   :  { %v9760_v15 = vpop.eup %9759  ;;  %v4429_v0 = vmul.f32 %v11476_v57, %v4412_v56  ;;  %9779 = vpow2.f32 %v4398_v21 }
 0x229   :  { %v9762_v25 = vpop.eup %9761  ;;  %v4332_v14 = vmul.f32 %v11472_v51, %v4315_v46  ;;  %v4415_v43 = vsub.f32 1.0, %v9760_v15  ;;  %9781 = vrcp.f32 %v4223_v13  ;;  %v13248_v13 = vand.u32 4294901760, %v10875_v58 }
 0x22a   :  { %7629 = vmatmul.mubr.f32.gmra.mrb[24].mxu1 %v11321_v1  ;;  %v9764_v7 = vpop.eup %9763  ;;  %v4445_v31 = vsub.f32 %v4329_v61, %v4429_v0  ;;  %v4314_v11 = vsub.f32 1.0, %v9762_v25  ;;  %9783 = vpow2.f32 %v6625_v5  ;;  %v4507_v0 = vadd.f32 1.0, %v9752_v3 }
 0x22b   :  { %7631 = vmatprep.mubr.f32.mxu1 %v11326_v40  ;;  %v9766_v55 = vpop.eup %9765  ;;  %v4432_v60 = vmul.f32 %v11476_v57, %v4415_v43  ;;  %v4414_v47 = vsub.f32 1.0, %v9764_v7  ;;  %9785 = vrcp.f32 %v4503_v17  ;;  %v13249_v58 = vand.u32 4294901760, %v10959_v6 }
 0x22c   :  { %v9768_v56 = vpop.eup %9767  ;;  %v6633_v21 = vmul.f32 -1.442695, %v4445_v31  ;;  %v4331_v20 = vmul.f32 %v11472_v51, %v4314_v11  ;;  %9787 = vrcp.f32 %v4504_v38  ;;  %v13250_v3 = vand.u32 4294901760, %v10966_v52 }
 0x22d   :  { %v9770_v46 = vpop.eup %9769  ;;  %v4448_v61 = vsub.f32 %v4332_v14, %v4432_v60  ;;  %v4431_v5 = vmul.f32 %v11476_v57, %v4414_v47  ;;  %v4417_v4 = vsub.f32 1.0, %v9768_v56  ;;  %9789 = vrcp.f32 %v4505_v22 }
 0x22e   :  { %7632 = vmatmul.mubr.f32.gmra.mrb[26].mxu1 %v13247_v36  ;;  %v9772_v15 = vpop.eup %9771  ;;  %9791 = vpow2.f32 %v6633_v21  ;;  %v4316_v25 = vsub.f32 1.0, %v9770_v46 }
 0x22f   :  { %7634 = vmatprep.mubr.f32.mxu1 %v11349_v49  ;;  %v9774_v43 = vpop.eup %9773  ;;  %v6636_v7 = vmul.f32 -1.442695, %v4448_v61  ;;  %v4447_v31 = vsub.f32 %v4331_v20, %v4431_v5  ;;  %v4434_v38 = vmul.f32 %v11476_v57, %v4417_v4  ;;  %v4416_v11 = vsub.f32 1.0, %v9772_v15  ;;  %v13251_v20 = vld [vmem:[#allocation39_spill] sm:$0xff] }
 0x230   :  { %v4333_v60 = vmul.f32 %v11472_v51, %v4316_v25  ;;  %v4319_v14 = vsub.f32 1.0, %v9774_v43  ;;  %9793 = vrcp.f32 %v4506_v45  ;;  %v13252_v4 = vand.u32 4294901760, %v10969_v42 }
 0x231   :  { %9795 = vpow2.f32 %v6636_v7  ;;  %v4433_v56 = vmul.f32 %v11476_v57, %v4416_v11 }
 0x232   :  { %7635 = vmatmul.mubr.f32.gmra.mrb[28].mxu1 %v11359_v41  ;;  %v4336_v6 = vmul.f32 %v11472_v51, %v4319_v14  ;;  %9797 = vrcp.f32 %v4507_v0  ;;  %v13253_v0 = vand.u32 4294901760, %v10980_v8  ;;  %v13254_v14 = vld [vmem:[#allocation9_spill] sm:$0xff] }
 0x233   :  { %7637 = vmatprep.mubr.f32.mxu1 %v11368_v48  ;;  %v4317_v48 = vsub.f32 1.0, %v9766_v55  ;;  %v9776_v55 = vpop.eup %9775 }
 0x234   :  { %v9778_v22 = vpop.eup %9777  ;;  %v4419_v46 = vsub.f32 1.0, %v9776_v55 }
 0x235   :  { %v4334_v17 = vmul.f32 %v11472_v51, %v4317_v48  ;;  %v6635_v48 = vmul.f32 -1.442695, %v4447_v31  ;;  %v9780_v21 = vpop.eup %9779 }
 0x236   :  { %7638 = vmatmul.mubr.f32.gmra.mrb[30].mxu1 %v11375_v27  ;;  %v9782_v45 = vpop.eup %9781  ;;  %v4418_v5 = vsub.f32 1.0, %v9780_v21  ;;  %v4436_v15 = vmul.f32 %v11476_v57, %v4419_v46  ;;  %v13256_v21 = vand.u32 4294901760, %v11006_v35  ;;  %v9914_v35 = vld [vmem:[%s12757_s7 + $0x8] sm:$0xff] }
 0x237   :  { %7648 = vmatprep.mubr.f32.mxu1 %v13248_v13  ;;  %v4450_v47 = vsub.f32 %v4334_v17, %v4434_v38  ;;  %v4318_v13 = vsub.f32 1.0, %v9778_v22  ;;  %9799 = vpow2.f32 %v6635_v48  ;;  %v9784_v52 = vpop.eup %9783  ;;  %v4273_v25 = vmul.f32 %v9782_v45, %v11441_v2 }
 0x238   :  { %v4356_v43 = vsub.f32 1.0, %v9782_v45  ;;  %v9786_v7 = vpop.eup %9785  ;;  %v4435_v38 = vmul.f32 %v11476_v57, %v4418_v5  ;;  %v4222_v11 = vadd.f32 1.0, %v9784_v52  ;;  %v4452_v55 = vsub.f32 %v4336_v6, %v4436_v15  ;;  %v9913_v6 = vld [vmem:[%s12757_s7] sm:$0xff] }
 0x239   :  { %v6638_v61 = vmul.f32 -1.442695, %v4450_v47  ;;  %v4335_v17 = vmul.f32 %v11472_v51, %v4318_v13  ;;  %v9788_v42 = vpop.eup %9787  ;;  %v4551_v22 = vmul.f32 %v9786_v7, %v13254_v14  ;;  %v13255_v47 = vld [vmem:[#allocation10_spill] sm:$0xff]  ;;  %v13257_v45 = vand.u32 4294901760, %v11051_v50 }
 0x23a   :  { %7649 = vmatmul.mubr.f32.vlgmr.msra.gmra.mrb[0].mxu1 %v13249_v58  ;;  %v4304_v58 = vmul.f32 1.442695, %v4273_v25  ;;  %v4552_v8 = vmul.f32 %v9788_v42, %v13255_v47  ;;  %v4510_v7 = vadd.f32 1.0, %v11528_v30  ;;  %v13261_v30 = vand.u32 4294901760, %v13230_v32 }
 0x23b   :  { %8707 = vmatpush3.bf16.msra.mxu1 %v11069_v19  ;;  %7651 = vmatprep.mubr.f32.mxu1 %v13250_v3  ;;  %v4449_v19 = vsub.f32 %v4333_v60, %v4433_v56  ;;  %9801 = vpow2.f32 %v6638_v61  ;;  %v4373_v60 = vmul.f32 %v11444_v9, %v4356_v43  ;;  %v9790_v3 = vpop.eup %9789  ;;  %v4451_v48 = vsub.f32 %v4335_v17, %v4435_v38  ;;  %v13258_v17 = vld [vmem:[#allocation11_spill] sm:$0xff] }
 0x23c   :  { %8709 = vmatprep.subr.bf16.mxu1 %v13251_v20  ;;  %v9792_v56 = vpop.eup %9791  ;;  %v4567_v13 = vadd.f32 %v9913_v6, %v4551_v22  ;;  %v4508_v61 = vadd.f32 1.0, %v11521_v12  ;;  %v4568_v5 = vadd.f32 %v9914_v35, %v4552_v8  ;;  %v4553_v25 = vmul.f32 %v9790_v3, %v13258_v17  ;;  %v13263_v6 = vld [vmem:[#allocation13_spill] sm:$0xff] }
 0x23d   :  { %v6637_v31 = vmul.f32 -1.442695, %v4449_v19  ;;  %v4404_v46 = vmul.f32 1.442695, %v4373_v60  ;;  %v6639_v19 = vmul.f32 -1.442695, %v4451_v48  ;;  %v9794_v52 = vpop.eup %9793 }
 0x23e   :  { %7652 = vmatmul.mubr.f32.gmra.mrb[2].mxu1 %v13252_v4  ;;  %v4509_v4 = vadd.f32 1.0, %v9792_v56  ;;  %v4590_v15 = vand.u32 4294901760, %v4567_v13  ;;  %v9796_v43 = vpop.eup %9795  ;;  %v4593_v50 = vand.u32 4294901760, %v4568_v5  ;;  %v13260_v38 = vand.u32 4294901760, %v13229_v18  ;;  %v9916_v18 = vld [vmem:[%s12757_s7 + $0x18] sm:$0xff] }
 0x23f   :  { %8711 = vmatpush3.bf16.msra.mxu1 %v13251_v20  ;;  %7654 = vmatprep.mubr.f32.mxu1 %v13253_v0  ;;  %9803 = vpow2.f32 %v6637_v31  ;;  %v6640_v20 = vmul.f32 -1.442695, %v4452_v55  ;;  %v13259_v0 = vld [vmem:[#allocation12_spill] sm:$0xff]  ;;  %v9798_v31 = vpop.eup %9797  ;;  %v9915_v55 = vld [vmem:[%s12757_s7 + $0x10] sm:$0xff]  ;;  %v13266_v17 = vand.u32 4294901760, %v13233_v26 }
 0x240   :  { %8713 = vmatprep.subr.bf16.mxu1 %v11044_v44  ;;  %9805 = vpow2.f32 %v4304_v58  ;;  %v4554_v12 = vmul.f32 %v9794_v52, %v13259_v0  ;;  %v11580_v42 = vsub.f32 %v4567_v13, %v4590_v15  ;;  %v4569_v58 = vadd.f32 %v9915_v55, %v4553_v25 }
 0x241   :  { %9807 = vrcp.f32 %v4222_v11  ;;  %v4512_v11 = vadd.f32 1.0, %v9796_v43  ;;  %v9800_v60 = vpop.eup %9799  ;;  %v11587_v14 = vpack.c.bf16 %v4593_v50, %v4590_v15  ;;  %v11589_v22 = vsub.f32 %v4568_v5, %v4593_v50 }
 0x242   :  { %7655 = vmatmul.mubr.f32.gmra.mrb[4].mxu1 %v13256_v21  ;;  %9809 = vpow2.f32 %v6640_v20  ;;  %v4570_v3 = vadd.f32 %v9916_v18, %v4554_v12  ;;  %v4511_v48 = vadd.f32 1.0, %v9800_v60  ;;  %v4596_v47 = vand.u32 4294901760, %v4569_v58 }
 0x243   :  { %7657 = vmatprep.mubr.f32.mxu1 %v13257_v45  ;;  %9811 = vpow2.f32 %v6639_v19  ;;  %v11596_v56 = vpack.c.bf16 %v11589_v22, %v11580_v42  ;;  %v13262_v21 = vand.u32 4294901760, %v13231_v28  ;;  %v4555_v13 = vmul.f32 %v9798_v31, %v13263_v6 }
 0x244   :  { %9813 = vpow2.f32 %v4404_v46  ;;  %v4599_v32 = vand.u32 4294901760, %v4570_v3  ;;  %v11600_v46 = vsub.f32 %v4569_v58, %v4596_v47  ;;  %v13267_v12 = vand.u32 4294901760, %v13234_v23 }
 0x245   :  { %9815 = vrcp.f32 %v4508_v61  ;;  %v9802_v8 = vpop.eup %9801  ;;  %v13264_v61 = vand.u32 4294901760, %v13232_v33  ;;  %8977 = vmatprep.subr.bf16.mxu0 %v11596_v56  ;;  %v13268_v18 = vand.u32 4294901760, %v13235_v39  ;;  %v9918_v39 = vld [vmem:[%s12757_s7 + $0x28] sm:$0xff] }
 0x246   :  { %7658 = vmatmul.mubr.f32.gmra.mrb[6].mxu1 %v13260_v38  ;;  %9817 = vrcp.f32 %v4509_v4  ;;  %v4514_v20 = vadd.f32 1.0, %v9802_v8  ;;  %v11606_v19 = vpack.c.bf16 %v4599_v32, %v4596_v47  ;;  %v11608_v35 = vsub.f32 %v4570_v3, %v4599_v32  ;;  %8979 = vmatpush3.bf16.msra.mxu0 %v11596_v56  ;;  %v13269_v3 = vld [vmem:[#allocation14_spill] sm:$0xff] }
 0x247   :  { %7660 = vmatprep.mubr.f32.mxu1 %v13261_v30  ;;  %9819 = vrcp.f32 %v4510_v7  ;;  %v9917_v7 = vld [vmem:[%s12757_s7 + $0x20] sm:$0xff]  ;;  %v13270_v32 = vand.u32 4294901760, %v13236_v37  ;;  %v9919_v37 = vld [vmem:[%s12757_s7 + $0x30] sm:$0xff] }
 0x248   :  { %9821 = vrcp.f32 %v4511_v48  ;;  %13265 = vst [vmem:[#allocation37_spill] sm:$0xff] %v11606_v19  ;;  %v11613_v15 = vpack.c.bf16 %v11608_v35, %v11600_v46  ;;  %v4571_v50 = vadd.f32 %v9917_v7, %v4555_v13 }
 0x249   :  { %v9804_v45 = vpop.eup %9803  ;;  %9823 = vrcp.f32 %v4512_v11 }
 0x24a   :  { %7661 = vmatmul.mubr.f32.gmra.mrb[8].mxu1 %v13262_v21  ;;  %v9806_v5 = vpop.eup %9805  ;;  %v4513_v28 = vadd.f32 1.0, %v9804_v45  ;;  %9825 = vrcp.f32 %v4514_v20  ;;  %8981 = vmatprep.subr.bf16.mxu0 %v11613_v15  ;;  %v4602_v47 = vand.u32 4294901760, %v4571_v50  ;;  %v13271_v21 = vld [vmem:[#allocation15_spill] sm:$0xff]  ;;  %v13272_v45 = vld [vmem:[#allocation16_spill] sm:$0xff] }
 0x24b   :  { %7663 = vmatprep.mubr.f32.mxu1 %v13264_v61  ;;  %v9808_v52 = vpop.eup %9807  ;;  %v4321_v4 = vsub.f32 1.0, %v9806_v5  ;;  %8983 = vmatpush3.bf16.msra.mxu0 %v11613_v15 }
 0x24c   :  { %v9810_v33 = vpop.eup %9809  ;;  %v4272_v25 = vmul.f32 %v9808_v52, %v11441_v2  ;;  %v4355_v43 = vsub.f32 1.0, %v9808_v52  ;;  %9827 = vrcp.f32 %v4513_v28  ;;  %v11644_v7 = vsub.f32 %v4571_v50, %v4602_v47 }
 0x24d   :  { %v9812_v0 = vpop.eup %9811  ;;  %v4516_v31 = vadd.f32 1.0, %v9810_v33  ;;  %v4338_v58 = vmul.f32 %v11472_v51, %v4321_v4  ;;  %v13273_v4 = vld [vmem:[#allocation17_spill] sm:$0xff] }
 0x24e   :  { %7664 = vmatmul.mubr.f32.gmra.mrb[10].mxu1 %v13266_v17  ;;  %v9814_v38 = vpop.eup %9813  ;;  %v4515_v11 = vadd.f32 1.0, %v9812_v0  ;;  %v4302_v26 = vmul.f32 1.442695, %v4272_v25  ;;  %v4372_v55 = vmul.f32 %v11444_v9, %v4355_v43  ;;  %v13274_v25 = vand.u32 4294901760, %v13237_v29  ;;  %v9920_v0 = vld [vmem:[%s12757_s7 + $0x38] sm:$0xff]  ;;  %v9921_v29 = vld [vmem:[%s12757_s7 + $0x40] sm:$0xff] }
 0x24f   :  { %7666 = vmatprep.mubr.f32.mxu1 %v13267_v12  ;;  %v9816_v2 = vpop.eup %9815  ;;  %v4421_v60 = vsub.f32 1.0, %v9814_v38  ;;  %9829 = vrcp.f32 %v4516_v31  ;;  %v13275_v31 = vld [vmem:[#allocation19_spill] sm:$0xff] }
 0x250   :  { %v9818_v30 = vpop.eup %9817  ;;  %9831 = vpow2.f32 %v4302_v26  ;;  %v4402_v23 = vmul.f32 1.442695, %v4372_v55  ;;  %v4556_v48 = vmul.f32 %v9816_v2, %v13269_v3 }
 0x251   :  { %v9820_v8 = vpop.eup %9819  ;;  %v4438_v9 = vmul.f32 %v11476_v57, %v4421_v60  ;;  %v4557_v20 = vmul.f32 %v9818_v30, %v13271_v21  ;;  %9833 = vrcp.f32 %v4515_v11  ;;  %v13276_v11 = vand.u32 4294901760, %v13238_v10  ;;  %v9922_v10 = vld [vmem:[%s12757_s7 + $0x48] sm:$0xff] }
 0x252   :  { %7667 = vmatmul.mubr.f32.gmra.mrb[12].mxu1 %v13268_v18  ;;  %v9822_v6 = vpop.eup %9821  ;;  %9835 = vpow2.f32 %v4402_v23  ;;  %v4572_v13 = vadd.f32 %v9918_v39, %v4556_v48  ;;  %v4558_v61 = vmul.f32 %v9820_v8, %v13272_v45  ;;  %v13280_v21 = vand.u32 4294901760, %v13239_v16  ;;  %v9923_v16 = vld [vmem:[%s12757_s7 + $0x50] sm:$0xff] }
 0x253   :  { %7669 = vmatprep.mubr.f32.mxu1 %v13270_v32  ;;  %v9824_v5 = vpop.eup %9823  ;;  %v4454_v28 = vsub.f32 %v4338_v58, %v4438_v9  ;;  %v4573_v52 = vadd.f32 %v9919_v37, %v4557_v20  ;;  %v4559_v33 = vmul.f32 %v9822_v6, %v13273_v4  ;;  %v13277_v58 = vld [vmem:[#allocation22_spill] sm:$0xff]  ;;  %v13279_v32 = vld [vmem:[#allocation21_spill] sm:$0xff]  ;;  %v13282_v45 = vand.u32 4294901760, %v13240_v53 }
 0x254   :  { %v9826_v17 = vpop.eup %9825  ;;  %v4605_v43 = vand.u32 4294901760, %v4572_v13  ;;  %v4574_v12 = vadd.f32 %v9920_v0, %v4558_v61  ;;  %v4560_v38 = vmul.f32 %v9824_v5, %v13275_v31 }
 0x255   :  { %v6642_v26 = vmul.f32 -1.442695, %v4454_v28  ;;  %v4608_v55 = vand.u32 4294901760, %v4573_v52  ;;  %v4575_v2 = vadd.f32 %v9921_v29, %v4559_v33  ;;  %v4562_v50 = vmul.f32 %v9826_v17, %v13277_v58  ;;  %v9924_v28 = vld [vmem:[%s12757_s7 + $0x58] sm:$0xff] }
 0x256   :  { %7670 = vmatmul.mubr.f32.gmra.mrb[14].mxu1 %v13274_v25  ;;  %v9828_v60 = vpop.eup %9827  ;;  %v11656_v30 = vpack.c.bf16 %v4605_v43, %v4602_v47  ;;  %v11658_v18 = vsub.f32 %v4572_v13, %v4605_v43  ;;  %v4611_v23 = vand.u32 4294901760, %v4574_v12  ;;  %v4576_v3 = vadd.f32 %v9922_v10, %v4560_v38  ;;  %v13284_v25 = vld [vmem:[#allocation25_spill] sm:$0xff] }
 0x257   :  { %7672 = vmatprep.mubr.f32.mxu1 %v13276_v11  ;;  %9837 = vpow2.f32 %v6642_v26  ;;  %v11663_v48 = vsub.f32 %v4573_v52, %v4608_v55  ;;  %v4614_v8 = vand.u32 4294901760, %v4575_v2  ;;  %v4561_v9 = vmul.f32 %v9828_v60, %v13279_v32 }
 0x258   :  { %13278 = vst [vmem:[#allocation34_spill] sm:$0xff] %v11656_v30  ;;  %v11670_v47 = vpack.c.bf16 %v11658_v18, %v11644_v7  ;;  %v11672_v20 = vpack.c.bf16 %v4611_v23, %v4608_v55  ;;  %v11674_v6 = vsub.f32 %v4574_v12, %v4611_v23  ;;  %v4617_v39 = vand.u32 4294901760, %v4576_v3 }
 0x259   :  { %v9830_v13 = vpop.eup %9829  ;;  %v11678_v61 = vsub.f32 %v4575_v2, %v4614_v8  ;;  %v4577_v5 = vadd.f32 %v9923_v16, %v4561_v9  ;;  %v4578_v37 = vadd.f32 %v9924_v28, %v4562_v50  ;;  %v4993_v52 = vand.u32 4294901760, %v11580_v42  ;;  %v13286_v2 = vld [vmem:[#allocation24_spill] sm:$0xff]  ;;  %v9925_v50 = vld [vmem:[%s12757_s7 + $0x68] sm:$0xff] }
 0x25a   :  { %7673 = vmatmul.mubr.f32.gmra.mrb[16].mxu1 %v13280_v21  ;;  %13281 = vst [vmem:[#allocation6_spill] sm:$0xff] %v11672_v20  ;;  %v9832_v4 = vpop.eup %9831  ;;  %8985 = vmatprep.subr.bf16.mxu0 %v11670_v47  ;;  %v11690_v53 = vpack.c.bf16 %v11674_v6, %v11663_v48  ;;  %v11692_v33 = vpack.c.bf16 %v4617_v39, %v4614_v8  ;;  %v13285_v55 = vand.u32 4294901760, %v13241_v54  ;;  %v5000_v23 = vand.u32 4294901760, %v11589_v22  ;;  %v9926_v21 = vld [vmem:[%s12757_s7 + $0x60] sm:$0xff] }
 0x25b   :  { %7675 = vmatprep.mubr.f32.mxu1 %v13282_v45  ;;  %v11694_v17 = vsub.f32 %v4576_v3, %v4617_v39  ;;  %v4564_v43 = vmul.f32 %v9830_v13, %v13284_v25  ;;  %v9834_v0 = vpop.eup %9833  ;;  %v4320_v12 = vsub.f32 1.0, %v9832_v4  ;;  %8987 = vmatpush3.bf16.msra.mxu0 %v11670_v47  ;;  %v4620_v31 = vand.u32 4294901760, %v4577_v5 }
 0x25c   :  { %13283 = vst [vmem:[#allocation8_spill] sm:$0xff] %v11692_v33  ;;  %v4623_v38 = vand.u32 4294901760, %v4578_v37  ;;  %v4994_v11 = vsub.f32 %v11580_v42, %v4993_v52  ;;  %v9836_v26 = vpop.eup %9835  ;;  %8989 = vmatprep.subr.bf16.mxu0 %v11690_v53  ;;  %v4563_v58 = vmul.f32 %v9834_v0, %v13286_v2  ;;  %v13287_v10 = vand.u32 4294901760, %v13242_v34 }
 0x25d   :  { %v11706_v29 = vpack.c.bf16 %v11694_v17, %v11678_v61  ;;  %v4580_v60 = vadd.f32 %v9925_v50, %v4564_v43  ;;  %v4337_v54 = vmul.f32 %v11472_v51, %v4320_v12  ;;  %v4420_v3 = vsub.f32 1.0, %v9836_v26 }
 0x25e   :  { %7676 = vmatmul.mubr.f32.gmra.mrb[18].mxu1 %v13285_v55  ;;  %v11716_v8 = vpack.c.bf16 %v4623_v38, %v4620_v31  ;;  %v11718_v32 = vsub.f32 %v4577_v5, %v4620_v31  ;;  %v11720_v9 = vsub.f32 %v4578_v37, %v4623_v38  ;;  %v4579_v39 = vadd.f32 %v9926_v21, %v4563_v58 }
 0x25f   :  { %7678 = vmatprep.mubr.f32.mxu1 %v13287_v10  ;;  %v4629_v13 = vand.u32 4294901760, %v4580_v60  ;;  %v4995_v45 = vand.u32 4294901760, %v4994_v11  ;;  %v4437_v16 = vmul.f32 %v11476_v57, %v4420_v3  ;;  %8991 = vmatpush3.bf16.msra.mxu0 %v11690_v53  ;;  %v5001_v51 = vsub.f32 %v11589_v22, %v5000_v23 }
 0x260   :  { %13288 = vst [vmem:[#allocation40_spill] sm:$0xff] %v11716_v8  ;;  %v5007_v34 = vand.u32 4294901760, %v11600_v46  ;;  %v5014_v5 = vand.u32 4294901760, %v11608_v35  ;;  %v13289_v28 = vand.u32 4294901760, %v13243_v59  ;;  %8993 = vmatprep.subr.bf16.mxu0 %v11706_v29  ;;  %v11735_v37 = vpack.c.bf16 %v11720_v9, %v11718_v32 }
 0x261   :  { %v4626_v4 = vand.u32 4294901760, %v4579_v39  ;;  %v11737_v25 = vsub.f32 %v4580_v60, %v4629_v13  ;;  %v5021_v57 = vand.u32 4294901760, %v11644_v7  ;;  %v9838_v43 = vpop.eup %9837  ;;  %v13290_v22 = vand.u32 4294901760, %v13244_v62 }
 0x262   :  { %7679 = vmatmul.mubr.f32.gmra.mrb[20].mxu1 %v13289_v28  ;;  %v4453_v0 = vsub.f32 %v4337_v54, %v4437_v16  ;;  %v5002_v12 = vand.u32 4294901760, %v5001_v51  ;;  %v5008_v59 = vsub.f32 %v11600_v46, %v5007_v34  ;;  %v5015_v31 = vsub.f32 %v11608_v35, %v5014_v5 }
 0x263   :  { %7681 = vmatprep.mubr.f32.mxu1 %v13290_v22  ;;  %v4518_v38 = vadd.f32 1.0, %v9838_v43  ;;  %v11744_v11 = vpack.c.bf16 %v4629_v13, %v4626_v4  ;;  %v11746_v26 = vsub.f32 %v4579_v39, %v4626_v4  ;;  %v5022_v55 = vsub.f32 %v11644_v7, %v5021_v57  ;;  %8995 = vmatpush3.bf16.msra.mxu0 %v11706_v29 }
 0x264   :  { %v6641_v2 = vmul.f32 -1.442695, %v4453_v0  ;;  %v11750_v58 = vpack.c.bf16 %v5002_v12, %v4995_v45  ;;  %v5009_v62 = vand.u32 4294901760, %v5008_v59  ;;  %v5016_v50 = vand.u32 4294901760, %v5015_v31  ;;  %8997 = vmatprep.subr.bf16.mxu0 %v11735_v37 }
 0x265   :  { %13291 = vst [vmem:[#allocation43_spill] sm:$0xff] %v11744_v11  ;;  %v13292_v60 = vand.u32 4294901760, %v13245_v24  ;;  %v11757_v46 = vpack.c.bf16 %v11737_v25, %v11746_v26  ;;  %9839 = vrcp.f32 %v4518_v38  ;;  %v5023_v35 = vand.u32 4294901760, %v5022_v55 }
 0x266   :  { %v5028_v7 = vand.u32 4294901760, %v11658_v18  ;;  %v13294_v10 = vand.u32 4294901760, %v13246_v63  ;;  %9841 = vpow2.f32 %v6641_v2  ;;  %v11762_v54 = vpack.c.bf16 %v5016_v50, %v5009_v62 }
 0x267   :  { %7682 = vmatmul.mubr.f32.gmra.mrb[22].mxu1 %v13292_v60  ;;  %13293 = vst [vmem:[#allocation44_spill] sm:$0xff] %v11757_v46  ;;  %v5035_v3 = vand.u32 4294901760, %v11663_v48  ;;  %v5042_v24 = vand.u32 4294901760, %v11674_v6  ;;  %v11769_v39 = vpack.c.bf16 %v5000_v23, %v4993_v52  ;;  %v11771_v13 = vpack.c.bf16 %v5014_v5, %v5007_v34  ;;  %8999 = vmatpush3.bf16.msra.mxu0 %v11735_v37 }
 0x268   :  { %7684 = vmatprep.mubr.f32.mxu1 %v13294_v10  ;;  %v5029_v21 = vsub.f32 %v11658_v18, %v5028_v7  ;;  %v11773_v45 = vpack.c.bf16 %v5028_v7, %v5021_v57  ;;  %v5049_v51 = vand.u32 4294901760, %v11678_v61  ;;  %v5056_v28 = vand.u32 4294901760, %v11694_v17  ;;  %9001 = vmatprep.subr.bf16.mxu0 %v11757_v46  ;;  %v13300_v7 = vld [vmem:[#allocation74_spill] sm:$0xff] }
 0x269   :  { %v5036_v63 = vsub.f32 %v11663_v48, %v5035_v3  ;;  %v5043_v16 = vsub.f32 %v11674_v6, %v5042_v24  ;;  %v13295_v18 = vand.u32 4294901760, %v11321_v1  ;;  %v11783_v52 = vpack.c.bf16 %v5042_v24, %v5035_v3 }
 0x26a   :  { %v5030_v42 = vand.u32 4294901760, %v5029_v21  ;;  %v13296_v23 = vand.u32 4294901760, %v11326_v40  ;;  %v5050_v48 = vsub.f32 %v11678_v61, %v5049_v51  ;;  %v5057_v6 = vsub.f32 %v11694_v17, %v5056_v28 }
 0x26b   :  { %7685 = vmatmul.mubr.f32.gmra.mrb[24].mxu1 %v13295_v18  ;;  %v5037_v34 = vand.u32 4294901760, %v5036_v63  ;;  %v5044_v5 = vand.u32 4294901760, %v5043_v16  ;;  %9003 = vmatpush3.bf16.msra.mxu0 %v11757_v46  ;;  %v5063_v22 = vand.u32 4294901760, %v11718_v32  ;;  %v13297_v0 = vand.u32 4294901760, %v13247_v36  ;;  %v9927_v18 = vld [vmem:[%s12757_s7 + $0x78] sm:$0xff] }
 0x26c   :  { %7687 = vmatprep.mubr.f32.mxu1 %v13296_v23  ;;  %v11789_v4 = vpack.c.bf16 %v5030_v42, %v5023_v35  ;;  %v5051_v57 = vand.u32 4294901760, %v5050_v48  ;;  %v5058_v43 = vand.u32 4294901760, %v5057_v6  ;;  %v5070_v40 = vand.u32 4294901760, %v11720_v9  ;;  %v13306_v23 = vld [vmem:[#allocation30_spill] sm:$0xff]  ;;  %v13308_v48 = vld [vmem:[#allocation32_spill] sm:$0xff] }
 0x26d   :  { %v11792_v1 = vpack.c.bf16 %v5044_v5, %v5037_v34  ;;  %v11798_v12 = vpack.c.bf16 %v5056_v28, %v5049_v51  ;;  %v13298_v61 = vand.u32 4294901760, %v11349_v49  ;;  %v5064_v59 = vsub.f32 %v11718_v32, %v5063_v22  ;;  %v13302_v32 = vld [vmem:[#allocation27_spill] sm:$0xff]  ;;  %v13304_v28 = vld [vmem:[#allocation29_spill] sm:$0xff]  ;;  %v13309_v6 = vld [vmem:[#allocation20_spill] sm:$0xff] }
 0x26e   :  { %v11802_v17 = vpack.c.bf16 %v5058_v43, %v5051_v57  ;;  %v5071_v38 = vsub.f32 %v11720_v9, %v5070_v40  ;;  %v5077_v62 = vand.u32 4294901760, %v11746_v26  ;;  %v5084_v36 = vand.u32 4294901760, %v11737_v25  ;;  %v13310_v57 = vld [vmem:[#allocation26_spill] sm:$0xff] }
 0x26f   :  { %7688 = vmatmul.mubr.f32.gmra.mrb[26].mxu1 %v13297_v0  ;;  %v9840_v31 = vpop.eup %9839  ;;  %v5065_v2 = vand.u32 4294901760, %v5064_v59  ;;  %v13299_v50 = vand.u32 4294901760, %v11359_v41  ;;  %v11810_v49 = vpack.c.bf16 %v5070_v40, %v5063_v22  ;;  %v13301_v10 = vand.u32 4294901760, %v13300_v7  ;;  %v13312_v59 = vld [vmem:[#allocation36_spill] sm:$0xff] }
 0x270   :  { %7690 = vmatprep.mubr.f32.mxu1 %v13298_v61  ;;  %v9842_v55 = vpop.eup %9841  ;;  %v5072_v35 = vand.u32 4294901760, %v5071_v38  ;;  %v4566_v3 = vmul.f32 %v9840_v31, %v13302_v32  ;;  %v5078_v9 = vsub.f32 %v11746_v26, %v5077_v62  ;;  %v5085_v24 = vsub.f32 %v11737_v25, %v5084_v36  ;;  %v13305_v25 = vld [vmem:[#allocation18_spill] sm:$0xff]  ;;  %v13311_v61 = vld [vmem:[#allocation35_spill] sm:$0xff] }
 0x271   :  { %v4517_v60 = vadd.f32 1.0, %v9842_v55  ;;  %v13303_v41 = vand.u32 4294901760, %v11375_v27  ;;  %v11821_v51 = vpack.c.bf16 %v5084_v36, %v5077_v62  ;;  %v13307_v27 = vld [vmem:[#allocation28_spill] sm:$0xff]  ;;  %v13314_v62 = vld [vmem:[#allocation23_spill] sm:$0xff]  ;;  %v13315_v36 = vld [vmem:[#allocation38_spill] sm:$0xff] }
 0x272   :  { %v11817_v21 = vpack.c.bf16 %v5072_v35, %v5065_v2  ;;  %v5079_v63 = vand.u32 4294901760, %v5078_v9  ;;  %v5086_v16 = vand.u32 4294901760, %v5085_v24  ;;  %v4582_v42 = vadd.f32 %v9927_v18, %v4566_v3  ;;  %v13317_v32 = vld [vmem:[#allocation31_spill] sm:$0xff]  ;;  %v13318_v3 = vld [vmem:[#allocation33_spill] sm:$0xff]  ;;  %v13322_v18 = vld [vmem:[#allocation42_spill] sm:$0xff] }
 0x273   :  { %7691 = vmatmul.mubr.f32.gmra.mrb[28].mxu1 %v13299_v50  ;;  %9843 = vrcp.f32 %v4517_v60 }
 0x274   :  { %7693 = vmatprep.mubr.f32.mxu1 %v13301_v10  ;;  %v11827_v26 = vpack.c.bf16 %v5086_v16, %v5079_v63  ;;  %v4635_v34 = vand.u32 4294901760, %v4582_v42  ;;  %v13319_v63 = vld [vmem:[#allocation5_spill] sm:$0xff]  ;;  %v13320_v16 = vld [vmem:[#allocation7_spill] sm:$0xff] }
 0x276   :  { %v5097_v22 = vsub.f32 %v4582_v42, %v4635_v34  ;;  %v13323_v42 = vld [vmem:[#allocation46_spill] sm:$0xff] }
 0x277   :  { %7694 = vmatmul.mubr.f32.gmra.mrb[30].mxu1 %v13303_v41  ;;  %v13321_v41 = vld [vmem:[#allocation41_spill] sm:$0xff] }
 0x278   :  { %7704 = vmatprep.mubr.f32.mxu1 %v13304_v28  ;;  %v5098_v40 = vand.u32 4294901760, %v5097_v22 }
 0x27a   :  { %v5099_v2 = vsub.f32 %v5097_v22, %v5098_v40 }
 0x27b   :  { %7705 = vmatmul.mubr.f32.vlgmr.msra.gmra.mrb[0].mxu1 %v13305_v25 }
 0x27c   :  { %8715 = vmatpush3.bf16.msra.mxu1 %v11044_v44  ;;  %7707 = vmatprep.mubr.f32.mxu1 %v13306_v23  ;;  %v9928_v44 = vld [vmem:[%s12757_s7 + $0x70] sm:$0xff]  ;;  %v5100_v7 = vand.u32 4294901760, %v5099_v2  ;;  %v13335_v2 = vld [vmem:[#allocation68_spill] sm:$0xff] }
 0x27d   :  { %8717 = vmatprep.subr.bf16.mxu1 %v13307_v27  ;;  %v9844_v5 = vpop.eup %9843 }
 0x27e   :  { %v4565_v43 = vmul.f32 %v9844_v5, %v13310_v57  ;;  %v13326_v5 = vld [vmem:[#allocation51_spill] sm:$0xff]  ;;  %v13327_v57 = vld [vmem:[#allocation53_spill] sm:$0xff] }
 0x27f   :  { %7708 = vmatmul.mubr.f32.gmra.mrb[2].mxu1 %v13308_v48 }
 0x280   :  { %8719 = vmatpush3.bf16.msra.mxu1 %v13307_v27  ;;  %7710 = vmatprep.mubr.f32.mxu1 %v13309_v6  ;;  %v4581_v0 = vadd.f32 %v9928_v44, %v4565_v43  ;;  %v13325_v27 = vld [vmem:[#allocation49_spill] sm:$0xff]  ;;  %v13328_v43 = vld [vmem:[#allocation55_spill] sm:$0xff] }
 0x281   :  { %8913 = vmatprep.subr.bf16.mxu1 %v11587_v14  ;;  %v13330_v44 = vld [vmem:[#allocation57_spill] sm:$0xff] }
 0x282   :  { %v4632_v31 = vand.u32 4294901760, %v4581_v0 }
 0x283   :  { %7711 = vmatmul.mubr.f32.gmra.mrb[4].mxu1 %v13311_v61 }
 0x284   :  { %7713 = vmatprep.mubr.f32.mxu1 %v13312_v59  ;;  %v11843_v38 = vpack.c.bf16 %v4635_v34, %v4632_v31  ;;  %v5090_v55 = vsub.f32 %v4581_v0, %v4632_v31  ;;  %v13324_v34 = vld [vmem:[#allocation47_spill] sm:$0xff]  ;;  %v13331_v0 = vld [vmem:[#allocation62_spill] sm:$0xff] }
 0x285   :  { %v13333_v31 = vld [vmem:[#allocation66_spill] sm:$0xff] }
 0x286   :  { %13313 = vst [vmem:[#allocation45_spill] sm:$0xff] %v11843_v38  ;;  %v11847_v50 = vpack.c.bf16 %v5097_v22, %v5090_v55  ;;  %v5091_v60 = vand.u32 4294901760, %v5090_v55  ;;  %v13329_v22 = vld [vmem:[#allocation56_spill] sm:$0xff] }
 0x287   :  { %7714 = vmatmul.mubr.f32.gmra.mrb[6].mxu1 %v13314_v62 }
 0x288   :  { %7716 = vmatprep.mubr.f32.mxu1 %v13315_v36  ;;  %13316 = vst [vmem:[#allocation48_spill] sm:$0xff] %v11847_v50  ;;  %9005 = vmatprep.subr.bf16.mxu0 %v11847_v50  ;;  %v5092_v35 = vsub.f32 %v5090_v55, %v5091_v60  ;;  %v11850_v10 = vpack.c.bf16 %v5098_v40, %v5091_v60  ;;  %v13332_v40 = vld [vmem:[#allocation63_spill] sm:$0xff]  ;;  %v13336_v60 = vld [vmem:[#allocation69_spill] sm:$0xff] }
 0x289   :  { %9007 = vmatpush3.bf16.msra.mxu0 %v11847_v50  ;;  %v13334_v55 = vld [vmem:[#allocation67_spill] sm:$0xff] }
 0x28a   :  { %9009 = vmatprep.subr.bf16.mxu0 %v11587_v14  ;;  %v5093_v9 = vand.u32 4294901760, %v5092_v35  ;;  %v13337_v35 = vld [vmem:[#allocation71_spill] sm:$0xff] }
 0x28b   :  { %7717 = vmatmul.mubr.f32.gmra.mrb[8].mxu1 %v13317_v32 }
 0x28c   :  { %7719 = vmatprep.mubr.f32.mxu1 %v13318_v3  ;;  %v11856_v24 = vpack.c.bf16 %v5100_v7, %v5093_v9  ;;  %v13338_v7 = vld [vmem:[#allocation72_spill] sm:$0xff]  ;;  %v13339_v9 = vld [vmem:[#allocation73_spill] sm:$0xff] }
 0x28f   :  { %7720 = vmatmul.mubr.f32.gmra.mrb[10].mxu1 %v13319_v63 }
 0x290   :  { %7722 = vmatprep.mubr.f32.mxu1 %v13320_v16 }
 0x293   :  { %7723 = vmatmul.mubr.f32.gmra.mrb[12].mxu1 %v13321_v41 }
 0x294   :  { %7725 = vmatprep.mubr.f32.mxu1 %v13322_v18 }
 0x297   :  { %7726 = vmatmul.mubr.f32.gmra.mrb[14].mxu1 %v13323_v42 }
 0x298   :  { %7728 = vmatprep.mubr.f32.mxu1 %v13324_v34 }
 0x29b   :  { %7729 = vmatmul.mubr.f32.gmra.mrb[16].mxu1 %v13325_v27 }
 0x29c   :  { %7731 = vmatprep.mubr.f32.mxu1 %v13326_v5 }
 0x29f   :  { %7732 = vmatmul.mubr.f32.gmra.mrb[18].mxu1 %v13327_v57 }
 0x2a0   :  { %7734 = vmatprep.mubr.f32.mxu1 %v13328_v43 }
 0x2a3   :  { %7735 = vmatmul.mubr.f32.gmra.mrb[20].mxu1 %v13329_v22 }
 0x2a4   :  { %7737 = vmatprep.mubr.f32.mxu1 %v13330_v44 }
 0x2a7   :  { %7738 = vmatmul.mubr.f32.gmra.mrb[22].mxu1 %v13331_v0 }
 0x2a8   :  { %7740 = vmatprep.mubr.f32.mxu1 %v13332_v40 }
 0x2ab   :  { %7741 = vmatmul.mubr.f32.gmra.mrb[24].mxu1 %v13333_v31 }
 0x2ac   :  { %7743 = vmatprep.mubr.f32.mxu1 %v13334_v55 }
 0x2af   :  { %7744 = vmatmul.mubr.f32.gmra.mrb[26].mxu1 %v13335_v2 }
 0x2b0   :  { %7746 = vmatprep.mubr.f32.mxu1 %v13336_v60 }
 0x2b3   :  { %7747 = vmatmul.mubr.f32.gmra.mrb[28].mxu1 %v13337_v35 }
 0x2b4   :  { %7749 = vmatprep.mubr.f32.mxu1 %v13338_v7 }
 0x2b7   :  { %7750 = vmatmul.mubr.f32.gmra.mrb[30].mxu1 %v13339_v9 }
 0x2b8   :  { %7760 = vmatprep.mubr.f32.mxu1 %v13304_v28  ;;  %v11930_v28 = vld [vmem:[%s12755_s5] ss:$0 sm:$0xff] }
 0x2bb   :  { %7761 = vmatmul.mubr.f32.vlgmr.msra.gmra.mrb[0].mxu1 %v13305_v25 }
 0x2bc   :  { %7763 = vmatprep.mubr.f32.mxu1 %v13306_v23  ;;  %8915 = vmatpush3.bf16.msra.mxu1 %v11587_v14 }
 0x2bd   :  { %8917 = vmatprep.subr.bf16.mxu1 %v11606_v19 }
 0x2bf   :  { %7764 = vmatmul.mubr.f32.gmra.mrb[2].mxu1 %v13308_v48 }
 0x2c0   :  { %7766 = vmatprep.mubr.f32.mxu1 %v13309_v6  ;;  %8919 = vmatpush3.bf16.msra.mxu1 %v11606_v19 }
 0x2c1   :  { %8921 = vmatprep.subr.bf16.mxu1 %v11656_v30 }
 0x2c3   :  { %7767 = vmatmul.mubr.f32.gmra.mrb[4].mxu1 %v13311_v61 }
 0x2c4   :  { %7769 = vmatprep.mubr.f32.mxu1 %v13312_v59  ;;  %8923 = vmatpush3.bf16.msra.mxu1 %v11656_v30 }
 0x2c5   :  { %8925 = vmatprep.subr.bf16.mxu1 %v11672_v20 }
 0x2c7   :  { %7770 = vmatmul.mubr.f32.gmra.mrb[6].mxu1 %v13314_v62 }
 0x2c8   :  { %7772 = vmatprep.mubr.f32.mxu1 %v13315_v36  ;;  %8927 = vmatpush3.bf16.msra.mxu1 %v11672_v20 }
 0x2c9   :  { %8929 = vmatprep.subr.bf16.mxu1 %v11692_v33 }
 0x2cb   :  { %7773 = vmatmul.mubr.f32.gmra.mrb[8].mxu1 %v13317_v32 }
 0x2cc   :  { %7775 = vmatprep.mubr.f32.mxu1 %v13318_v3  ;;  %8931 = vmatpush3.bf16.msra.mxu1 %v11692_v33 }
 0x2cd   :  { %8933 = vmatprep.subr.bf16.mxu1 %v11716_v8 }
 0x2cf   :  { %7776 = vmatmul.mubr.f32.gmra.mrb[10].mxu1 %v13319_v63 }
 0x2d0   :  { %7778 = vmatprep.mubr.f32.mxu1 %v13320_v16  ;;  %8935 = vmatpush3.bf16.msra.mxu1 %v11716_v8 }
 0x2d1   :  { %8937 = vmatprep.subr.bf16.mxu1 %v11744_v11 }
 0x2d3   :  { %7779 = vmatmul.mubr.f32.gmra.mrb[12].mxu1 %v13321_v41 }
 0x2d4   :  { %7781 = vmatprep.mubr.f32.mxu1 %v13322_v18  ;;  %8939 = vmatpush3.bf16.msra.mxu1 %v11744_v11 }
 0x2d5   :  { %8941 = vmatprep.subr.bf16.mxu1 %v11843_v38 }
 0x2d7   :  { %7782 = vmatmul.mubr.f32.gmra.mrb[14].mxu1 %v13323_v42 }
 0x2d8   :  { %7784 = vmatprep.mubr.f32.mxu1 %v13324_v34  ;;  %8943 = vmatpush3.bf16.msra.mxu1 %v11843_v38 }
 0x2d9   :  { %8945 = vmatprep.subr.bf16.mxu1 %v11750_v58 }
 0x2db   :  { %7785 = vmatmul.mubr.f32.gmra.mrb[16].mxu1 %v13325_v27 }
 0x2dc   :  { %7787 = vmatprep.mubr.f32.mxu1 %v13326_v5 }
 0x2df   :  { %7788 = vmatmul.mubr.f32.gmra.mrb[18].mxu1 %v13327_v57 }
 0x2e0   :  { %7790 = vmatprep.mubr.f32.mxu1 %v13328_v43 }
 0x2e3   :  { %7791 = vmatmul.mubr.f32.gmra.mrb[20].mxu1 %v13329_v22 }
 0x2e4   :  { %7793 = vmatprep.mubr.f32.mxu1 %v13330_v44 }
 0x2e7   :  { %7794 = vmatmul.mubr.f32.gmra.mrb[22].mxu1 %v13331_v0 }
 0x2e8   :  { %7796 = vmatprep.mubr.f32.mxu1 %v13332_v40 }
 0x2eb   :  { %7797 = vmatmul.mubr.f32.gmra.mrb[24].mxu1 %v13333_v31 }
 0x2ec   :  { %7799 = vmatprep.mubr.f32.mxu1 %v13334_v55 }
 0x2ef   :  { %7800 = vmatmul.mubr.f32.gmra.mrb[26].mxu1 %v13335_v2 }
 0x2f0   :  { %7802 = vmatprep.mubr.f32.mxu1 %v13336_v60 }
 0x2f3   :  { %7803 = vmatmul.mubr.f32.gmra.mrb[28].mxu1 %v13337_v35 }
 0x2f4   :  { %7805 = vmatprep.mubr.f32.mxu1 %v13338_v7 }
 0x2f7   :  { %7806 = vmatmul.mubr.f32.gmra.mrb[30].mxu1 %v13339_v9 }
 0x38e   :  { %v7762_v25 = vpop.f32.mrb[0].mxu1 }
 0x38f   :  { %v9120_v23 = vadd.f32 %v7762_v25, %v11930_v28  ;;  %v2570_v48 = vpop.f32.mrb[1].mxu1 }
 0x390   :  { %v9121_v6 = vadd.f32 %v11930_v28, %v2570_v48 }
 0x391   :  { %9845 = vtanh.f32 %v9120_v23 }
 0x392   :  { %9847 = vtanh.f32 %v9121_v6  ;;  %v7765_v61 = vpop.f32.mrb[2].mxu1 }
 0x393   :  { %v9122_v59 = vadd.f32 %v7765_v61, %v11930_v28  ;;  %v2582_v62 = vpop.f32.mrb[3].mxu1 }
 0x394   :  { %v9123_v36 = vadd.f32 %v11930_v28, %v2582_v62 }
 0x395   :  { %9849 = vtanh.f32 %v9122_v59 }
 0x396   :  { %9851 = vtanh.f32 %v9123_v36  ;;  %v7768_v32 = vpop.f32.mrb[4].mxu1 }
 0x397   :  { %v9124_v3 = vadd.f32 %v7768_v32, %v11930_v28  ;;  %v2594_v63 = vpop.f32.mrb[5].mxu1 }
 0x398   :  { %v9125_v16 = vadd.f32 %v11930_v28, %v2594_v63 }
 0x399   :  { %9853 = vtanh.f32 %v9124_v3 }
 0x39a   :  { %9855 = vtanh.f32 %v9125_v16  ;;  %v7771_v41 = vpop.f32.mrb[6].mxu1 }
 0x39b   :  { %v9846_v18 = vpop.eup %9845  ;;  %v9126_v42 = vadd.f32 %v7771_v41, %v11930_v28  ;;  %v2606_v34 = vpop.f32.mrb[7].mxu1 }
 0x39c   :  { %v9848_v27 = vpop.eup %9847  ;;  %v11939_v5 = vand.u32 4294901760, %v9846_v18  ;;  %v9127_v57 = vadd.f32 %v11930_v28, %v2606_v34 }
 0x39d   :  { %9857 = vtanh.f32 %v9126_v42  ;;  %v11942_v43 = vand.u32 4294901760, %v9848_v27 }
 0x39e   :  { %9859 = vtanh.f32 %v9127_v57  ;;  %v7774_v22 = vpop.f32.mrb[8].mxu1  ;;  %v11945_v44 = vsub.f32 %v9846_v18, %v11939_v5 }
 0x39f   :  { %v9850_v0 = vpop.eup %9849  ;;  %v9128_v40 = vadd.f32 %v7774_v22, %v11930_v28  ;;  %v2618_v31 = vpop.f32.mrb[9].mxu1  ;;  %v11949_v55 = vsub.f32 %v9848_v27, %v11942_v43 }
 0x3a0   :  { %v9852_v2 = vpop.eup %9851  ;;  %v9129_v60 = vadd.f32 %v11930_v28, %v2618_v31  ;;  %v11952_v35 = vand.u32 4294901760, %v9850_v0  ;;  %v12966_v7 = vand.u32 4294901760, %v11945_v44 }
 0x3a1   :  { %9861 = vtanh.f32 %v9128_v40  ;;  %8336 = vmatprep.mubr.f32.mxu0 %v11949_v55  ;;  %v11956_v9 = vand.u32 4294901760, %v9852_v2  ;;  %v12967_v25 = vand.u32 4294901760, %v11949_v55 }
 0x3a2   :  { %9863 = vtanh.f32 %v9129_v60  ;;  %v7777_v23 = vpop.f32.mrb[10].mxu1  ;;  %8337 = vmatmul.mubr.f32.vlgmr.msra.gmra.mrb[20].mxu0 %v11945_v44  ;;  %v11961_v48 = vsub.f32 %v9850_v0, %v11952_v35  ;;  %v4683_v6 = vsub.f32 %v11945_v44, %v12966_v7 }
 0x3a3   :  { %v9854_v61 = vpop.eup %9853  ;;  %v9130_v59 = vadd.f32 %v7777_v23, %v11930_v28  ;;  %9011 = vmatpush3.bf16.msra.mxu0 %v11587_v14  ;;  %v2630_v62 = vpop.f32.mrb[11].mxu1  ;;  %v11969_v36 = vsub.f32 %v9852_v2, %v11956_v9  ;;  %v4673_v32 = vsub.f32 %v11949_v55, %v12967_v25 }
 0x3a4   :  { %v9856_v3 = vpop.eup %9855  ;;  %v9131_v63 = vadd.f32 %v11930_v28, %v2630_v62  ;;  %9013 = vmatprep.subr.bf16.mxu0 %v11606_v19  ;;  %v11976_v16 = vand.u32 4294901760, %v9854_v61  ;;  %v12962_v41 = vand.u32 4294901760, %v11961_v48  ;;  %v4684_v57 = vand.u32 4294901760, %v4683_v6 }
 0x3a5   :  { %9865 = vtanh.f32 %v9130_v59  ;;  %8339 = vmatprep.mubr.f32.mxu0 %v11969_v36  ;;  %v4674_v18 = vand.u32 4294901760, %v4673_v32  ;;  %v11980_v42 = vand.u32 4294901760, %v9856_v3  ;;  %v12965_v34 = vand.u32 4294901760, %v11969_v36 }
 0x3a6   :  { %9867 = vtanh.f32 %v9131_v63  ;;  %v7780_v27 = vpop.f32.mrb[12].mxu1  ;;  %8340 = vmatmul.mubr.f32.gmra.mrb[22].mxu0 %v11961_v48  ;;  %v11985_v22 = vsub.f32 %v9854_v61, %v11976_v16  ;;  %v4703_v0 = vsub.f32 %v11961_v48, %v12962_v41 }
 0x3a7   :  { %v9858_v40 = vpop.eup %9857  ;;  %v9132_v31 = vadd.f32 %v7780_v27, %v11930_v28  ;;  %9015 = vmatpush3.bf16.msra.mxu0 %v11606_v19  ;;  %v2642_v2 = vpop.f32.mrb[13].mxu1  ;;  %8176 = vmatprep.mubr.f32.mxu1 %v4674_v18  ;;  %v11993_v60 = vsub.f32 %v9856_v3, %v11980_v42  ;;  %v4693_v23 = vsub.f32 %v11969_v36, %v12965_v34 }
 0x3a8   :  { %v9860_v6 = vpop.eup %9859  ;;  %v9133_v61 = vadd.f32 %v11930_v28, %v2642_v2  ;;  %9017 = vmatprep.subr.bf16.mxu0 %v11656_v30  ;;  %8177 = vmatmul.mubr.f32.vlgmr.msra.gmra.mrb[32].mxu1 %v4684_v57  ;;  %v12000_v59 = vand.u32 4294901760, %v9858_v40  ;;  %v12963_v62 = vand.u32 4294901760, %v11985_v22  ;;  %v4704_v27 = vand.u32 4294901760, %v4703_v0 }
 0x3a9   :  { %9869 = vtanh.f32 %v9132_v31  ;;  %8947 = vmatpush3.bf16.msra.mxu1 %v11750_v58  ;;  %8342 = vmatprep.mubr.f32.mxu0 %v11993_v60  ;;  %v4694_v32 = vand.u32 4294901760, %v4693_v23  ;;  %v12005_v3 = vand.u32 4294901760, %v9860_v6  ;;  %v12964_v63 = vand.u32 4294901760, %v11993_v60 }
 0x3aa   :  { %9871 = vtanh.f32 %v9133_v61  ;;  %8949 = vmatprep.subr.bf16.mxu1 %v11762_v54  ;;  %v7783_v18 = vpop.f32.mrb[14].mxu1  ;;  %8343 = vmatmul.mubr.f32.gmra.mrb[24].mxu0 %v11985_v22  ;;  %v12011_v57 = vsub.f32 %v9858_v40, %v12000_v59  ;;  %v4723_v58 = vsub.f32 %v11985_v22, %v12963_v62 }
 0x3ab   :  { %v9862_v31 = vpop.eup %9861  ;;  %v9134_v2 = vadd.f32 %v7783_v18, %v11930_v28  ;;  %9019 = vmatpush3.bf16.msra.mxu0 %v11656_v30  ;;  %v2654_v23 = vpop.f32.mrb[15].mxu1  ;;  %8179 = vmatprep.mubr.f32.mxu1 %v4694_v32  ;;  %v12019_v61 = vsub.f32 %v9860_v6, %v12005_v3  ;;  %v4713_v0 = vsub.f32 %v11993_v60, %v12964_v63 }
 0x3ac   :  { %v9864_v40 = vpop.eup %9863  ;;  %v9135_v41 = vadd.f32 %v11930_v28, %v2654_v23  ;;  %9021 = vmatprep.subr.bf16.mxu0 %v11672_v20  ;;  %8180 = vmatmul.mubr.f32.gmra.mrb[34].mxu1 %v4704_v27  ;;  %v12026_v62 = vand.u32 4294901760, %v9862_v31  ;;  %v12968_v18 = vand.u32 4294901760, %v12011_v57  ;;  %v4724_v27 = vand.u32 4294901760, %v4723_v58 }
 0x3ad   :  { %9873 = vtanh.f32 %v9134_v2  ;;  %8951 = vmatpush3.bf16.msra.mxu1 %v11762_v54  ;;  %8345 = vmatprep.mubr.f32.mxu0 %v12019_v61  ;;  %v4714_v6 = vand.u32 4294901760, %v4713_v0  ;;  %v12031_v32 = vand.u32 4294901760, %v9864_v40  ;;  %v12969_v63 = vand.u32 4294901760, %v12019_v61 }
 0x3ae   :  { %9875 = vtanh.f32 %v9135_v41  ;;  %8953 = vmatprep.subr.bf16.mxu1 %v11789_v4  ;;  %v7786_v23 = vpop.f32.mrb[16].mxu1  ;;  %8346 = vmatmul.mubr.f32.gmra.mrb[26].mxu0 %v12011_v57  ;;  %v12037_v34 = vsub.f32 %v9862_v31, %v12026_v62  ;;  %v4743_v54 = vsub.f32 %v12011_v57, %v12968_v18 }
 0x3af   :  { %v9866_v2 = vpop.eup %9865  ;;  %v9136_v0 = vadd.f32 %v7786_v23, %v11930_v28  ;;  %9023 = vmatpush3.bf16.msra.mxu0 %v11672_v20  ;;  %v2666_v7 = vpop.f32.mrb[17].mxu1  ;;  %8182 = vmatprep.mubr.f32.mxu1 %v4714_v6  ;;  %v12045_v41 = vsub.f32 %v9864_v40, %v12031_v32  ;;  %v4733_v58 = vsub.f32 %v12019_v61, %v12969_v63 }
 0x3b0   :  { %v9868_v31 = vpop.eup %9867  ;;  %v9137_v25 = vadd.f32 %v11930_v28, %v2666_v7  ;;  %9025 = vmatprep.subr.bf16.mxu0 %v11692_v33  ;;  %8183 = vmatmul.mubr.f32.gmra.mrb[36].mxu1 %v4724_v27  ;;  %v12052_v18 = vand.u32 4294901760, %v9866_v2  ;;  %v12976_v23 = vand.u32 4294901760, %v12037_v34  ;;  %v4744_v27 = vand.u32 4294901760, %v4743_v54 }
 0x3b1   :  { %9877 = vtanh.f32 %v9136_v0  ;;  %8955 = vmatpush3.bf16.msra.mxu1 %v11789_v4  ;;  %8348 = vmatprep.mubr.f32.mxu0 %v12045_v41  ;;  %v4734_v40 = vand.u32 4294901760, %v4733_v58  ;;  %v12057_v6 = vand.u32 4294901760, %v9868_v31  ;;  %v13340_v30 = vand.u32 4294901760, %v12045_v41 }
 0x3b2   :  { %9879 = vtanh.f32 %v9137_v25  ;;  %8957 = vmatprep.subr.bf16.mxu1 %v11792_v1  ;;  %v7789_v7 = vpop.f32.mrb[18].mxu1  ;;  %8349 = vmatmul.mubr.f32.gmra.mrb[28].mxu0 %v12037_v34  ;;  %v12063_v20 = vsub.f32 %v9866_v2, %v12052_v18  ;;  %v4763_v4 = vsub.f32 %v12037_v34, %v12976_v23 }
 0x3b3   :  { %v9870_v0 = vpop.eup %9869  ;;  %v9138_v58 = vadd.f32 %v7789_v7, %v11930_v28  ;;  %9027 = vmatpush3.bf16.msra.mxu0 %v11692_v33  ;;  %v2678_v63 = vpop.f32.mrb[19].mxu1  ;;  %8185 = vmatprep.mubr.f32.mxu1 %v4734_v40  ;;  %v12071_v25 = vsub.f32 %v9868_v31, %v12057_v6  ;;  %v4753_v54 = vsub.f32 %v12045_v41, %v13340_v30 }
 0x3b4   :  { %v9872_v2 = vpop.eup %9871  ;;  %v9139_v19 = vadd.f32 %v11930_v28, %v2678_v63  ;;  %9029 = vmatprep.subr.bf16.mxu0 %v11716_v8  ;;  %8186 = vmatmul.mubr.f32.gmra.mrb[38].mxu1 %v4744_v27  ;;  %v12078_v23 = vand.u32 4294901760, %v9870_v0  ;;  %v12983_v7 = vand.u32 4294901760, %v12063_v20  ;;  %v4764_v27 = vand.u32 4294901760, %v4763_v4 }
 0x3b5   :  { %9881 = vtanh.f32 %v9138_v58  ;;  %8959 = vmatpush3.bf16.msra.mxu1 %v11792_v1  ;;  %8351 = vmatprep.mubr.f32.mxu0 %v12071_v25  ;;  %v4754_v31 = vand.u32 4294901760, %v4753_v54  ;;  %v12083_v40 = vand.u32 4294901760, %v9872_v2  ;;  %v13343_v50 = vand.u32 4294901760, %v12071_v25 }
 0x3b6   :  { %13341 = vst [vmem:[#allocation50_spill] sm:$0xff] %v12078_v23  ;;  %9883 = vtanh.f32 %v9139_v19  ;;  %8961 = vmatprep.subr.bf16.mxu1 %v11802_v17  ;;  %v7792_v63 = vpop.f32.mrb[20].mxu1  ;;  %8352 = vmatmul.mubr.f32.gmra.mrb[30].mxu0 %v12063_v20  ;;  %v12089_v33 = vsub.f32 %v9870_v0, %v12078_v23  ;;  %v4783_v1 = vsub.f32 %v12063_v20, %v12983_v7 }
 0x3b7   :  { %13342 = vst [vmem:[#allocation52_spill] sm:$0xff] %v12083_v40  ;;  %v9874_v58 = vpop.eup %9873  ;;  %v9140_v54 = vadd.f32 %v7792_v63, %v11930_v28  ;;  %9031 = vmatpush3.bf16.msra.mxu0 %v11716_v8  ;;  %v2690_v30 = vpop.f32.mrb[21].mxu1  ;;  %8188 = vmatprep.mubr.f32.mxu1 %v4754_v31  ;;  %v12097_v19 = vsub.f32 %v9872_v2, %v12083_v40 }
 0x3b8   :  { %v4773_v4 = vsub.f32 %v12071_v25, %v13343_v50  ;;  %v9876_v0 = vpop.eup %9875  ;;  %v9141_v23 = vadd.f32 %v11930_v28, %v2690_v30  ;;  %9033 = vmatprep.subr.bf16.mxu0 %v11744_v11  ;;  %8189 = vmatmul.mubr.f32.gmra.mrb[40].mxu1 %v4764_v27  ;;  %v12104_v7 = vand.u32 4294901760, %v9874_v58  ;;  %v12990_v63 = vand.u32 4294901760, %v12089_v33 }
 0x3b9   :  { %9885 = vtanh.f32 %v9140_v54  ;;  %8963 = vmatpush3.bf16.msra.mxu1 %v11802_v17  ;;  %8354 = vmatprep.mubr.f32.mxu0 %v12097_v19  ;;  %v12109_v31 = vand.u32 4294901760, %v9876_v0  ;;  %v4784_v27 = vand.u32 4294901760, %v4783_v1  ;;  %v13346_v46 = vand.u32 4294901760, %v12097_v19 }
 0x3ba   :  { %13344 = vst [vmem:[#allocation54_spill] sm:$0xff] %v12104_v7  ;;  %v4774_v2 = vand.u32 4294901760, %v4773_v4  ;;  %9887 = vtanh.f32 %v9141_v23  ;;  %8965 = vmatprep.subr.bf16.mxu1 %v11817_v21  ;;  %v7795_v30 = vpop.f32.mrb[22].mxu1  ;;  %8355 = vmatmul.mubr.f32.gmra.mrb[32].mxu0 %v12089_v33  ;;  %v12115_v8 = vsub.f32 %v9874_v58, %v12104_v7  ;;  %v4803_v17 = vsub.f32 %v12089_v33, %v12990_v63 }
 0x3bb   :  { %13345 = vst [vmem:[#allocation58_spill] sm:$0xff] %v12109_v31  ;;  %v9878_v54 = vpop.eup %9877  ;;  %v9142_v4 = vadd.f32 %v7795_v30, %v11930_v28  ;;  %9035 = vmatpush3.bf16.msra.mxu0 %v11744_v11  ;;  %v2702_v50 = vpop.f32.mrb[23].mxu1  ;;  %v12123_v23 = vsub.f32 %v9876_v0, %v12109_v31  ;;  %v4793_v1 = vsub.f32 %v12097_v19, %v13346_v46 }
 0x3bc   :  { %8191 = vmatprep.mubr.f32.mxu1 %v4774_v2  ;;  %v9880_v58 = vpop.eup %9879  ;;  %v9143_v7 = vadd.f32 %v11930_v28, %v2702_v50  ;;  %9037 = vmatprep.subr.bf16.mxu0 %v11843_v38  ;;  %v12130_v63 = vand.u32 4294901760, %v9878_v54  ;;  %v12997_v30 = vand.u32 4294901760, %v12115_v8 }
 0x3bd   :  { %8192 = vmatmul.mubr.f32.gmra.mrb[42].mxu1 %v4784_v27  ;;  %9889 = vtanh.f32 %v9142_v4  ;;  %8357 = vmatprep.mubr.f32.mxu0 %v12123_v23  ;;  %v4794_v0 = vand.u32 4294901760, %v4793_v1  ;;  %v12135_v2 = vand.u32 4294901760, %v9880_v58  ;;  %v4804_v27 = vand.u32 4294901760, %v4803_v17 }
 0x3be   :  { %13347 = vst [vmem:[#allocation59_spill] sm:$0xff] %v12130_v63  ;;  %8967 = vmatpush3.bf16.msra.mxu1 %v11817_v21  ;;  %9891 = vtanh.f32 %v9143_v7  ;;  %v7798_v50 = vpop.f32.mrb[24].mxu1  ;;  %8358 = vmatmul.mubr.f32.gmra.mrb[34].mxu0 %v12115_v8  ;;  %v12141_v11 = vsub.f32 %v9878_v54, %v12130_v63  ;;  %v4823_v21 = vsub.f32 %v12115_v8, %v12997_v30  ;;  %v13350_v31 = vand.u32 4294901760, %v12123_v23 }
 0x3bf   :  { %13348 = vst [vmem:[#allocation60_spill] sm:$0xff] %v12135_v2  ;;  %8969 = vmatprep.subr.bf16.mxu1 %v11827_v26  ;;  %v9882_v4 = vpop.eup %9881  ;;  %v9144_v1 = vadd.f32 %v7798_v50, %v11930_v28  ;;  %9039 = vmatpush3.bf16.msra.mxu0 %v11843_v38  ;;  %v2714_v46 = vpop.f32.mrb[25].mxu1  ;;  %v12149_v7 = vsub.f32 %v9880_v58, %v12135_v2 }
 0x3c0   :  { %13349 = vst [vmem:[#allocation61_spill] sm:$0xff] %v12141_v11  ;;  %8194 = vmatprep.mubr.f32.mxu1 %v4794_v0  ;;  %v4813_v17 = vsub.f32 %v12123_v23, %v13350_v31  ;;  %v9884_v54 = vpop.eup %9883  ;;  %v9145_v63 = vadd.f32 %v11930_v28, %v2714_v46  ;;  %9041 = vmatprep.subr.bf16.mxu0 %v11769_v39  ;;  %v12156_v30 = vand.u32 4294901760, %v9882_v4  ;;  %v13006_v50 = vand.u32 4294901760, %v12141_v11 }
 0x3c1   :  { %8195 = vmatmul.mubr.f32.gmra.mrb[44].mxu1 %v4804_v27  ;;  %9893 = vtanh.f32 %v9144_v1  ;;  %8360 = vmatprep.mubr.f32.mxu0 %v12149_v7  ;;  %v12161_v0 = vand.u32 4294901760, %v9884_v54  ;;  %v13007_v31 = vand.u32 4294901760, %v12149_v7  ;;  %v4824_v27 = vand.u32 4294901760, %v4823_v21 }
 0x3c2   :  { %13351 = vst [vmem:[#allocation64_spill] sm:$0xff] %v12156_v30  ;;  %8971 = vmatpush3.bf16.msra.mxu1 %v11827_v26  ;;  %v4814_v58 = vand.u32 4294901760, %v4813_v17  ;;  %9895 = vtanh.f32 %v9145_v63  ;;  %v7801_v46 = vpop.f32.mrb[26].mxu1  ;;  %8361 = vmatmul.mubr.f32.gmra.mrb[36].mxu0 %v12141_v11  ;;  %v12167_v38 = vsub.f32 %v9882_v4, %v12156_v30  ;;  %v4843_v26 = vsub.f32 %v12141_v11, %v13006_v50 }
 0x3c3   :  { %13352 = vst [vmem:[#allocation65_spill] sm:$0xff] %v12161_v0  ;;  %8973 = vmatprep.subr.bf16.mxu1 %v11856_v24  ;;  %v9886_v1 = vpop.eup %9885  ;;  %v9146_v17 = vadd.f32 %v7801_v46, %v11930_v28  ;;  %v2726_v2 = vpop.f32.mrb[27].mxu1  ;;  %v12174_v63 = vsub.f32 %v9884_v54, %v12161_v0  ;;  %v4833_v40 = vsub.f32 %v12149_v7, %v13007_v31 }
 0x3c4   :  { %13353 = vst [vmem:[#allocation70_spill] sm:$0xff] %v12167_v38  ;;  %8197 = vmatprep.mubr.f32.mxu1 %v4814_v58  ;;  %v9888_v21 = vpop.eup %9887  ;;  %v9147_v4 = vadd.f32 %v11930_v28, %v2726_v2  ;;  %v12180_v30 = vand.u32 4294901760, %v9886_v1  ;;  %v13013_v50 = vand.u32 4294901760, %v12167_v38  ;;  %v4844_v2 = vand.u32 4294901760, %v4843_v26 }
 0x3c5   :  { %13354 = vst [vmem:[#allocation39_spill] sm:$0xff] %v12174_v63  ;;  %8198 = vmatmul.mubr.f32.gmra.mrb[46].mxu1 %v4824_v27  ;;  %9897 = vtanh.f32 %v9146_v17  ;;  %8363 = vmatprep.mubr.f32.mxu0 %v12174_v63  ;;  %v4834_v58 = vand.u32 4294901760, %v4833_v40  ;;  %v12185_v54 = vand.u32 4294901760, %v9888_v21  ;;  %v13016_v46 = vand.u32 4294901760, %v12174_v63 }
 0x3c6   :  { %13355 = vst [vmem:[#allocation9_spill] sm:$0xff] %v12180_v30  ;;  %8975 = vmatpush3.bf16.msra.mxu1 %v11856_v24  ;;  %9899 = vtanh.f32 %v9147_v4  ;;  %v7804_v31 = vpop.f32.mrb[28].mxu1  ;;  %8364 = vmatmul.mubr.f32.gmra.mrb[38].mxu0 %v12167_v38  ;;  %v12191_v27 = vsub.f32 %v9886_v1, %v12180_v30  ;;  %v4863_v24 = vsub.f32 %v12167_v38, %v13013_v50 }
 0x3c7   :  { %13356 = vst [vmem:[#allocation10_spill] sm:$0xff] %v12185_v54  ;;  %9104 = vmatprep.subr.bf16.mxu1 %v11596_v56  ;;  %v9890_v17 = vpop.eup %9889  ;;  %v9148_v40 = vadd.f32 %v7804_v31, %v11930_v28  ;;  %v2738_v0 = vpop.f32.mrb[29].mxu1  ;;  %8200 = vmatprep.mubr.f32.mxu1 %v4834_v58  ;;  %v12198_v4 = vsub.f32 %v9888_v21, %v12185_v54 }
 0x3c8   :  { %v4853_v11 = vsub.f32 %v12174_v63, %v13016_v46  ;;  %v9892_v26 = vpop.eup %9891  ;;  %v9149_v1 = vadd.f32 %v11930_v28, %v2738_v0  ;;  %v12204_v30 = vand.u32 4294901760, %v9890_v17  ;;  %v13021_v50 = vand.u32 4294901760, %v12191_v27 }
 0x3c9   :  { %8201 = vmatmul.mubr.f32.gmra.mrb[48].mxu1 %v4844_v2  ;;  %9901 = vtanh.f32 %v9148_v40  ;;  %8366 = vmatprep.mubr.f32.mxu0 %v12198_v4  ;;  %v12208_v58 = vand.u32 4294901760, %v9892_v26  ;;  %v13022_v21 = vand.u32 4294901760, %v12198_v4  ;;  %v4864_v46 = vand.u32 4294901760, %v4863_v24 }
 0x3ca   :  { %13357 = vst [vmem:[#allocation11_spill] sm:$0xff] %v12204_v30  ;;  %v4854_v31 = vand.u32 4294901760, %v4853_v11  ;;  %9903 = vtanh.f32 %v9149_v1  ;;  %v7807_v54 = vpop.f32.mrb[30].mxu1  ;;  %8367 = vmatmul.mubr.f32.gmra.mrb[40].mxu0 %v12191_v27  ;;  %v12213_v0 = vsub.f32 %v9890_v17, %v12204_v30  ;;  %v4883_v2 = vsub.f32 %v12191_v27, %v13021_v50 }
 0x3cb   :  { %13358 = vst [vmem:[#allocation12_spill] sm:$0xff] %v12208_v58  ;;  %v9894_v40 = vpop.eup %9893  ;;  %v9150_v38 = vadd.f32 %v7807_v54, %v11930_v28  ;;  %v2750_v11 = vpop.f32.mrb[31].mxu1  ;;  %v12220_v63 = vsub.f32 %v9892_v26, %v12208_v58  ;;  %v4873_v1 = vsub.f32 %v12198_v4, %v13022_v21 }
 0x3cc   :  { %13359 = vst [vmem:[#allocation13_spill] sm:$0xff] %v12213_v0  ;;  %8203 = vmatprep.mubr.f32.mxu1 %v4854_v31  ;;  %v9896_v24 = vpop.eup %9895  ;;  %v9151_v17 = vadd.f32 %v11930_v28, %v2750_v11  ;;  %v12226_v30 = vand.u32 4294901760, %v9894_v40  ;;  %v13027_v50 = vand.u32 4294901760, %v12213_v0  ;;  %v4884_v21 = vand.u32 4294901760, %v4883_v2 }
 0x3cd   :  { %13360 = vst [vmem:[#allocation14_spill] sm:$0xff] %v12220_v63  ;;  %8204 = vmatmul.mubr.f32.gmra.mrb[50].mxu1 %v4864_v46  ;;  %9905 = vtanh.f32 %v9150_v38  ;;  %8369 = vmatprep.mubr.f32.mxu0 %v12220_v63  ;;  %v4874_v54 = vand.u32 4294901760, %v4873_v1  ;;  %v12230_v31 = vand.u32 4294901760, %v9896_v24  ;;  %v13028_v26 = vand.u32 4294901760, %v12220_v63 }
 0x3ce   :  { %13361 = vst [vmem:[#allocation15_spill] sm:$0xff] %v12226_v30  ;;  %9907 = vtanh.f32 %v9151_v17  ;;  %8370 = vmatmul.mubr.f32.gmra.mrb[42].mxu0 %v12213_v0  ;;  %v12235_v58 = vsub.f32 %v9894_v40, %v12226_v30  ;;  %v4903_v28 = vsub.f32 %v12213_v0, %v13027_v50 }
 0x3cf   :  { %13362 = vst [vmem:[#allocation16_spill] sm:$0xff] %v12230_v31  ;;  %v9898_v46 = vpop.eup %9897  ;;  %8206 = vmatprep.mubr.f32.mxu1 %v4874_v54  ;;  %v12241_v38 = vsub.f32 %v9896_v24, %v12230_v31  ;;  %v4893_v11 = vsub.f32 %v12220_v63, %v13028_v26 }
 0x3d0   :  { %13363 = vst [vmem:[#allocation17_spill] sm:$0xff] %v12235_v58  ;;  %v9900_v1 = vpop.eup %9899  ;;  %v12246_v17 = vand.u32 4294901760, %v9898_v46  ;;  %v13035_v2 = vand.u32 4294901760, %v12235_v58  ;;  %v4904_v24 = vand.u32 4294901760, %v4903_v28 }
 0x3d1   :  { %13364 = vst [vmem:[#allocation19_spill] sm:$0xff] %v12241_v38  ;;  %8207 = vmatmul.mubr.f32.gmra.mrb[52].mxu1 %v4884_v21  ;;  %8372 = vmatprep.mubr.f32.mxu0 %v12241_v38  ;;  %v4894_v40 = vand.u32 4294901760, %v4893_v11  ;;  %v12250_v30 = vand.u32 4294901760, %v9900_v1  ;;  %v13036_v54 = vand.u32 4294901760, %v12241_v38 }
 0x3d2   :  { %13365 = vst [vmem:[#allocation22_spill] sm:$0xff] %v12246_v17  ;;  %8373 = vmatmul.mubr.f32.gmra.mrb[44].mxu0 %v12235_v58  ;;  %v12255_v50 = vsub.f32 %v9898_v46, %v12246_v17  ;;  %v4923_v21 = vsub.f32 %v12235_v58, %v13035_v2 }
 0x3d3   :  { %13366 = vst [vmem:[#allocation21_spill] sm:$0xff] %v12250_v30  ;;  %v9902_v26 = vpop.eup %9901  ;;  %8209 = vmatprep.mubr.f32.mxu1 %v4894_v40  ;;  %v12261_v31 = vsub.f32 %v9900_v1, %v12250_v30  ;;  %v4913_v11 = vsub.f32 %v12241_v38, %v13036_v54 }
 0x3d4   :  { %v9904_v0 = vpop.eup %9903  ;;  %v12266_v63 = vand.u32 4294901760, %v9902_v26  ;;  %v13041_v28 = vand.u32 4294901760, %v12255_v50  ;;  %v4924_v1 = vand.u32 4294901760, %v4923_v21 }
 0x3d5   :  { %8210 = vmatmul.mubr.f32.gmra.mrb[54].mxu1 %v4904_v24  ;;  %8375 = vmatprep.mubr.f32.mxu0 %v12261_v31  ;;  %v4914_v46 = vand.u32 4294901760, %v4913_v11  ;;  %v12270_v17 = vand.u32 4294901760, %v9904_v0  ;;  %v13044_v40 = vand.u32 4294901760, %v12261_v31 }
 0x3d6   :  { %13367 = vst [vmem:[#allocation25_spill] sm:$0xff] %v12266_v63  ;;  %8376 = vmatmul.mubr.f32.gmra.mrb[46].mxu0 %v12255_v50  ;;  %v12275_v2 = vsub.f32 %v9902_v26, %v12266_v63  ;;  %v4943_v24 = vsub.f32 %v12255_v50, %v13041_v28 }
 0x3d7   :  { %13368 = vst [vmem:[#allocation24_spill] sm:$0xff] %v12270_v17  ;;  %v9906_v54 = vpop.eup %9905  ;;  %8212 = vmatprep.mubr.f32.mxu1 %v4914_v46  ;;  %v12281_v30 = vsub.f32 %v9904_v0, %v12270_v17  ;;  %v4933_v11 = vsub.f32 %v12261_v31, %v13044_v40  ;;  %v13369_v40 = vand.u32 4294901760, %v11949_v55  ;;  %v13370_v55 = vand.u32 4294901760, %v11945_v44 }
 0x3d8   :  { %v9908_v58 = vpop.eup %9907  ;;  %v12286_v38 = vand.u32 4294901760, %v9906_v54  ;;  %v13047_v26 = vand.u32 4294901760, %v12275_v2  ;;  %v4944_v0 = vand.u32 4294901760, %v4943_v24 }
 0x3d9   :  { %8213 = vmatmul.mubr.f32.gmra.mrb[56].mxu1 %v4924_v1  ;;  %v12289_v21 = vand.u32 4294901760, %v9908_v58  ;;  %8378 = vmatprep.mubr.f32.mxu0 %v12281_v30  ;;  %v4934_v28 = vand.u32 4294901760, %v4933_v11  ;;  %v4952_v46 = vand.u32 4294901760, %v12281_v30 }
 0x3da   :  { %8379 = vmatmul.mubr.f32.gmra.mrb[48].mxu0 %v12275_v2  ;;  %v12295_v63 = vsub.f32 %v9906_v54, %v12286_v38  ;;  %v4963_v11 = vsub.f32 %v12275_v2, %v13047_v26 }
 0x3db   :  { %8215 = vmatprep.mubr.f32.mxu1 %v4934_v28  ;;  %8416 = vmatprep.mubr.f32.mxu0 %v13369_v40  ;;  %v4953_v1 = vsub.f32 %v12281_v30, %v4952_v46  ;;  %v12306_v17 = vsub.f32 %v9908_v58, %v12289_v21  ;;  %v13422_v30 = vld [vmem:[#allocation22_spill] sm:$0xff] }
 0x3dc   :  { %v4982_v24 = vand.u32 4294901760, %v12295_v63  ;;  %v4964_v40 = vand.u32 4294901760, %v4963_v11  ;;  %v13373_v11 = vand.u32 4294901760, %v11993_v60  ;;  %v13393_v60 = vld [vmem:[#allocation58_spill] sm:$0xff] }
 0x3dd   :  { %8216 = vmatmul.mubr.f32.gmra.mrb[58].mxu1 %v4944_v0  ;;  %v4954_v54 = vand.u32 4294901760, %v4953_v1  ;;  %v4972_v28 = vand.u32 4294901760, %v12306_v17  ;;  %v13371_v0 = vand.u32 4294901760, %v11969_v36  ;;  %v13372_v1 = vand.u32 4294901760, %v11961_v48 }
 0x3de   :  { %8417 = vmatmul.mubr.f32.vlgmr.msra.gmra.mrb[20].mxu0 %v13370_v55  ;;  %v4983_v58 = vsub.f32 %v12295_v63, %v4982_v24  ;;  %v13374_v36 = vand.u32 4294901760, %v11985_v22  ;;  %v13375_v48 = vand.u32 4294901760, %v12019_v61  ;;  %v13395_v61 = vld [vmem:[#allocation70_spill] sm:$0xff]  ;;  %v13404_v55 = vld [vmem:[#allocation65_spill] sm:$0xff] }
 0x3df   :  { %9043 = vmatpush3.bf16.msra.mxu0 %v11769_v39  ;;  %8218 = vmatprep.mubr.f32.mxu1 %v4954_v54  ;;  %v4973_v26 = vsub.f32 %v12306_v17, %v4972_v28  ;;  %v13403_v54 = vld [vmem:[#allocation59_spill] sm:$0xff] }
 0x3e0   :  { %8419 = vmatprep.mubr.f32.mxu0 %v13371_v0  ;;  %9045 = vmatprep.subr.bf16.mxu0 %v11771_v13  ;;  %v4984_v39 = vand.u32 4294901760, %v4983_v58 }
 0x3e1   :  { %8219 = vmatmul.mubr.f32.gmra.mrb[60].mxu1 %v4964_v40  ;;  %v4974_v44 = vand.u32 4294901760, %v4973_v26  ;;  %v13405_v40 = vld [vmem:[#allocation13_spill] sm:$0xff] }
 0x3e2   :  { %8420 = vmatmul.mubr.f32.gmra.mrb[22].mxu0 %v13372_v1  ;;  %v13406_v58 = vand.u32 4294901760, %v13405_v40  ;;  %v13410_v1 = vld [vmem:[#allocation10_spill] sm:$0xff] }
 0x3e3   :  { %9047 = vmatpush3.bf16.msra.mxu0 %v11771_v13  ;;  %8221 = vmatprep.mubr.f32.mxu1 %v4974_v44  ;;  %v13376_v13 = vand.u32 4294901760, %v12011_v57  ;;  %v13394_v57 = vld [vmem:[#allocation48_spill] sm:$0xff] }
 0x3e4   :  { %8422 = vmatprep.mubr.f32.mxu0 %v13373_v11  ;;  %9049 = vmatprep.subr.bf16.mxu0 %v11773_v45  ;;  %v13409_v44 = vld [vmem:[#allocation64_spill] sm:$0xff]  ;;  %v13413_v11 = vand.u32 4294901760, %v12261_v31  ;;  %v13420_v31 = vld [vmem:[#allocation15_spill] sm:$0xff] }
 0x3e5   :  { %8222 = vmatmul.mubr.f32.gmra.mrb[62].mxu1 %v4984_v39  ;;  %v13411_v39 = vld [vmem:[#allocation17_spill] sm:$0xff] }
 0x3e6   :  { %8256 = vmatprep.mubr.f32.mxu1 %v11942_v43  ;;  %8423 = vmatmul.mubr.f32.gmra.mrb[24].mxu0 %v13374_v36  ;;  %v13414_v36 = vld [vmem:[#allocation9_spill] sm:$0xff] }
 0x3e7   :  { %9051 = vmatpush3.bf16.msra.mxu0 %v11773_v45  ;;  %8425 = vmatprep.mubr.f32.mxu0 %v13375_v48  ;;  %v13377_v45 = vand.u32 4294901760, %v12045_v41  ;;  %v13397_v41 = vand.u32 4294901760, %v12198_v4  ;;  %v13407_v4 = vld [vmem:[#allocation19_spill] sm:$0xff]  ;;  %v13415_v48 = vld [vmem:[#allocation12_spill] sm:$0xff] }
 0x3e8   :  { %9053 = vmatprep.subr.bf16.mxu0 %v11783_v52  ;;  %v13408_v0 = vand.u32 4294901760, %v13407_v4 }
 0x3e9   :  { %8257 = vmatmul.mubr.f32.vlgmr.msra.gmra.mrb[32].mxu1 %v11939_v5 }
 0x3ea   :  { %9112 = vmatpush3.bf16.msra.mxu1 %v11596_v56  ;;  %8259 = vmatprep.mubr.f32.mxu1 %v11956_v9  ;;  %v13378_v56 = vand.u32 4294901760, %v12037_v34 }
 0x3eb   :  { %9105 = vmatprep.subr.bf16.mxu1 %v11613_v15  ;;  %8426 = vmatmul.mubr.f32.gmra.mrb[26].mxu0 %v13376_v13  ;;  %v13416_v13 = vand.u32 4294901760, %v12255_v50  ;;  %v13423_v50 = vld [vmem:[#allocation24_spill] sm:$0xff] }
 0x3ec   :  { %9055 = vmatpush3.bf16.msra.mxu0 %v11783_v52  ;;  %8428 = vmatprep.mubr.f32.mxu0 %v13377_v45  ;;  %v13379_v52 = vand.u32 4294901760, %v12071_v25  ;;  %v13398_v25 = vld [vmem:[#allocation54_spill] sm:$0xff]  ;;  %v13417_v45 = vld [vmem:[#allocation11_spill] sm:$0xff] }
 0x3ed   :  { %9057 = vmatprep.subr.bf16.mxu0 %v11798_v12  ;;  %8260 = vmatmul.mubr.f32.gmra.mrb[34].mxu1 %v11952_v35 }
 0x3ee   :  { %9113 = vmatpush3.bf16.msra.mxu1 %v11613_v15  ;;  %8262 = vmatprep.mubr.f32.mxu1 %v11980_v42  ;;  %v13380_v15 = vand.u32 4294901760, %v12063_v20  ;;  %v13383_v20 = vand.u32 4294901760, %v12123_v23  ;;  %v13400_v23 = vand.u32 4294901760, %v12191_v27  ;;  %v13412_v27 = vand.u32 4294901760, %v13411_v39 }
 0x3ef   :  { %9106 = vmatprep.subr.bf16.mxu1 %v11670_v47  ;;  %8429 = vmatmul.mubr.f32.gmra.mrb[28].mxu0 %v13378_v56  ;;  %v13418_v56 = vld [vmem:[#allocation16_spill] sm:$0xff] }
 0x3f0   :  { %9059 = vmatpush3.bf16.msra.mxu0 %v11798_v12  ;;  %8431 = vmatprep.mubr.f32.mxu0 %v13379_v52  ;;  %v13381_v12 = vand.u32 4294901760, %v12097_v19  ;;  %v13399_v19 = vld [vmem:[#allocation60_spill] sm:$0xff]  ;;  %v13419_v52 = vand.u32 4294901760, %v12275_v2  ;;  %v13424_v2 = vld [vmem:[#allocation37_spill] sm:$0xff] }
 0x3f1   :  { %9061 = vmatprep.subr.bf16.mxu0 %v11810_v49  ;;  %8263 = vmatmul.mubr.f32.gmra.mrb[36].mxu1 %v11976_v16 }
 0x3f2   :  { %9114 = vmatpush3.bf16.msra.mxu1 %v11670_v47  ;;  %8265 = vmatprep.mubr.f32.mxu1 %v12005_v3  ;;  %v13382_v47 = vand.u32 4294901760, %v12089_v33  ;;  %v13385_v33 = vand.u32 4294901760, %v12149_v7  ;;  %v13401_v7 = vld [vmem:[#allocation14_spill] sm:$0xff] }
 0x3f3   :  { %9107 = vmatprep.subr.bf16.mxu1 %v11690_v53  ;;  %8432 = vmatmul.mubr.f32.gmra.mrb[30].mxu0 %v13380_v15  ;;  %v13402_v26 = vand.u32 4294901760, %v13401_v7  ;;  %v13421_v15 = vld [vmem:[#allocation21_spill] sm:$0xff] }
 0x3f4   :  { %9063 = vmatpush3.bf16.msra.mxu0 %v11810_v49  ;;  %8434 = vmatprep.mubr.f32.mxu0 %v13381_v12  ;;  %v13386_v49 = vld [vmem:[#allocation52_spill] sm:$0xff]  ;;  %v13430_v12 = vld [vmem:[#allocation43_spill] sm:$0xff] }
 0x3f5   :  { %9065 = vmatprep.subr.bf16.mxu0 %v11821_v51  ;;  %8266 = vmatmul.mubr.f32.gmra.mrb[38].mxu1 %v12000_v59 }
 0x3f6   :  { %9115 = vmatpush3.bf16.msra.mxu1 %v11690_v53  ;;  %8268 = vmatprep.mubr.f32.mxu1 %v12031_v32  ;;  %v13384_v53 = vand.u32 4294901760, %v12115_v8  ;;  %v13390_v8 = vld [vmem:[#allocation39_spill] sm:$0xff] }
 0x3f7   :  { %9108 = vmatprep.subr.bf16.mxu1 %v11706_v29  ;;  %8435 = vmatmul.mubr.f32.gmra.mrb[32].mxu0 %v13382_v47  ;;  %v13391_v22 = vand.u32 4294901760, %v13390_v8 }
 0x3f8   :  { %9067 = vmatpush3.bf16.msra.mxu0 %v11821_v51  ;;  %8437 = vmatprep.mubr.f32.mxu0 %v13383_v20  ;;  %v13388_v51 = vld [vmem:[#allocation61_spill] sm:$0xff] }
 0x3f9   :  { %9069 = vmatprep.subr.bf16.mxu0 %v11850_v10  ;;  %8269 = vmatmul.mubr.f32.gmra.mrb[40].mxu1 %v12026_v62  ;;  %v13389_v34 = vand.u32 4294901760, %v13388_v51 }
 0x3fa   :  { %9116 = vmatpush3.bf16.msra.mxu1 %v11706_v29  ;;  %8271 = vmatprep.mubr.f32.mxu1 %v12057_v6  ;;  %v13387_v29 = vld [vmem:[#allocation44_spill] sm:$0xff] }
 0x3fb   :  { %9109 = vmatprep.subr.bf16.mxu1 %v11735_v37  ;;  %8438 = vmatmul.mubr.f32.gmra.mrb[34].mxu0 %v13384_v53 }
 0x3fc   :  { %9071 = vmatpush3.bf16.msra.mxu0 %v11850_v10  ;;  %8440 = vmatprep.mubr.f32.mxu0 %v13385_v33  ;;  %v13392_v10 = vld [vmem:[#allocation50_spill] sm:$0xff] }
 0x3fd   :  { %9073 = vmatprep.subr.bf16.mxu0 %v11587_v14  ;;  %8272 = vmatmul.mubr.f32.gmra.mrb[42].mxu1 %v12052_v18 }
 0x3fe   :  { %9117 = vmatpush3.bf16.msra.mxu1 %v11735_v37  ;;  %8274 = vmatprep.mubr.f32.mxu1 %v13386_v49  ;;  %v13396_v37 = vand.u32 4294901760, %v13395_v61 }
 0x3ff   :  { %9110 = vmatprep.subr.bf16.mxu1 %v13387_v29  ;;  %8441 = vmatmul.mubr.f32.gmra.mrb[36].mxu0 %v13389_v34 }
 0x400   :  { %8443 = vmatprep.mubr.f32.mxu0 %v13391_v22 }
 0x401   :  { %8275 = vmatmul.mubr.f32.gmra.mrb[44].mxu1 %v13392_v10 }
 0x402   :  { %9118 = vmatpush3.bf16.msra.mxu1 %v13387_v29  ;;  %8277 = vmatprep.mubr.f32.mxu1 %v13393_v60 }
 0x403   :  { %9111 = vmatprep.subr.bf16.mxu1 %v13394_v57  ;;  %8444 = vmatmul.mubr.f32.gmra.mrb[38].mxu0 %v13396_v37 }
 0x404   :  { %8446 = vmatprep.mubr.f32.mxu0 %v13397_v41 }
 0x405   :  { %8278 = vmatmul.mubr.f32.gmra.mrb[46].mxu1 %v13398_v25 }
 0x406   :  { %9119 = vmatpush3.bf16.msra.mxu1 %v13394_v57  ;;  %8280 = vmatprep.mubr.f32.mxu1 %v13399_v19 }
 0x407   :  { %8447 = vmatmul.mubr.f32.gmra.mrb[40].mxu0 %v13400_v23  ;;  %v12567_v23 = vld [vmem:[%s12759_s9] ss:$0 sm:$0xff] }
 0x408   :  { %8449 = vmatprep.mubr.f32.mxu0 %v13402_v26 }
 0x409   :  { %8281 = vmatmul.mubr.f32.gmra.mrb[48].mxu1 %v13403_v54 }
 0x40a   :  { %8283 = vmatprep.mubr.f32.mxu1 %v13404_v55 }
 0x40b   :  { %8450 = vmatmul.mubr.f32.gmra.mrb[42].mxu0 %v13406_v58 }
 0x40c   :  { %8452 = vmatprep.mubr.f32.mxu0 %v13408_v0 }
 0x40d   :  { %8284 = vmatmul.mubr.f32.gmra.mrb[50].mxu1 %v13409_v44 }
 0x40e   :  { %8286 = vmatprep.mubr.f32.mxu1 %v13410_v1 }
 0x40f   :  { %8453 = vmatmul.mubr.f32.gmra.mrb[44].mxu0 %v13412_v27 }
 0x410   :  { %8455 = vmatprep.mubr.f32.mxu0 %v13413_v11 }
 0x411   :  { %8287 = vmatmul.mubr.f32.gmra.mrb[52].mxu1 %v13414_v36 }
 0x412   :  { %8289 = vmatprep.mubr.f32.mxu1 %v13415_v48 }
 0x413   :  { %8456 = vmatmul.mubr.f32.gmra.mrb[46].mxu0 %v13416_v13 }
 0x414   :  { %8458 = vmatprep.mubr.f32.mxu0 %v4952_v46  ;;  %v13425_v46 = vld [vmem:[#allocation25_spill] sm:$0xff] }
 0x415   :  { %8290 = vmatmul.mubr.f32.gmra.mrb[54].mxu1 %v13417_v45 }
 0x416   :  { %8292 = vmatprep.mubr.f32.mxu1 %v13418_v56 }
 0x417   :  { %8459 = vmatmul.mubr.f32.gmra.mrb[48].mxu0 %v13419_v52 }
 0x418   :  { %8461 = vmatprep.mubr.f32.mxu0 %v4972_v28  ;;  %v13428_v28 = vld [vmem:[#allocation8_spill] sm:$0xff] }
 0x419   :  { %8293 = vmatmul.mubr.f32.gmra.mrb[56].mxu1 %v13420_v31 }
 0x41a   :  { %8295 = vmatprep.mubr.f32.mxu1 %v13421_v15 }
 0x41b   :  { %8462 = vmatmul.mubr.f32.gmra.mrb[50].mxu0 %v4982_v24  ;;  %v13426_v24 = vld [vmem:[#allocation34_spill] sm:$0xff] }
 0x41c   :  { %8496 = vmatprep.mubr.f32.mxu0 %v11942_v43 }
 0x41d   :  { %8296 = vmatmul.mubr.f32.gmra.mrb[58].mxu1 %v13422_v30 }
 0x41e   :  { %8298 = vmatprep.mubr.f32.mxu1 %v13423_v50 }
 0x41f   :  { %8497 = vmatmul.mubr.f32.vlgmr.msra.gmra.mrb[20].mxu0 %v11939_v5 }
 0x420   :  { %9075 = vmatpush3.bf16.msra.mxu0 %v11587_v14  ;;  %8499 = vmatprep.mubr.f32.mxu0 %v11956_v9  ;;  %v13427_v14 = vld [vmem:[#allocation6_spill] sm:$0xff] }
 0x421   :  { %9077 = vmatprep.subr.bf16.mxu0 %v13424_v2  ;;  %8299 = vmatmul.mubr.f32.gmra.mrb[60].mxu1 %v13425_v46 }
 0x422   :  { %8301 = vmatprep.mubr.f32.mxu1 %v12289_v21 }
 0x423   :  { %8500 = vmatmul.mubr.f32.gmra.mrb[22].mxu0 %v11952_v35 }
 0x424   :  { %9079 = vmatpush3.bf16.msra.mxu0 %v13424_v2  ;;  %8502 = vmatprep.mubr.f32.mxu0 %v11980_v42 }
 0x425   :  { %9081 = vmatprep.subr.bf16.mxu0 %v13426_v24  ;;  %8302 = vmatmul.mubr.f32.gmra.mrb[62].mxu1 %v12286_v38 }
 0x426   :  { %8381 = vmatprep.mubr.f32.mxu1 %v12306_v17  ;;  %v13429_v17 = vld [vmem:[#allocation40_spill] sm:$0xff] }
 0x427   :  { %8503 = vmatmul.mubr.f32.gmra.mrb[24].mxu0 %v11976_v16 }
 0x428   :  { %9083 = vmatpush3.bf16.msra.mxu0 %v13426_v24  ;;  %8505 = vmatprep.mubr.f32.mxu0 %v12005_v3 }
 0x429   :  { %9085 = vmatprep.subr.bf16.mxu0 %v13427_v14 }
 0x42b   :  { %8506 = vmatmul.mubr.f32.gmra.mrb[26].mxu0 %v12000_v59 }
 0x42c   :  { %9087 = vmatpush3.bf16.msra.mxu0 %v13427_v14  ;;  %8508 = vmatprep.mubr.f32.mxu0 %v12031_v32 }
 0x42d   :  { %9089 = vmatprep.subr.bf16.mxu0 %v13428_v28  ;;  %8382 = vmatmul.mubr.f32.vlgmr.msra.gmra.mrb[62].mxu1 %v12295_v63  ;;  %v13431_v63 = vld [vmem:[#allocation45_spill] sm:$0xff] }
 0x42f   :  { %8509 = vmatmul.mubr.f32.gmra.mrb[28].mxu0 %v12026_v62 }
 0x430   :  { %9091 = vmatpush3.bf16.msra.mxu0 %v13428_v28  ;;  %8511 = vmatprep.mubr.f32.mxu0 %v12057_v6 }
 0x431   :  { %9093 = vmatprep.subr.bf16.mxu0 %v13429_v17 }
 0x433   :  { %8512 = vmatmul.mubr.f32.gmra.mrb[30].mxu0 %v12052_v18 }
 0x434   :  { %9095 = vmatpush3.bf16.msra.mxu0 %v13429_v17  ;;  %8514 = vmatprep.mubr.f32.mxu0 %v13386_v49 }
 0x435   :  { %9097 = vmatprep.subr.bf16.mxu0 %v13430_v12 }
 0x437   :  { %8515 = vmatmul.mubr.f32.gmra.mrb[32].mxu0 %v13392_v10 }
 0x438   :  { %9099 = vmatpush3.bf16.msra.mxu0 %v13430_v12  ;;  %8517 = vmatprep.mubr.f32.mxu0 %v13393_v60 }
 0x439   :  { %9101 = vmatprep.subr.bf16.mxu0 %v13431_v63 }
 0x43b   :  { %8518 = vmatmul.mubr.f32.gmra.mrb[34].mxu0 %v13398_v25 }
 0x43c   :  { %9103 = vmatpush3.bf16.msra.mxu0 %v13431_v63  ;;  %8520 = vmatprep.mubr.f32.mxu0 %v13399_v19 }
 0x43f   :  { %8521 = vmatmul.mubr.f32.gmra.mrb[36].mxu0 %v13403_v54 }
 0x440   :  { %8523 = vmatprep.mubr.f32.mxu0 %v13404_v55 }
 0x443   :  { %8524 = vmatmul.mubr.f32.gmra.mrb[38].mxu0 %v13409_v44 }
 0x444   :  { %8526 = vmatprep.mubr.f32.mxu0 %v13410_v1 }
 0x447   :  { %8527 = vmatmul.mubr.f32.gmra.mrb[40].mxu0 %v13414_v36 }
 0x448   :  { %8529 = vmatprep.mubr.f32.mxu0 %v13415_v48 }
 0x44b   :  { %8530 = vmatmul.mubr.f32.gmra.mrb[42].mxu0 %v13417_v45 }
 0x44c   :  { %8532 = vmatprep.mubr.f32.mxu0 %v13418_v56 }
 0x44f   :  { %8533 = vmatmul.mubr.f32.gmra.mrb[44].mxu0 %v13420_v31 }
 0x450   :  { %8535 = vmatprep.mubr.f32.mxu0 %v13421_v15 }
 0x453   :  { %8536 = vmatmul.mubr.f32.gmra.mrb[46].mxu0 %v13422_v30 }
 0x454   :  { %8538 = vmatprep.mubr.f32.mxu0 %v13423_v50 }
 0x457   :  { %8539 = vmatmul.mubr.f32.gmra.mrb[48].mxu0 %v13425_v46 }
 0x458   :  { %8541 = vmatprep.mubr.f32.mxu0 %v12289_v21 }
 0x45b   :  { %8542 = vmatmul.mubr.f32.gmra.mrb[50].mxu0 %v12286_v38 }
 0x45c   :  { %8576 = vmatprep.mubr.f32.mxu0 %v11942_v43 }
 0x45f   :  { %8577 = vmatmul.mubr.f32.vlgmr.msra.gmra.mrb[20].mxu0 %v11939_v5 }
 0x460   :  { %8579 = vmatprep.mubr.f32.mxu0 %v11956_v9 }
 0x463   :  { %8580 = vmatmul.mubr.f32.gmra.mrb[22].mxu0 %v11952_v35 }
 0x464   :  { %8582 = vmatprep.mubr.f32.mxu0 %v11980_v42 }
 0x467   :  { %8583 = vmatmul.mubr.f32.gmra.mrb[24].mxu0 %v11976_v16 }
 0x468   :  { %8585 = vmatprep.mubr.f32.mxu0 %v12005_v3 }
 0x46b   :  { %8586 = vmatmul.mubr.f32.gmra.mrb[26].mxu0 %v12000_v59 }
 0x46c   :  { %8588 = vmatprep.mubr.f32.mxu0 %v12031_v32 }
 0x46f   :  { %8589 = vmatmul.mubr.f32.gmra.mrb[28].mxu0 %v12026_v62 }
 0x470   :  { %8591 = vmatprep.mubr.f32.mxu0 %v12057_v6 }
 0x473   :  { %8592 = vmatmul.mubr.f32.gmra.mrb[30].mxu0 %v12052_v18 }
 0x474   :  { %8594 = vmatprep.mubr.f32.mxu0 %v13386_v49 }
 0x477   :  { %8595 = vmatmul.mubr.f32.gmra.mrb[32].mxu0 %v13392_v10 }
 0x478   :  { %8597 = vmatprep.mubr.f32.mxu0 %v13393_v60 }
 0x47b   :  { %8598 = vmatmul.mubr.f32.gmra.mrb[34].mxu0 %v13398_v25 }
 0x47c   :  { %8600 = vmatprep.mubr.f32.mxu0 %v13399_v19 }
 0x47f   :  { %8601 = vmatmul.mubr.f32.gmra.mrb[36].mxu0 %v13403_v54 }
 0x480   :  { %8603 = vmatprep.mubr.f32.mxu0 %v13404_v55 }
 0x483   :  { %8604 = vmatmul.mubr.f32.gmra.mrb[38].mxu0 %v13409_v44 }
 0x484   :  { %8606 = vmatprep.mubr.f32.mxu0 %v13410_v1 }
 0x487   :  { %8607 = vmatmul.mubr.f32.gmra.mrb[40].mxu0 %v13414_v36 }
 0x488   :  { %8609 = vmatprep.mubr.f32.mxu0 %v13415_v48 }
 0x48b   :  { %8610 = vmatmul.mubr.f32.gmra.mrb[42].mxu0 %v13417_v45 }
 0x48c   :  { %8612 = vmatprep.mubr.f32.mxu0 %v13418_v56 }
 0x48f   :  { %8613 = vmatmul.mubr.f32.gmra.mrb[44].mxu0 %v13420_v31 }
 0x490   :  { %8615 = vmatprep.mubr.f32.mxu0 %v13421_v15 }
 0x493   :  { %8616 = vmatmul.mubr.f32.gmra.mrb[46].mxu0 %v13422_v30 }
 0x494   :  { %8618 = vmatprep.mubr.f32.mxu0 %v13423_v50 }
 0x497   :  { %8619 = vmatmul.mubr.f32.gmra.mrb[48].mxu0 %v13425_v46 }
 0x498   :  { %8621 = vmatprep.mubr.f32.mxu0 %v12289_v21 }
 0x49b   :  { %8622 = vmatmul.mubr.f32.gmra.mrb[50].mxu0 %v12286_v38 }
 0x4bc   :  { %v8258_v5 = vpop.f32.mrb[32].mxu1 }
 0x4bd   :  { %v5137_v43 = vpop.f32.mrb[33].mxu1  ;;  %v9152_v7 = vadd.f32 %v8258_v5, %v12567_v23 }
 0x4be   :  { %v9154_v26 = vadd.f32 %v12567_v23, %v5137_v43 }
 0x4c0   :  { %v8261_v35 = vpop.f32.mrb[34].mxu1 }
 0x4c1   :  { %v5149_v9 = vpop.f32.mrb[35].mxu1  ;;  %v9156_v4 = vadd.f32 %v8261_v35, %v12567_v23 }
 0x4c2   :  { %v9158_v0 = vadd.f32 %v12567_v23, %v5149_v9 }
 0x4c4   :  { %v8264_v16 = vpop.f32.mrb[36].mxu1 }
 0x4c5   :  { %v5161_v42 = vpop.f32.mrb[37].mxu1  ;;  %v9160_v11 = vadd.f32 %v8264_v16, %v12567_v23 }
 0x4c6   :  { %v9162_v36 = vadd.f32 %v12567_v23, %v5161_v42 }
 0x4c8   :  { %v8267_v59 = vpop.f32.mrb[38].mxu1 }
 0x4c9   :  { %v5173_v62 = vpop.f32.mrb[39].mxu1  ;;  %v9164_v52 = vadd.f32 %v8267_v59, %v12567_v23 }
 0x4ca   :  { %v9166_v31 = vadd.f32 %v12567_v23, %v5173_v62 }
 0x4cc   :  { %v8270_v3 = vpop.f32.mrb[40].mxu1 }
 0x4cd   :  { %v5185_v18 = vpop.f32.mrb[41].mxu1  ;;  %v9168_v46 = vadd.f32 %v8270_v3, %v12567_v23 }
 0x4ce   :  { %v9170_v24 = vadd.f32 %v12567_v23, %v5185_v18 }
 0x4d0   :  { %v8273_v32 = vpop.f32.mrb[42].mxu1 }
 0x4d1   :  { %v12522_v6 = vpop.f32.mrb[43].mxu1  ;;  %v9172_v63 = vadd.f32 %v8273_v32, %v12567_v23 }
 0x4d2   :  { %v9174_v5 = vadd.f32 %v12567_v23, %v12522_v6 }
 0x4d4   :  { %v12524_v47 = vpop.f32.mrb[44].mxu1 }
 0x4d5   :  { %v12526_v20 = vpop.f32.mrb[45].mxu1  ;;  %v9176_v42 = vadd.f32 %v12524_v47, %v12567_v23 }
 0x4d6   :  { %v9178_v59 = vadd.f32 %v12567_v23, %v12526_v20 }
 0x4d8   :  { %v12528_v21 = vpop.f32.mrb[46].mxu1 }
 0x4d9   :  { %v12530_v38 = vpop.f32.mrb[47].mxu1  ;;  %v9180_v6 = vadd.f32 %v12528_v21, %v12567_v23 }
 0x4da   :  { %v9182_v47 = vadd.f32 %v12567_v23, %v12530_v38 }
 0x4dc   :  { %v12532_v53 = vpop.f32.mrb[48].mxu1 }
 0x4dd   :  { %v12534_v33 = vpop.f32.mrb[49].mxu1  ;;  %v9184_v21 = vadd.f32 %v12532_v53, %v12567_v23 }
 0x4de   :  { %v9186_v38 = vadd.f32 %v12567_v23, %v12534_v33 }
 0x4e0   :  { %v12536_v49 = vpop.f32.mrb[50].mxu1 }
 0x4e1   :  { %v12538_v29 = vpop.f32.mrb[51].mxu1  ;;  %v9188_v53 = vadd.f32 %v12536_v49, %v12567_v23 }
 0x4e2   :  { %v9190_v33 = vadd.f32 %v12567_v23, %v12538_v29 }
 0x4e4   :  { %v12540_v51 = vpop.f32.mrb[52].mxu1 }
 0x4e5   :  { %v12542_v34 = vpop.f32.mrb[53].mxu1  ;;  %v9192_v49 = vadd.f32 %v12540_v51, %v12567_v23 }
 0x4e6   :  { %v9194_v29 = vadd.f32 %v12567_v23, %v12542_v34 }
 0x4e8   :  { %v12544_v8 = vpop.f32.mrb[54].mxu1 }
 0x4e9   :  { %v12546_v22 = vpop.f32.mrb[55].mxu1  ;;  %v9196_v51 = vadd.f32 %v12544_v8, %v12567_v23 }
 0x4ea   :  { %v9198_v34 = vadd.f32 %v12567_v23, %v12546_v22 }
 0x4ec   :  { %v12548_v10 = vpop.f32.mrb[56].mxu1 }
 0x4ed   :  { %v12550_v60 = vpop.f32.mrb[57].mxu1  ;;  %v9200_v8 = vadd.f32 %v12548_v10, %v12567_v23 }
 0x4ee   :  { %v9202_v22 = vadd.f32 %v12567_v23, %v12550_v60 }
 0x4f0   :  { %v12552_v57 = vpop.f32.mrb[58].mxu1 }
 0x4f1   :  { %v12554_v61 = vpop.f32.mrb[59].mxu1  ;;  %v9204_v10 = vadd.f32 %v12552_v57, %v12567_v23 }
 0x4f2   :  { %v9206_v60 = vadd.f32 %v12567_v23, %v12554_v61 }
 0x4f4   :  { %v12556_v37 = vpop.f32.mrb[60].mxu1 }
 0x4f5   :  { %v12558_v41 = vpop.f32.mrb[61].mxu1  ;;  %v9208_v57 = vadd.f32 %v12556_v37, %v12567_v23 }
 0x4f6   :  { %v9210_v61 = vadd.f32 %v12567_v23, %v12558_v41 }
 0x500   :  { %v12560_v25 = vpop.f32.mrb[62].mxu1 }
 0x501   :  { %v12562_v19 = vpop.f32.mrb[63].mxu1  ;;  %v9212_v37 = vadd.f32 %v12560_v25, %v12567_v23 }
 0x502   :  { %v9214_v41 = vadd.f32 %v12567_v23, %v12562_v19 }
 0x532   :  { %v8578_v54 = vpop.f32.mrb[20].mxu0 }
 0x533   :  { %v9153_v55 = vadd.f32 %v9152_v7, %v8578_v54  ;;  %v6373_v40 = vpop.f32.mrb[21].mxu0 }
 0x534   :  { %v9155_v58 = vadd.f32 %v9154_v26, %v6373_v40 }
 0x535   :  { %6565 = vst.msk [vmem:[%s12760_s10 + $0x8] sm:$0xff] %vm6563_vm1, %v9153_v55 }
 0x536   :  { %6564 = vst.msk [vmem:[%s12760_s10] sm:$0xff] %vm6563_vm1, %v9155_v58  ;;  %v8581_v44 = vpop.f32.mrb[22].mxu0 }
 0x537   :  { %v9157_v1 = vadd.f32 %v9156_v4, %v8581_v44  ;;  %v6385_v39 = vpop.f32.mrb[23].mxu0 }
 0x538   :  { %v9159_v27 = vadd.f32 %v9158_v0, %v6385_v39 }
 0x539   :  { %6567 = vst.msk [vmem:[%s12760_s10 + $0x18] sm:$0xff] %vm6563_vm1, %v9157_v1 }
 0x53a   :  { %6566 = vst.msk [vmem:[%s12760_s10 + $0x10] sm:$0xff] %vm6563_vm1, %v9159_v27  ;;  %v8584_v48 = vpop.f32.mrb[24].mxu0 }
 0x53b   :  { %v9161_v13 = vadd.f32 %v9160_v11, %v8584_v48  ;;  %v6397_v45 = vpop.f32.mrb[25].mxu0 }
 0x53c   :  { %v9163_v56 = vadd.f32 %v9162_v36, %v6397_v45 }
 0x53d   :  { %6569 = vst.msk [vmem:[%s12760_s10 + $0x28] sm:$0xff] %vm6563_vm1, %v9161_v13 }
 0x53e   :  { %6568 = vst.msk [vmem:[%s12760_s10 + $0x20] sm:$0xff] %vm6563_vm1, %v9163_v56  ;;  %v8587_v15 = vpop.f32.mrb[26].mxu0 }
 0x53f   :  { %v9165_v30 = vadd.f32 %v9164_v52, %v8587_v15  ;;  %v6409_v50 = vpop.f32.mrb[27].mxu0 }
 0x540   :  { %v9167_v2 = vadd.f32 %v9166_v31, %v6409_v50 }
 0x541   :  { %6571 = vst.msk [vmem:[%s12760_s10 + $0x38] sm:$0xff] %vm6563_vm1, %v9165_v30 }
 0x542   :  { %6570 = vst.msk [vmem:[%s12760_s10 + $0x30] sm:$0xff] %vm6563_vm1, %v9167_v2  ;;  %v8590_v14 = vpop.f32.mrb[28].mxu0 }
 0x543   :  { %v9169_v28 = vadd.f32 %v9168_v46, %v8590_v14  ;;  %v6421_v17 = vpop.f32.mrb[29].mxu0 }
 0x544   :  { %v9171_v12 = vadd.f32 %v9170_v24, %v6421_v17 }
 0x545   :  { %6573 = vst.msk [vmem:[%s12760_s10 + $0x48] sm:$0xff] %vm6563_vm1, %v9169_v28 }
 0x546   :  { %6572 = vst.msk [vmem:[%s12760_s10 + $0x40] sm:$0xff] %vm6563_vm1, %v9171_v12  ;;  %v8593_v43 = vpop.f32.mrb[30].mxu0 }
 0x547   :  { %v9173_v35 = vadd.f32 %v9172_v63, %v8593_v43  ;;  %v6433_v9 = vpop.f32.mrb[31].mxu0 }
 0x548   :  { %v9175_v16 = vadd.f32 %v9174_v5, %v6433_v9 }
 0x549   :  { %6575 = vst.msk [vmem:[%s12760_s10 + $0x58] sm:$0xff] %vm6563_vm1, %v9173_v35 }
 0x54a   :  { %6574 = vst.msk [vmem:[%s12760_s10 + $0x50] sm:$0xff] %vm6563_vm1, %v9175_v16  ;;  %v8596_v62 = vpop.f32.mrb[32].mxu0 }
 0x54b   :  { %v9177_v3 = vadd.f32 %v9176_v42, %v8596_v62  ;;  %v6445_v18 = vpop.f32.mrb[33].mxu0 }
 0x54c   :  { %v9179_v32 = vadd.f32 %v9178_v59, %v6445_v18 }
 0x54d   :  { %6577 = vst.msk [vmem:[%s12760_s10 + $0x68] sm:$0xff] %vm6563_vm1, %v9177_v3 }
 0x54e   :  { %6576 = vst.msk [vmem:[%s12760_s10 + $0x60] sm:$0xff] %vm6563_vm1, %v9179_v32  ;;  %v8599_v20 = vpop.f32.mrb[34].mxu0 }
 0x54f   :  { %v9181_v7 = vadd.f32 %v9180_v6, %v8599_v20  ;;  %v6457_v26 = vpop.f32.mrb[35].mxu0 }
 0x550   :  { %v9183_v54 = vadd.f32 %v9182_v47, %v6457_v26 }
 0x551   :  { %6579 = vst.msk [vmem:[%s12760_s10 + $0x78] sm:$0xff] %vm6563_vm1, %v9181_v7 }
 0x552   :  { %6578 = vst.msk [vmem:[%s12760_s10 + $0x70] sm:$0xff] %vm6563_vm1, %v9183_v54  ;;  %v8602_v55 = vpop.f32.mrb[36].mxu0 }
 0x553   :  { %v9185_v40 = vadd.f32 %v9184_v21, %v8602_v55  ;;  %v6469_v58 = vpop.f32.mrb[37].mxu0 }
 0x554   :  { %v9187_v4 = vadd.f32 %v9186_v38, %v6469_v58 }
 0x555   :  { %6581 = vst.msk [vmem:[%s12760_s10 + $0x88] sm:$0xff] %vm6563_vm1, %v9185_v40 }
 0x556   :  { %6580 = vst.msk [vmem:[%s12760_s10 + $0x80] sm:$0xff] %vm6563_vm1, %v9187_v4  ;;  %v8605_v0 = vpop.f32.mrb[38].mxu0 }
 0x557   :  { %v9189_v44 = vadd.f32 %v9188_v53, %v8605_v0  ;;  %v6481_v1 = vpop.f32.mrb[39].mxu0 }
 0x558   :  { %v9191_v39 = vadd.f32 %v9190_v33, %v6481_v1 }
 0x559   :  { %6583 = vst.msk [vmem:[%s12760_s10 + $0x98] sm:$0xff] %vm6563_vm1, %v9189_v44 }
 0x55a   :  { %6582 = vst.msk [vmem:[%s12760_s10 + $0x90] sm:$0xff] %vm6563_vm1, %v9191_v39  ;;  %v8608_v27 = vpop.f32.mrb[40].mxu0 }
 0x55b   :  { %v9193_v11 = vadd.f32 %v9192_v49, %v8608_v27  ;;  %v6493_v36 = vpop.f32.mrb[41].mxu0 }
 0x55c   :  { %v9195_v48 = vadd.f32 %v9194_v29, %v6493_v36 }
 0x55d   :  { %6585 = vst.msk [vmem:[%s12760_s10 + $0xa8] sm:$0xff] %vm6563_vm1, %v9193_v11 }
 0x55e   :  { %6584 = vst.msk [vmem:[%s12760_s10 + $0xa0] sm:$0xff] %vm6563_vm1, %v9195_v48  ;;  %v8611_v13 = vpop.f32.mrb[42].mxu0 }
 0x55f   :  { %v9197_v45 = vadd.f32 %v9196_v51, %v8611_v13  ;;  %v6505_v56 = vpop.f32.mrb[43].mxu0 }
 0x560   :  { %v9199_v52 = vadd.f32 %v9198_v34, %v6505_v56 }
 0x561   :  { %6587 = vst.msk [vmem:[%s12760_s10 + $0xb8] sm:$0xff] %vm6563_vm1, %v9197_v45 }
 0x562   :  { %6586 = vst.msk [vmem:[%s12760_s10 + $0xb0] sm:$0xff] %vm6563_vm1, %v9199_v52  ;;  %v8614_v31 = vpop.f32.mrb[44].mxu0 }
 0x563   :  { %v9201_v15 = vadd.f32 %v9200_v8, %v8614_v31  ;;  %v6517_v30 = vpop.f32.mrb[45].mxu0 }
 0x564   :  { %v9203_v50 = vadd.f32 %v9202_v22, %v6517_v30 }
 0x565   :  { %6589 = vst.msk [vmem:[%s12760_s10 + $0xc8] sm:$0xff] %vm6563_vm1, %v9201_v15 }
 0x566   :  { %6588 = vst.msk [vmem:[%s12760_s10 + $0xc0] sm:$0xff] %vm6563_vm1, %v9203_v50  ;;  %v8617_v2 = vpop.f32.mrb[46].mxu0 }
 0x567   :  { %v9205_v46 = vadd.f32 %v9204_v10, %v8617_v2  ;;  %v6529_v24 = vpop.f32.mrb[47].mxu0 }
 0x568   :  { %v9207_v14 = vadd.f32 %v9206_v60, %v6529_v24 }
 0x569   :  { %6591 = vst.msk [vmem:[%s12760_s10 + $0xd8] sm:$0xff] %vm6563_vm1, %v9205_v46 }
 0x56a   :  { %6590 = vst.msk [vmem:[%s12760_s10 + $0xd0] sm:$0xff] %vm6563_vm1, %v9207_v14  ;;  %v8620_v28 = vpop.f32.mrb[48].mxu0 }
 0x56b   :  { %v9209_v17 = vadd.f32 %v9208_v57, %v8620_v28  ;;  %v6541_v12 = vpop.f32.mrb[49].mxu0 }
 0x56c   :  { %v9211_v63 = vadd.f32 %v9210_v61, %v6541_v12 }
 0x56d   :  { %6593 = vst.msk [vmem:[%s12760_s10 + $0xe8] sm:$0xff] %vm6563_vm1, %v9209_v17 }
 0x56e   :  { %6592 = vst.msk [vmem:[%s12760_s10 + $0xe0] sm:$0xff] %vm6563_vm1, %v9211_v63  ;;  %v8623_v5 = vpop.f32.mrb[50].mxu0 }
 0x56f   :  { %v9213_v43 = vadd.f32 %v9212_v37, %v8623_v5  ;;  %v6553_v35 = vpop.f32.mrb[51].mxu0 }
 0x570   :  { %v9215_v9 = vadd.f32 %v9214_v41, %v6553_v35 }
 0x571   :  { %6595 = vst.msk [vmem:[%s12760_s10 + $0xf8] sm:$0xff] %vm6563_vm1, %v9213_v43 }
 0x572   :  { %6594 = vst.msk [vmem:[%s12760_s10 + $0xf0] sm:$0xff] %vm6563_vm1, %v9215_v9 }
 0x573   :  { %6600 = vsyncpa [#allocation3], 1 }

</bundles_post_ra>
